<compile_context>
chip_gen: v7x
topology: tpu7x:2x2x1
jax: 0.10.0
libtpu: 0.0.40
codegen_flags: <defaults>
</compile_context>

<pallas_src>
import jax
import jax.numpy as jnp
import numpy as np
from jax.experimental import pallas as pl
from jax.experimental.pallas import tpu as pltpu


# ----------------------------------------------------------------------------
# Helpers
# ----------------------------------------------------------------------------
def _round_up(n, m):
    return ((n + m - 1) // m) * m


def _pick_time_chunk(T, cap=32):
    """Largest divisor of T that is <= cap (keeps the grid exact, no tail)."""
    for tc in range(min(T, cap), 0, -1):
        if T % tc == 0:
            return tc
    return 1


# ----------------------------------------------------------------------------
# Fused Pallas kernel (all LSTM layers + final FC)
# ----------------------------------------------------------------------------
def _make_fused_kernel(num_layers, time_chunk, Hp, Bp):
    four_hp = 4 * Hp
    L = num_layers

    def kernel(*refs):
        x_ref = refs[0]                                   # (Tc, Bp, Ip)
        wx_refs = refs[1:1 + L]                           # (In_l, 4Hp) each
        wh_refs = refs[1 + L:1 + 2 * L]                   # (Hp,  4Hp) each
        b_refs = refs[1 + 2 * L:1 + 3 * L]                # (1,   4Hp) each
        fcw_ref = refs[1 + 3 * L]                         # (Hp, Op)
        fcb_ref = refs[2 + 3 * L]                         # (1,  Op)
        out_ref = refs[3 + 3 * L]                         # (Bp, Op)
        act_sc = refs[4 + 3 * L]                          # (Tc, Bp, Hp)   scratch
        gx_sc = refs[5 + 3 * L]                           # (Tc, Bp, 4Hp)  scratch
        h_sc = refs[6 + 3 * L]                            # (L, Bp, Hp)    scratch
        c_sc = refs[7 + 3 * L]                            # (L, Bp, Hp)    scratch

        chunk = pl.program_id(0)
        n_chunks = pl.num_programs(0)

        @pl.when(chunk == 0)
        def _():
            h_sc[...] = jnp.zeros_like(h_sc)
            c_sc[...] = jnp.zeros_like(c_sc)

        for layer in range(num_layers):
            # Weights/bias loaded once per chunk (hoisted out of the time loop).
            wh = wh_refs[layer][...]                      # (Hp, 4Hp)
            bias = b_refs[layer][...]                     # (1, 4Hp)

            # --- Recurrence-independent input projection for the whole chunk:
            # (Tc*Bp, In_l) @ (In_l, 4Hp) + bias, one MXU contraction.
            # Bp is a multiple of 8, so merging the leading dims is layout-free.
            x_all = x_ref[...] if layer == 0 else act_sc[...]   # (Tc, Bp, In_l)
            in_dim = x_all.shape[-1]
            gx = jnp.dot(x_all.reshape(time_chunk * Bp, in_dim),
                         wx_refs[layer][...],
                         preferred_element_type=jnp.float32) + bias
            gx_sc[...] = gx.reshape(time_chunk, Bp, four_hp)

            # --- Sequential recurrence: only the small h @ W_hh matmul +
            # elementwise gates remain on the serial critical path.
            def step(t, carry, layer=layer, wh=wh):
                h = h_sc[layer]                            # (Bp, Hp)
                c = c_sc[layer]                            # (Bp, Hp)
                gates = gx_sc[t] + jnp.dot(h, wh,
                                           preferred_element_type=jnp.float32)
                # PyTorch gate order: i, f, g, o — each a 128-aligned lane slab.
                i_g = jax.nn.sigmoid(gates[:, 0 * Hp:1 * Hp])
                f_g = jax.nn.sigmoid(gates[:, 1 * Hp:2 * Hp])
                g_g = jnp.tanh(gates[:, 2 * Hp:3 * Hp])
                o_g = jax.nn.sigmoid(gates[:, 3 * Hp:4 * Hp])
                c_new = f_g * c + i_g * g_g
                h_new = o_g * jnp.tanh(c_new)
                c_sc[layer] = c_new
                h_sc[layer] = h_new
                if layer < num_layers - 1:
                    # In-place hand-off to the next layer (stays in VMEM).
                    act_sc[t] = h_new
                return carry

            jax.lax.fori_loop(0, time_chunk, step, 0,
                              unroll=time_chunk <= 16)

        @pl.when(chunk == n_chunks - 1)
        def _():
            # Fused final Linear on the last layer's last hidden state.
            out_ref[...] = (
                jnp.dot(h_sc[num_layers - 1], fcw_ref[...],
                        preferred_element_type=jnp.float32)
                + fcb_ref[...]
            ).astype(out_ref.dtype)

    return kernel


# ----------------------------------------------------------------------------
# Parameter init (PyTorch-style) and packing into padded layouts
# ----------------------------------------------------------------------------
def init_params(key, input_size, output_size, hidden_size, num_layers):
    """Raw PyTorch-layout params: w_ih (4H,in), w_hh (4H,H), b_ih, b_hh."""
    H = hidden_size
    bound = 1.0 / np.sqrt(H)
    params = {"lstm": []}
    for layer in range(num_layers):
        in_sz = input_size if layer == 0 else H
        key, k1, k2, k3, k4 = jax.random.split(key, 5)
        w_ih = jax.random.uniform(k1, (4 * H, in_sz), jnp.float32, -bound, bound)
        w_hh = jax.random.uniform(k2, (4 * H, H), jnp.float32, -bound, bound)
        b_ih = jax.random.uniform(k3, (4 * H,), jnp.float32, -bound, bound)
        b_hh = jax.random.uniform(k4, (4 * H,), jnp.float32, -bound, bound)
        params["lstm"].append((w_ih, w_hh, b_ih, b_hh))
    key, k1, k2 = jax.random.split(key, 3)
    fc_bound = 1.0 / np.sqrt(H)
    fc_w = jax.random.uniform(k1, (output_size, H), jnp.float32, -fc_bound, fc_bound)
    fc_b = jax.random.uniform(k2, (output_size,), jnp.float32, -fc_bound, fc_bound)
    params["fc"] = (fc_w, fc_b)
    return params


def pack_params(raw_params, input_size, hidden_size, output_size, num_layers):
    """Pack into W_ih^T / W_hh^T column-major gate slabs, zero-padded so every
    per-gate column block is 128-lane aligned. Zero padding is inert."""
    H = hidden_size
    Hp = _round_up(H, 128)
    Ip = _round_up(input_size, 128)
    Op = _round_up(output_size, 128)

    packed = {"H": H, "I": input_size, "O": output_size,
              "Hp": Hp, "Ip": Ip, "Op": Op,
              "num_layers": num_layers, "wx": [], "wh": [], "b": []}

    for layer in range(num_layers):
        w_ih, w_hh, b_ih, b_hh = raw_params["lstm"][layer]
        in_sz = input_size if layer == 0 else H
        Inp = Ip if layer == 0 else Hp
        wih_t = w_ih.T        # (in_sz, 4H)
        whh_t = w_hh.T        # (H, 4H)
        bias = b_ih + b_hh    # (4H,)

        Wx = jnp.zeros((Inp, 4 * Hp), jnp.float32)
        Wh = jnp.zeros((Hp, 4 * Hp), jnp.float32)
        bvec = jnp.zeros((1, 4 * Hp), jnp.float32)
        for g in range(4):
            Wx = Wx.at[:in_sz, g * Hp:g * Hp + H].set(wih_t[:, g * H:(g + 1) * H])
            Wh = Wh.at[:H, g * Hp:g * Hp + H].set(whh_t[:, g * H:(g + 1) * H])
            bvec = bvec.at[0, g * Hp:g * Hp + H].set(bias[g * H:(g + 1) * H])
        packed["wx"].append(Wx)
        packed["wh"].append(Wh)
        packed["b"].append(bvec)

    fc_w, fc_b = raw_params["fc"]
    packed["fc_w"] = jnp.zeros((Hp, Op), jnp.float32).at[:H, :output_size].set(fc_w.T)
    packed["fc_b"] = jnp.zeros((1, Op), jnp.float32).at[0, :output_size].set(fc_b)
    return packed


# ----------------------------------------------------------------------------
# Wrapper
# ----------------------------------------------------------------------------
def lstm_net_forward(x_bti, packed):
    """x_bti: (B, T, input_size) batch_first, like PyTorch. Returns (B, O)."""
    B, T, I = x_bti.shape
    Hp, Ip, Op, O = packed["Hp"], packed["Ip"], packed["Op"], packed["O"]
    L = packed["num_layers"]
    Bp = _round_up(B, 8)
    Tc = _pick_time_chunk(T)
    n_chunks = T // Tc

    # (B, T, I) -> (T, B, I), zero-pad batch to 8 sublanes and features to 128 lanes.
    x = jnp.transpose(x_bti, (1, 0, 2)).astype(jnp.float32)
    x = jnp.pad(x, ((0, 0), (0, Bp - B), (0, Ip - I)))

    kernel = _make_fused_kernel(L, Tc, Hp, Bp)

    in_specs = [pl.BlockSpec((Tc, Bp, Ip), lambda c: (c, 0, 0))]
    for layer in range(L):
        # Constant-index weight blocks stay resident in VMEM across the grid.
        in_specs.append(pl.BlockSpec(packed["wx"][layer].shape, lambda c: (0, 0)))
    for layer in range(L):
        in_specs.append(pl.BlockSpec((Hp, 4 * Hp), lambda c: (0, 0)))
    for layer in range(L):
        in_specs.append(pl.BlockSpec((1, 4 * Hp), lambda c: (0, 0)))
    in_specs.append(pl.BlockSpec((Hp, Op), lambda c: (0, 0)))
    in_specs.append(pl.BlockSpec((1, Op), lambda c: (0, 0)))

    out = pl.pallas_call(
        kernel,
        out_shape=jax.ShapeDtypeStruct((Bp, Op), jnp.float32),
        grid_spec=pltpu.PrefetchScalarGridSpec(
            num_scalar_prefetch=0,
            grid=(n_chunks,),
            in_specs=in_specs,
            out_specs=pl.BlockSpec((Bp, Op), lambda c: (0, 0)),
            scratch_shapes=[
                pltpu.VMEM((Tc, Bp, Hp), jnp.float32),       # inter-layer activations
                pltpu.VMEM((Tc, Bp, 4 * Hp), jnp.float32),   # precomputed input gates
                pltpu.VMEM((L, Bp, Hp), jnp.float32),        # h state per layer
                pltpu.VMEM((L, Bp, Hp), jnp.float32),        # c state per layer
            ],
        ),
        compiler_params=pltpu.CompilerParams(
            # Time chunks carry h/c state -> must stay sequential.
            dimension_semantics=("arbitrary",),
        ),
    )(x, *packed["wx"], *packed["wh"], *packed["b"],
      packed["fc_w"], packed["fc_b"])

    return out[:B, :O]


# ----------------------------------------------------------------------------
# Pure-JAX reference (PyTorch LSTM semantics)
# ----------------------------------------------------------------------------
def lstm_net_reference(x_bti, raw_params):
    x = jnp.transpose(x_bti, (1, 0, 2))  # (T, B, I)
    for (w_ih, w_hh, b_ih, b_hh) in raw_params["lstm"]:
        H = w_hh.shape[1]
        B = x.shape[1]
        w = jnp.concatenate([w_ih.T, w_hh.T], axis=0)   # (in+H, 4H)
        b = (b_ih + b_hh)[None, :]
        h0 = jnp.zeros((B, H), jnp.float32)
        c0 = jnp.zeros((B, H), jnp.float32)

        def step(carry, x_t, w=w, b=b, H=H):
            h, c = carry
            gates = jnp.concatenate([x_t, h], axis=-1) @ w + b
            i_g = jax.nn.sigmoid(gates[:, 0 * H:1 * H])
            f_g = jax.nn.sigmoid(gates[:, 1 * H:2 * H])
            g_g = jnp.tanh(gates[:, 2 * H:3 * H])
            o_g = jax.nn.sigmoid(gates[:, 3 * H:4 * H])
            c_n = f_g * c + i_g * g_g
            h_n = o_g * jnp.tanh(c_n)
            return (h_n, c_n), h_n

        (_, _), hs = jax.lax.scan(step, (h0, c0), x)
        x = hs
    fc_w, fc_b = raw_params["fc"]
    return x[-1] @ fc_w.T + fc_b


# ----------------------------------------------------------------------------
if __name__ == "__main__":
    B, T = 2, 8
    input_size, hidden_size, num_layers, output_size = 16, 32, 2, 4

    key = jax.random.PRNGKey(0)
    key, xkey = jax.random.split(key)
    x = jax.random.normal(xkey, (B, T, input_size), jnp.float32)

    raw = init_params(key, input_size, output_size, hidden_size, num_layers)
    packed = pack_params(raw, input_size, hidden_size, output_size, num_layers)

    out = jax.block_until_ready(lstm_net_forward(x, packed))
    ref = jax.block_until_ready(lstm_net_reference(x, raw))

    np.testing.assert_allclose(np.asarray(out), np.asarray(ref),
                               rtol=1e-4, atol=1e-4)
    assert out.shape == (B, output_size)
    print("KERNEL_OK")
</pallas_src>

<mosaic_0001>
module attributes {stable_mosaic.version = 11 : i64} {
  func.func @kernel(%arg0: i32, %arg1: memref<8x8x128xf32, #tpu.memory_space<vmem>>, %arg2: memref<128x512xf32, #tpu.memory_space<vmem>>, %arg3: memref<128x512xf32, #tpu.memory_space<vmem>>, %arg4: memref<128x512xf32, #tpu.memory_space<vmem>>, %arg5: memref<128x512xf32, #tpu.memory_space<vmem>>, %arg6: memref<1x512xf32, #tpu.memory_space<vmem>>, %arg7: memref<1x512xf32, #tpu.memory_space<vmem>>, %arg8: memref<128x128xf32, #tpu.memory_space<vmem>>, %arg9: memref<1x128xf32, #tpu.memory_space<vmem>>, %arg10: memref<8x128xf32, #tpu.memory_space<vmem>>, %arg11: memref<8x8x128xf32, #tpu.memory_space<vmem>>, %arg12: memref<8x8x512xf32, #tpu.memory_space<vmem>>, %arg13: memref<2x8x128xf32, #tpu.memory_space<vmem>>, %arg14: memref<2x8x128xf32, #tpu.memory_space<vmem>>) attributes {dimension_semantics = [#tpu.dimension_semantics<arbitrary>], iteration_bounds = array<i64: 1>, scalar_prefetch = 0 : i64, scratch_operands = 4 : i64, tpu.core_type = #tpu.core_type<tc>, window_params = [{transform_indices = @transform_0, window_bounds = array<i64: 8, 8, 128>}, {pipeline_mode = #tpu.pipeline_mode<synchronous>, transform_indices = @transform_1, window_bounds = array<i64: 128, 512>}, {pipeline_mode = #tpu.pipeline_mode<synchronous>, transform_indices = @transform_2, window_bounds = array<i64: 128, 512>}, {pipeline_mode = #tpu.pipeline_mode<synchronous>, transform_indices = @transform_3, window_bounds = array<i64: 128, 512>}, {pipeline_mode = #tpu.pipeline_mode<synchronous>, transform_indices = @transform_4, window_bounds = array<i64: 128, 512>}, {pipeline_mode = #tpu.pipeline_mode<synchronous>, transform_indices = @transform_5, window_bounds = array<i64: 1, 512>}, {pipeline_mode = #tpu.pipeline_mode<synchronous>, transform_indices = @transform_6, window_bounds = array<i64: 1, 512>}, {pipeline_mode = #tpu.pipeline_mode<synchronous>, transform_indices = @transform_7, window_bounds = array<i64: 128, 128>}, {pipeline_mode = #tpu.pipeline_mode<synchronous>, transform_indices = @transform_8, window_bounds = array<i64: 1, 128>}, {pipeline_mode = #tpu.pipeline_mode<synchronous>, transform_indices = @transform_9, window_bounds = array<i64: 8, 128>}]} {
    %c0_i32 = arith.constant 0 : i32
    %0 = arith.cmpi eq, %arg0, %c0_i32 : i32
    %1 = arith.extui %0 : i1 to i32
    %c0_i32_0 = arith.constant 0 : i32
    %2 = arith.cmpi ne, %1, %c0_i32_0 : i32
    scf.if %2 {
      %cst_340 = arith.constant 0.000000e+00 : f32
      %698 = vector.broadcast %cst_340 : f32 to vector<2x8x128xf32>
      %c0_341 = arith.constant 0 : index
      %c0_342 = arith.constant 0 : index
      %c0_343 = arith.constant 0 : index
      %699 = vector.load %arg13[%c0_341, %c0_342, %c0_343] : memref<2x8x128xf32, #tpu.memory_space<vmem>>, vector<2x8x128xf32>
      tpu.vector_store %arg13[%c0_341, %c0_342, %c0_343], %698 {strides = array<i32>} : memref<2x8x128xf32, #tpu.memory_space<vmem>>, vector<2x8x128xf32>,
      %cst_344 = arith.constant 0.000000e+00 : f32
      %700 = vector.broadcast %cst_344 : f32 to vector<2x8x128xf32>
      %c0_345 = arith.constant 0 : index
      %c0_346 = arith.constant 0 : index
      %c0_347 = arith.constant 0 : index
      %701 = vector.load %arg14[%c0_345, %c0_346, %c0_347] : memref<2x8x128xf32, #tpu.memory_space<vmem>>, vector<2x8x128xf32>
      tpu.vector_store %arg14[%c0_345, %c0_346, %c0_347], %700 {strides = array<i32>} : memref<2x8x128xf32, #tpu.memory_space<vmem>>, vector<2x8x128xf32>,
    } else {
    }
    %c0 = arith.constant 0 : index
    %c0_1 = arith.constant 0 : index
    %3 = vector.load %arg4[%c0, %c0_1] : memref<128x512xf32, #tpu.memory_space<vmem>>, vector<128x512xf32>
    %c0_2 = arith.constant 0 : index
    %c0_3 = arith.constant 0 : index
    %4 = vector.load %arg6[%c0_2, %c0_3] : memref<1x512xf32, #tpu.memory_space<vmem>>, vector<1x512xf32>
    %c0_4 = arith.constant 0 : index
    %c0_5 = arith.constant 0 : index
    %c0_6 = arith.constant 0 : index
    %5 = vector.load %arg1[%c0_4, %c0_5, %c0_6] : memref<8x8x128xf32, #tpu.memory_space<vmem>>, vector<8x8x128xf32>
    %6 = vector.shape_cast %5 : vector<8x8x128xf32> to vector<64x128xf32>
    %c0_7 = arith.constant 0 : index
    %c0_8 = arith.constant 0 : index
    %7 = vector.load %arg2[%c0_7, %c0_8] : memref<128x512xf32, #tpu.memory_space<vmem>>, vector<128x512xf32>
    %cst = arith.constant dense<0.000000e+00> : vector<64x512xf32>
    %8 = tpu.matmul %6, %7, %cst {dimension_numbers = #tpu.dot_dimension_numbers<[1], [0], [0], [1], [0, 0, 1, 1], [], []>} : vector<64x128xf32>, vector<128x512xf32>, vector<64x512xf32> -> vector<64x512xf32>
    %9 = vector.broadcast %4 : vector<1x512xf32> to vector<64x512xf32>
    %10 = arith.addf %8, %9 : vector<64x512xf32>
    %11 = vector.shape_cast %10 : vector<64x512xf32> to vector<8x8x512xf32>
    %c0_9 = arith.constant 0 : index
    %c0_10 = arith.constant 0 : index
    %c0_11 = arith.constant 0 : index
    %12 = vector.load %arg12[%c0_9, %c0_10, %c0_11] : memref<8x8x512xf32, #tpu.memory_space<vmem>>, vector<8x8x512xf32>
    tpu.vector_store %arg12[%c0_9, %c0_10, %c0_11], %11 {strides = array<i32>} : memref<8x8x512xf32, #tpu.memory_space<vmem>>, vector<8x8x512xf32>,
    %c0_i32_12 = arith.constant 0 : i32
    %c0_13 = arith.constant 0 : index
    %c0_14 = arith.constant 0 : index
    %c0_15 = arith.constant 0 : index
    %13 = vector.load %arg13[%c0_13, %c0_14, %c0_15] : memref<2x8x128xf32, #tpu.memory_space<vmem>>, vector<1x8x128xf32>
    %14 = vector.shape_cast %13 : vector<1x8x128xf32> to vector<8x128xf32>
    %c0_16 = arith.constant 0 : index
    %c0_17 = arith.constant 0 : index
    %c0_18 = arith.constant 0 : index
    %15 = vector.load %arg14[%c0_16, %c0_17, %c0_18] : memref<2x8x128xf32, #tpu.memory_space<vmem>>, vector<1x8x128xf32>
    %16 = vector.shape_cast %15 : vector<1x8x128xf32> to vector<8x128xf32>
    %17 = arith.index_cast %c0_i32_12 : i32 to index
    %c0_19 = arith.constant 0 : index
    %c0_20 = arith.constant 0 : index
    %18 = vector.load %arg12[%17, %c0_19, %c0_20] : memref<8x8x512xf32, #tpu.memory_space<vmem>>, vector<1x8x512xf32>
    %19 = vector.shape_cast %18 : vector<1x8x512xf32> to vector<8x512xf32>
    %cst_21 = arith.constant dense<0.000000e+00> : vector<8x512xf32>
    %20 = tpu.matmul %14, %3, %cst_21 {dimension_numbers = #tpu.dot_dimension_numbers<[1], [0], [0], [1], [0, 0, 1, 1], [], []>} : vector<8x128xf32>, vector<128x512xf32>, vector<8x512xf32> -> vector<8x512xf32>
    %21 = arith.addf %19, %20 : vector<8x512xf32>
    %22 = vector.extract_strided_slice %21 {offsets = [0, 0], sizes = [8, 128], strides = [1, 1]} : vector<8x512xf32> to vector<8x128xf32>
    %23 = arith.negf %22 : vector<8x128xf32>
    %24 = math.exp %23 : vector<8x128xf32>
    %cst_22 = arith.constant 1.000000e+00 : f32
    %25 = vector.broadcast %cst_22 : f32 to vector<8x128xf32>
    %26 = arith.addf %25, %24 : vector<8x128xf32>
    %27 = arith.divf %25, %26 : vector<8x128xf32>
    %28 = vector.extract_strided_slice %21 {offsets = [0, 128], sizes = [8, 128], strides = [1, 1]} : vector<8x512xf32> to vector<8x128xf32>
    %29 = arith.negf %28 : vector<8x128xf32>
    %30 = math.exp %29 : vector<8x128xf32>
    %cst_23 = arith.constant 1.000000e+00 : f32
    %31 = vector.broadcast %cst_23 : f32 to vector<8x128xf32>
    %32 = arith.addf %31, %30 : vector<8x128xf32>
    %33 = arith.divf %31, %32 : vector<8x128xf32>
    %34 = vector.extract_strided_slice %21 {offsets = [0, 256], sizes = [8, 128], strides = [1, 1]} : vector<8x512xf32> to vector<8x128xf32>
    %35 = math.tanh %34 : vector<8x128xf32>
    %36 = vector.extract_strided_slice %21 {offsets = [0, 384], sizes = [8, 128], strides = [1, 1]} : vector<8x512xf32> to vector<8x128xf32>
    %37 = arith.negf %36 : vector<8x128xf32>
    %38 = math.exp %37 : vector<8x128xf32>
    %cst_24 = arith.constant 1.000000e+00 : f32
    %39 = vector.broadcast %cst_24 : f32 to vector<8x128xf32>
    %40 = arith.addf %39, %38 : vector<8x128xf32>
    %41 = arith.divf %39, %40 : vector<8x128xf32>
    %42 = arith.mulf %33, %16 : vector<8x128xf32>
    %43 = arith.mulf %27, %35 : vector<8x128xf32>
    %44 = arith.addf %42, %43 : vector<8x128xf32>
    %45 = math.tanh %44 : vector<8x128xf32>
    %46 = arith.mulf %41, %45 : vector<8x128xf32>
    %c0_25 = arith.constant 0 : index
    %c0_26 = arith.constant 0 : index
    %c0_27 = arith.constant 0 : index
    %47 = vector.load %arg14[%c0_25, %c0_26, %c0_27] : memref<2x8x128xf32, #tpu.memory_space<vmem>>, vector<1x8x128xf32>
    %48 = vector.shape_cast %47 : vector<1x8x128xf32> to vector<8x128xf32>
    %49 = vector.shape_cast %44 : vector<8x128xf32> to vector<1x8x128xf32>
    tpu.vector_store %arg14[%c0_25, %c0_26, %c0_27], %49 {strides = array<i32>} : memref<2x8x128xf32, #tpu.memory_space<vmem>>, vector<1x8x128xf32>,
    %c0_28 = arith.constant 0 : index
    %c0_29 = arith.constant 0 : index
    %c0_30 = arith.constant 0 : index
    %50 = vector.load %arg13[%c0_28, %c0_29, %c0_30] : memref<2x8x128xf32, #tpu.memory_space<vmem>>, vector<1x8x128xf32>
    %51 = vector.shape_cast %50 : vector<1x8x128xf32> to vector<8x128xf32>
    %52 = vector.shape_cast %46 : vector<8x128xf32> to vector<1x8x128xf32>
    tpu.vector_store %arg13[%c0_28, %c0_29, %c0_30], %52 {strides = array<i32>} : memref<2x8x128xf32, #tpu.memory_space<vmem>>, vector<1x8x128xf32>,
    %53 = arith.index_cast %c0_i32_12 : i32 to index
    %c0_31 = arith.constant 0 : index
    %c0_32 = arith.constant 0 : index
    %54 = vector.load %arg11[%53, %c0_31, %c0_32] : memref<8x8x128xf32, #tpu.memory_space<vmem>>, vector<1x8x128xf32>
    %55 = vector.shape_cast %54 : vector<1x8x128xf32> to vector<8x128xf32>
    %56 = vector.shape_cast %46 : vector<8x128xf32> to vector<1x8x128xf32>
    tpu.vector_store %arg11[%53, %c0_31, %c0_32], %56 {strides = array<i32>} : memref<8x8x128xf32, #tpu.memory_space<vmem>>, vector<1x8x128xf32>,
    %c1_i32 = arith.constant 1 : i32
    %c0_33 = arith.constant 0 : index
    %c0_34 = arith.constant 0 : index
    %c0_35 = arith.constant 0 : index
    %57 = vector.load %arg13[%c0_33, %c0_34, %c0_35] : memref<2x8x128xf32, #tpu.memory_space<vmem>>, vector<1x8x128xf32>
    %58 = vector.shape_cast %57 : vector<1x8x128xf32> to vector<8x128xf32>
    %c0_36 = arith.constant 0 : index
    %c0_37 = arith.constant 0 : index
    %c0_38 = arith.constant 0 : index
    %59 = vector.load %arg14[%c0_36, %c0_37, %c0_38] : memref<2x8x128xf32, #tpu.memory_space<vmem>>, vector<1x8x128xf32>
    %60 = vector.shape_cast %59 : vector<1x8x128xf32> to vector<8x128xf32>
    %61 = arith.index_cast %c1_i32 : i32 to index
    %c0_39 = arith.constant 0 : index
    %c0_40 = arith.constant 0 : index
    %62 = vector.load %arg12[%61, %c0_39, %c0_40] : memref<8x8x512xf32, #tpu.memory_space<vmem>>, vector<1x8x512xf32>
    %63 = vector.shape_cast %62 : vector<1x8x512xf32> to vector<8x512xf32>
    %cst_41 = arith.constant dense<0.000000e+00> : vector<8x512xf32>
    %64 = tpu.matmul %58, %3, %cst_41 {dimension_numbers = #tpu.dot_dimension_numbers<[1], [0], [0], [1], [0, 0, 1, 1], [], []>} : vector<8x128xf32>, vector<128x512xf32>, vector<8x512xf32> -> vector<8x512xf32>
    %65 = arith.addf %63, %64 : vector<8x512xf32>
    %66 = vector.extract_strided_slice %65 {offsets = [0, 0], sizes = [8, 128], strides = [1, 1]} : vector<8x512xf32> to vector<8x128xf32>
    %67 = arith.negf %66 : vector<8x128xf32>
    %68 = math.exp %67 : vector<8x128xf32>
    %cst_42 = arith.constant 1.000000e+00 : f32
    %69 = vector.broadcast %cst_42 : f32 to vector<8x128xf32>
    %70 = arith.addf %69, %68 : vector<8x128xf32>
    %71 = arith.divf %69, %70 : vector<8x128xf32>
    %72 = vector.extract_strided_slice %65 {offsets = [0, 128], sizes = [8, 128], strides = [1, 1]} : vector<8x512xf32> to vector<8x128xf32>
    %73 = arith.negf %72 : vector<8x128xf32>
    %74 = math.exp %73 : vector<8x128xf32>
    %cst_43 = arith.constant 1.000000e+00 : f32
    %75 = vector.broadcast %cst_43 : f32 to vector<8x128xf32>
    %76 = arith.addf %75, %74 : vector<8x128xf32>
    %77 = arith.divf %75, %76 : vector<8x128xf32>
    %78 = vector.extract_strided_slice %65 {offsets = [0, 256], sizes = [8, 128], strides = [1, 1]} : vector<8x512xf32> to vector<8x128xf32>
    %79 = math.tanh %78 : vector<8x128xf32>
    %80 = vector.extract_strided_slice %65 {offsets = [0, 384], sizes = [8, 128], strides = [1, 1]} : vector<8x512xf32> to vector<8x128xf32>
    %81 = arith.negf %80 : vector<8x128xf32>
    %82 = math.exp %81 : vector<8x128xf32>
    %cst_44 = arith.constant 1.000000e+00 : f32
    %83 = vector.broadcast %cst_44 : f32 to vector<8x128xf32>
    %84 = arith.addf %83, %82 : vector<8x128xf32>
    %85 = arith.divf %83, %84 : vector<8x128xf32>
    %86 = arith.mulf %77, %60 : vector<8x128xf32>
    %87 = arith.mulf %71, %79 : vector<8x128xf32>
    %88 = arith.addf %86, %87 : vector<8x128xf32>
    %89 = math.tanh %88 : vector<8x128xf32>
    %90 = arith.mulf %85, %89 : vector<8x128xf32>
    %c0_45 = arith.constant 0 : index
    %c0_46 = arith.constant 0 : index
    %c0_47 = arith.constant 0 : index
    %91 = vector.load %arg14[%c0_45, %c0_46, %c0_47] : memref<2x8x128xf32, #tpu.memory_space<vmem>>, vector<1x8x128xf32>
    %92 = vector.shape_cast %91 : vector<1x8x128xf32> to vector<8x128xf32>
    %93 = vector.shape_cast %88 : vector<8x128xf32> to vector<1x8x128xf32>
    tpu.vector_store %arg14[%c0_45, %c0_46, %c0_47], %93 {strides = array<i32>} : memref<2x8x128xf32, #tpu.memory_space<vmem>>, vector<1x8x128xf32>,
    %c0_48 = arith.constant 0 : index
    %c0_49 = arith.constant 0 : index
    %c0_50 = arith.constant 0 : index
    %94 = vector.load %arg13[%c0_48, %c0_49, %c0_50] : memref<2x8x128xf32, #tpu.memory_space<vmem>>, vector<1x8x128xf32>
    %95 = vector.shape_cast %94 : vector<1x8x128xf32> to vector<8x128xf32>
    %96 = vector.shape_cast %90 : vector<8x128xf32> to vector<1x8x128xf32>
    tpu.vector_store %arg13[%c0_48, %c0_49, %c0_50], %96 {strides = array<i32>} : memref<2x8x128xf32, #tpu.memory_space<vmem>>, vector<1x8x128xf32>,
    %97 = arith.index_cast %c1_i32 : i32 to index
    %c0_51 = arith.constant 0 : index
    %c0_52 = arith.constant 0 : index
    %98 = vector.load %arg11[%97, %c0_51, %c0_52] : memref<8x8x128xf32, #tpu.memory_space<vmem>>, vector<1x8x128xf32>
    %99 = vector.shape_cast %98 : vector<1x8x128xf32> to vector<8x128xf32>
    %100 = vector.shape_cast %90 : vector<8x128xf32> to vector<1x8x128xf32>
    tpu.vector_store %arg11[%97, %c0_51, %c0_52], %100 {strides = array<i32>} : memref<8x8x128xf32, #tpu.memory_space<vmem>>, vector<1x8x128xf32>,
    %c2_i32 = arith.constant 2 : i32
    %c0_53 = arith.constant 0 : index
    %c0_54 = arith.constant 0 : index
    %c0_55 = arith.constant 0 : index
    %101 = vector.load %arg13[%c0_53, %c0_54, %c0_55] : memref<2x8x128xf32, #tpu.memory_space<vmem>>, vector<1x8x128xf32>
    %102 = vector.shape_cast %101 : vector<1x8x128xf32> to vector<8x128xf32>
    %c0_56 = arith.constant 0 : index
    %c0_57 = arith.constant 0 : index
    %c0_58 = arith.constant 0 : index
    %103 = vector.load %arg14[%c0_56, %c0_57, %c0_58] : memref<2x8x128xf32, #tpu.memory_space<vmem>>, vector<1x8x128xf32>
    %104 = vector.shape_cast %103 : vector<1x8x128xf32> to vector<8x128xf32>
    %105 = arith.index_cast %c2_i32 : i32 to index
    %c0_59 = arith.constant 0 : index
    %c0_60 = arith.constant 0 : index
    %106 = vector.load %arg12[%105, %c0_59, %c0_60] : memref<8x8x512xf32, #tpu.memory_space<vmem>>, vector<1x8x512xf32>
    %107 = vector.shape_cast %106 : vector<1x8x512xf32> to vector<8x512xf32>
    %cst_61 = arith.constant dense<0.000000e+00> : vector<8x512xf32>
    %108 = tpu.matmul %102, %3, %cst_61 {dimension_numbers = #tpu.dot_dimension_numbers<[1], [0], [0], [1], [0, 0, 1, 1], [], []>} : vector<8x128xf32>, vector<128x512xf32>, vector<8x512xf32> -> vector<8x512xf32>
    %109 = arith.addf %107, %108 : vector<8x512xf32>
    %110 = vector.extract_strided_slice %109 {offsets = [0, 0], sizes = [8, 128], strides = [1, 1]} : vector<8x512xf32> to vector<8x128xf32>
    %111 = arith.negf %110 : vector<8x128xf32>
    %112 = math.exp %111 : vector<8x128xf32>
    %cst_62 = arith.constant 1.000000e+00 : f32
    %113 = vector.broadcast %cst_62 : f32 to vector<8x128xf32>
    %114 = arith.addf %113, %112 : vector<8x128xf32>
    %115 = arith.divf %113, %114 : vector<8x128xf32>
    %116 = vector.extract_strided_slice %109 {offsets = [0, 128], sizes = [8, 128], strides = [1, 1]} : vector<8x512xf32> to vector<8x128xf32>
    %117 = arith.negf %116 : vector<8x128xf32>
    %118 = math.exp %117 : vector<8x128xf32>
    %cst_63 = arith.constant 1.000000e+00 : f32
    %119 = vector.broadcast %cst_63 : f32 to vector<8x128xf32>
    %120 = arith.addf %119, %118 : vector<8x128xf32>
    %121 = arith.divf %119, %120 : vector<8x128xf32>
    %122 = vector.extract_strided_slice %109 {offsets = [0, 256], sizes = [8, 128], strides = [1, 1]} : vector<8x512xf32> to vector<8x128xf32>
    %123 = math.tanh %122 : vector<8x128xf32>
    %124 = vector.extract_strided_slice %109 {offsets = [0, 384], sizes = [8, 128], strides = [1, 1]} : vector<8x512xf32> to vector<8x128xf32>
    %125 = arith.negf %124 : vector<8x128xf32>
    %126 = math.exp %125 : vector<8x128xf32>
    %cst_64 = arith.constant 1.000000e+00 : f32
    %127 = vector.broadcast %cst_64 : f32 to vector<8x128xf32>
    %128 = arith.addf %127, %126 : vector<8x128xf32>
    %129 = arith.divf %127, %128 : vector<8x128xf32>
    %130 = arith.mulf %121, %104 : vector<8x128xf32>
    %131 = arith.mulf %115, %123 : vector<8x128xf32>
    %132 = arith.addf %130, %131 : vector<8x128xf32>
    %133 = math.tanh %132 : vector<8x128xf32>
    %134 = arith.mulf %129, %133 : vector<8x128xf32>
    %c0_65 = arith.constant 0 : index
    %c0_66 = arith.constant 0 : index
    %c0_67 = arith.constant 0 : index
    %135 = vector.load %arg14[%c0_65, %c0_66, %c0_67] : memref<2x8x128xf32, #tpu.memory_space<vmem>>, vector<1x8x128xf32>
    %136 = vector.shape_cast %135 : vector<1x8x128xf32> to vector<8x128xf32>
    %137 = vector.shape_cast %132 : vector<8x128xf32> to vector<1x8x128xf32>
    tpu.vector_store %arg14[%c0_65, %c0_66, %c0_67], %137 {strides = array<i32>} : memref<2x8x128xf32, #tpu.memory_space<vmem>>, vector<1x8x128xf32>,
    %c0_68 = arith.constant 0 : index
    %c0_69 = arith.constant 0 : index
    %c0_70 = arith.constant 0 : index
    %138 = vector.load %arg13[%c0_68, %c0_69, %c0_70] : memref<2x8x128xf32, #tpu.memory_space<vmem>>, vector<1x8x128xf32>
    %139 = vector.shape_cast %138 : vector<1x8x128xf32> to vector<8x128xf32>
    %140 = vector.shape_cast %134 : vector<8x128xf32> to vector<1x8x128xf32>
    tpu.vector_store %arg13[%c0_68, %c0_69, %c0_70], %140 {strides = array<i32>} : memref<2x8x128xf32, #tpu.memory_space<vmem>>, vector<1x8x128xf32>,
    %141 = arith.index_cast %c2_i32 : i32 to index
    %c0_71 = arith.constant 0 : index
    %c0_72 = arith.constant 0 : index
    %142 = vector.load %arg11[%141, %c0_71, %c0_72] : memref<8x8x128xf32, #tpu.memory_space<vmem>>, vector<1x8x128xf32>
    %143 = vector.shape_cast %142 : vector<1x8x128xf32> to vector<8x128xf32>
    %144 = vector.shape_cast %134 : vector<8x128xf32> to vector<1x8x128xf32>
    tpu.vector_store %arg11[%141, %c0_71, %c0_72], %144 {strides = array<i32>} : memref<8x8x128xf32, #tpu.memory_space<vmem>>, vector<1x8x128xf32>,
    %c3_i32 = arith.constant 3 : i32
    %c0_73 = arith.constant 0 : index
    %c0_74 = arith.constant 0 : index
    %c0_75 = arith.constant 0 : index
    %145 = vector.load %arg13[%c0_73, %c0_74, %c0_75] : memref<2x8x128xf32, #tpu.memory_space<vmem>>, vector<1x8x128xf32>
    %146 = vector.shape_cast %145 : vector<1x8x128xf32> to vector<8x128xf32>
    %c0_76 = arith.constant 0 : index
    %c0_77 = arith.constant 0 : index
    %c0_78 = arith.constant 0 : index
    %147 = vector.load %arg14[%c0_76, %c0_77, %c0_78] : memref<2x8x128xf32, #tpu.memory_space<vmem>>, vector<1x8x128xf32>
    %148 = vector.shape_cast %147 : vector<1x8x128xf32> to vector<8x128xf32>
    %149 = arith.index_cast %c3_i32 : i32 to index
    %c0_79 = arith.constant 0 : index
    %c0_80 = arith.constant 0 : index
    %150 = vector.load %arg12[%149, %c0_79, %c0_80] : memref<8x8x512xf32, #tpu.memory_space<vmem>>, vector<1x8x512xf32>
    %151 = vector.shape_cast %150 : vector<1x8x512xf32> to vector<8x512xf32>
    %cst_81 = arith.constant dense<0.000000e+00> : vector<8x512xf32>
    %152 = tpu.matmul %146, %3, %cst_81 {dimension_numbers = #tpu.dot_dimension_numbers<[1], [0], [0], [1], [0, 0, 1, 1], [], []>} : vector<8x128xf32>, vector<128x512xf32>, vector<8x512xf32> -> vector<8x512xf32>
    %153 = arith.addf %151, %152 : vector<8x512xf32>
    %154 = vector.extract_strided_slice %153 {offsets = [0, 0], sizes = [8, 128], strides = [1, 1]} : vector<8x512xf32> to vector<8x128xf32>
    %155 = arith.negf %154 : vector<8x128xf32>
    %156 = math.exp %155 : vector<8x128xf32>
    %cst_82 = arith.constant 1.000000e+00 : f32
    %157 = vector.broadcast %cst_82 : f32 to vector<8x128xf32>
    %158 = arith.addf %157, %156 : vector<8x128xf32>
    %159 = arith.divf %157, %158 : vector<8x128xf32>
    %160 = vector.extract_strided_slice %153 {offsets = [0, 128], sizes = [8, 128], strides = [1, 1]} : vector<8x512xf32> to vector<8x128xf32>
    %161 = arith.negf %160 : vector<8x128xf32>
    %162 = math.exp %161 : vector<8x128xf32>
    %cst_83 = arith.constant 1.000000e+00 : f32
    %163 = vector.broadcast %cst_83 : f32 to vector<8x128xf32>
    %164 = arith.addf %163, %162 : vector<8x128xf32>
    %165 = arith.divf %163, %164 : vector<8x128xf32>
    %166 = vector.extract_strided_slice %153 {offsets = [0, 256], sizes = [8, 128], strides = [1, 1]} : vector<8x512xf32> to vector<8x128xf32>
    %167 = math.tanh %166 : vector<8x128xf32>
    %168 = vector.extract_strided_slice %153 {offsets = [0, 384], sizes = [8, 128], strides = [1, 1]} : vector<8x512xf32> to vector<8x128xf32>
    %169 = arith.negf %168 : vector<8x128xf32>
    %170 = math.exp %169 : vector<8x128xf32>
    %cst_84 = arith.constant 1.000000e+00 : f32
    %171 = vector.broadcast %cst_84 : f32 to vector<8x128xf32>
    %172 = arith.addf %171, %170 : vector<8x128xf32>
    %173 = arith.divf %171, %172 : vector<8x128xf32>
    %174 = arith.mulf %165, %148 : vector<8x128xf32>
    %175 = arith.mulf %159, %167 : vector<8x128xf32>
    %176 = arith.addf %174, %175 : vector<8x128xf32>
    %177 = math.tanh %176 : vector<8x128xf32>
    %178 = arith.mulf %173, %177 : vector<8x128xf32>
    %c0_85 = arith.constant 0 : index
    %c0_86 = arith.constant 0 : index
    %c0_87 = arith.constant 0 : index
    %179 = vector.load %arg14[%c0_85, %c0_86, %c0_87] : memref<2x8x128xf32, #tpu.memory_space<vmem>>, vector<1x8x128xf32>
    %180 = vector.shape_cast %179 : vector<1x8x128xf32> to vector<8x128xf32>
    %181 = vector.shape_cast %176 : vector<8x128xf32> to vector<1x8x128xf32>
    tpu.vector_store %arg14[%c0_85, %c0_86, %c0_87], %181 {strides = array<i32>} : memref<2x8x128xf32, #tpu.memory_space<vmem>>, vector<1x8x128xf32>,
    %c0_88 = arith.constant 0 : index
    %c0_89 = arith.constant 0 : index
    %c0_90 = arith.constant 0 : index
    %182 = vector.load %arg13[%c0_88, %c0_89, %c0_90] : memref<2x8x128xf32, #tpu.memory_space<vmem>>, vector<1x8x128xf32>
    %183 = vector.shape_cast %182 : vector<1x8x128xf32> to vector<8x128xf32>
    %184 = vector.shape_cast %178 : vector<8x128xf32> to vector<1x8x128xf32>
    tpu.vector_store %arg13[%c0_88, %c0_89, %c0_90], %184 {strides = array<i32>} : memref<2x8x128xf32, #tpu.memory_space<vmem>>, vector<1x8x128xf32>,
    %185 = arith.index_cast %c3_i32 : i32 to index
    %c0_91 = arith.constant 0 : index
    %c0_92 = arith.constant 0 : index
    %186 = vector.load %arg11[%185, %c0_91, %c0_92] : memref<8x8x128xf32, #tpu.memory_space<vmem>>, vector<1x8x128xf32>
    %187 = vector.shape_cast %186 : vector<1x8x128xf32> to vector<8x128xf32>
    %188 = vector.shape_cast %178 : vector<8x128xf32> to vector<1x8x128xf32>
    tpu.vector_store %arg11[%185, %c0_91, %c0_92], %188 {strides = array<i32>} : memref<8x8x128xf32, #tpu.memory_space<vmem>>, vector<1x8x128xf32>,
    %c4_i32 = arith.constant 4 : i32
    %c0_93 = arith.constant 0 : index
    %c0_94 = arith.constant 0 : index
    %c0_95 = arith.constant 0 : index
    %189 = vector.load %arg13[%c0_93, %c0_94, %c0_95] : memref<2x8x128xf32, #tpu.memory_space<vmem>>, vector<1x8x128xf32>
    %190 = vector.shape_cast %189 : vector<1x8x128xf32> to vector<8x128xf32>
    %c0_96 = arith.constant 0 : index
    %c0_97 = arith.constant 0 : index
    %c0_98 = arith.constant 0 : index
    %191 = vector.load %arg14[%c0_96, %c0_97, %c0_98] : memref<2x8x128xf32, #tpu.memory_space<vmem>>, vector<1x8x128xf32>
    %192 = vector.shape_cast %191 : vector<1x8x128xf32> to vector<8x128xf32>
    %193 = arith.index_cast %c4_i32 : i32 to index
    %c0_99 = arith.constant 0 : index
    %c0_100 = arith.constant 0 : index
    %194 = vector.load %arg12[%193, %c0_99, %c0_100] : memref<8x8x512xf32, #tpu.memory_space<vmem>>, vector<1x8x512xf32>
    %195 = vector.shape_cast %194 : vector<1x8x512xf32> to vector<8x512xf32>
    %cst_101 = arith.constant dense<0.000000e+00> : vector<8x512xf32>
    %196 = tpu.matmul %190, %3, %cst_101 {dimension_numbers = #tpu.dot_dimension_numbers<[1], [0], [0], [1], [0, 0, 1, 1], [], []>} : vector<8x128xf32>, vector<128x512xf32>, vector<8x512xf32> -> vector<8x512xf32>
    %197 = arith.addf %195, %196 : vector<8x512xf32>
    %198 = vector.extract_strided_slice %197 {offsets = [0, 0], sizes = [8, 128], strides = [1, 1]} : vector<8x512xf32> to vector<8x128xf32>
    %199 = arith.negf %198 : vector<8x128xf32>
    %200 = math.exp %199 : vector<8x128xf32>
    %cst_102 = arith.constant 1.000000e+00 : f32
    %201 = vector.broadcast %cst_102 : f32 to vector<8x128xf32>
    %202 = arith.addf %201, %200 : vector<8x128xf32>
    %203 = arith.divf %201, %202 : vector<8x128xf32>
    %204 = vector.extract_strided_slice %197 {offsets = [0, 128], sizes = [8, 128], strides = [1, 1]} : vector<8x512xf32> to vector<8x128xf32>
    %205 = arith.negf %204 : vector<8x128xf32>
    %206 = math.exp %205 : vector<8x128xf32>
    %cst_103 = arith.constant 1.000000e+00 : f32
    %207 = vector.broadcast %cst_103 : f32 to vector<8x128xf32>
    %208 = arith.addf %207, %206 : vector<8x128xf32>
    %209 = arith.divf %207, %208 : vector<8x128xf32>
    %210 = vector.extract_strided_slice %197 {offsets = [0, 256], sizes = [8, 128], strides = [1, 1]} : vector<8x512xf32> to vector<8x128xf32>
    %211 = math.tanh %210 : vector<8x128xf32>
    %212 = vector.extract_strided_slice %197 {offsets = [0, 384], sizes = [8, 128], strides = [1, 1]} : vector<8x512xf32> to vector<8x128xf32>
    %213 = arith.negf %212 : vector<8x128xf32>
    %214 = math.exp %213 : vector<8x128xf32>
    %cst_104 = arith.constant 1.000000e+00 : f32
    %215 = vector.broadcast %cst_104 : f32 to vector<8x128xf32>
    %216 = arith.addf %215, %214 : vector<8x128xf32>
    %217 = arith.divf %215, %216 : vector<8x128xf32>
    %218 = arith.mulf %209, %192 : vector<8x128xf32>
    %219 = arith.mulf %203, %211 : vector<8x128xf32>
    %220 = arith.addf %218, %219 : vector<8x128xf32>
    %221 = math.tanh %220 : vector<8x128xf32>
    %222 = arith.mulf %217, %221 : vector<8x128xf32>
    %c0_105 = arith.constant 0 : index
    %c0_106 = arith.constant 0 : index
    %c0_107 = arith.constant 0 : index
    %223 = vector.load %arg14[%c0_105, %c0_106, %c0_107] : memref<2x8x128xf32, #tpu.memory_space<vmem>>, vector<1x8x128xf32>
    %224 = vector.shape_cast %223 : vector<1x8x128xf32> to vector<8x128xf32>
    %225 = vector.shape_cast %220 : vector<8x128xf32> to vector<1x8x128xf32>
    tpu.vector_store %arg14[%c0_105, %c0_106, %c0_107], %225 {strides = array<i32>} : memref<2x8x128xf32, #tpu.memory_space<vmem>>, vector<1x8x128xf32>,
    %c0_108 = arith.constant 0 : index
    %c0_109 = arith.constant 0 : index
    %c0_110 = arith.constant 0 : index
    %226 = vector.load %arg13[%c0_108, %c0_109, %c0_110] : memref<2x8x128xf32, #tpu.memory_space<vmem>>, vector<1x8x128xf32>
    %227 = vector.shape_cast %226 : vector<1x8x128xf32> to vector<8x128xf32>
    %228 = vector.shape_cast %222 : vector<8x128xf32> to vector<1x8x128xf32>
    tpu.vector_store %arg13[%c0_108, %c0_109, %c0_110], %228 {strides = array<i32>} : memref<2x8x128xf32, #tpu.memory_space<vmem>>, vector<1x8x128xf32>,
    %229 = arith.index_cast %c4_i32 : i32 to index
    %c0_111 = arith.constant 0 : index
    %c0_112 = arith.constant 0 : index
    %230 = vector.load %arg11[%229, %c0_111, %c0_112] : memref<8x8x128xf32, #tpu.memory_space<vmem>>, vector<1x8x128xf32>
    %231 = vector.shape_cast %230 : vector<1x8x128xf32> to vector<8x128xf32>
    %232 = vector.shape_cast %222 : vector<8x128xf32> to vector<1x8x128xf32>
    tpu.vector_store %arg11[%229, %c0_111, %c0_112], %232 {strides = array<i32>} : memref<8x8x128xf32, #tpu.memory_space<vmem>>, vector<1x8x128xf32>,
    %c5_i32 = arith.constant 5 : i32
    %c0_113 = arith.constant 0 : index
    %c0_114 = arith.constant 0 : index
    %c0_115 = arith.constant 0 : index
    %233 = vector.load %arg13[%c0_113, %c0_114, %c0_115] : memref<2x8x128xf32, #tpu.memory_space<vmem>>, vector<1x8x128xf32>
    %234 = vector.shape_cast %233 : vector<1x8x128xf32> to vector<8x128xf32>
    %c0_116 = arith.constant 0 : index
    %c0_117 = arith.constant 0 : index
    %c0_118 = arith.constant 0 : index
    %235 = vector.load %arg14[%c0_116, %c0_117, %c0_118] : memref<2x8x128xf32, #tpu.memory_space<vmem>>, vector<1x8x128xf32>
    %236 = vector.shape_cast %235 : vector<1x8x128xf32> to vector<8x128xf32>
    %237 = arith.index_cast %c5_i32 : i32 to index
    %c0_119 = arith.constant 0 : index
    %c0_120 = arith.constant 0 : index
    %238 = vector.load %arg12[%237, %c0_119, %c0_120] : memref<8x8x512xf32, #tpu.memory_space<vmem>>, vector<1x8x512xf32>
    %239 = vector.shape_cast %238 : vector<1x8x512xf32> to vector<8x512xf32>
    %cst_121 = arith.constant dense<0.000000e+00> : vector<8x512xf32>
    %240 = tpu.matmul %234, %3, %cst_121 {dimension_numbers = #tpu.dot_dimension_numbers<[1], [0], [0], [1], [0, 0, 1, 1], [], []>} : vector<8x128xf32>, vector<128x512xf32>, vector<8x512xf32> -> vector<8x512xf32>
    %241 = arith.addf %239, %240 : vector<8x512xf32>
    %242 = vector.extract_strided_slice %241 {offsets = [0, 0], sizes = [8, 128], strides = [1, 1]} : vector<8x512xf32> to vector<8x128xf32>
    %243 = arith.negf %242 : vector<8x128xf32>
    %244 = math.exp %243 : vector<8x128xf32>
    %cst_122 = arith.constant 1.000000e+00 : f32
    %245 = vector.broadcast %cst_122 : f32 to vector<8x128xf32>
    %246 = arith.addf %245, %244 : vector<8x128xf32>
    %247 = arith.divf %245, %246 : vector<8x128xf32>
    %248 = vector.extract_strided_slice %241 {offsets = [0, 128], sizes = [8, 128], strides = [1, 1]} : vector<8x512xf32> to vector<8x128xf32>
    %249 = arith.negf %248 : vector<8x128xf32>
    %250 = math.exp %249 : vector<8x128xf32>
    %cst_123 = arith.constant 1.000000e+00 : f32
    %251 = vector.broadcast %cst_123 : f32 to vector<8x128xf32>
    %252 = arith.addf %251, %250 : vector<8x128xf32>
    %253 = arith.divf %251, %252 : vector<8x128xf32>
    %254 = vector.extract_strided_slice %241 {offsets = [0, 256], sizes = [8, 128], strides = [1, 1]} : vector<8x512xf32> to vector<8x128xf32>
    %255 = math.tanh %254 : vector<8x128xf32>
    %256 = vector.extract_strided_slice %241 {offsets = [0, 384], sizes = [8, 128], strides = [1, 1]} : vector<8x512xf32> to vector<8x128xf32>
    %257 = arith.negf %256 : vector<8x128xf32>
    %258 = math.exp %257 : vector<8x128xf32>
    %cst_124 = arith.constant 1.000000e+00 : f32
    %259 = vector.broadcast %cst_124 : f32 to vector<8x128xf32>
    %260 = arith.addf %259, %258 : vector<8x128xf32>
    %261 = arith.divf %259, %260 : vector<8x128xf32>
    %262 = arith.mulf %253, %236 : vector<8x128xf32>
    %263 = arith.mulf %247, %255 : vector<8x128xf32>
    %264 = arith.addf %262, %263 : vector<8x128xf32>
    %265 = math.tanh %264 : vector<8x128xf32>
    %266 = arith.mulf %261, %265 : vector<8x128xf32>
    %c0_125 = arith.constant 0 : index
    %c0_126 = arith.constant 0 : index
    %c0_127 = arith.constant 0 : index
    %267 = vector.load %arg14[%c0_125, %c0_126, %c0_127] : memref<2x8x128xf32, #tpu.memory_space<vmem>>, vector<1x8x128xf32>
    %268 = vector.shape_cast %267 : vector<1x8x128xf32> to vector<8x128xf32>
    %269 = vector.shape_cast %264 : vector<8x128xf32> to vector<1x8x128xf32>
    tpu.vector_store %arg14[%c0_125, %c0_126, %c0_127], %269 {strides = array<i32>} : memref<2x8x128xf32, #tpu.memory_space<vmem>>, vector<1x8x128xf32>,
    %c0_128 = arith.constant 0 : index
    %c0_129 = arith.constant 0 : index
    %c0_130 = arith.constant 0 : index
    %270 = vector.load %arg13[%c0_128, %c0_129, %c0_130] : memref<2x8x128xf32, #tpu.memory_space<vmem>>, vector<1x8x128xf32>
    %271 = vector.shape_cast %270 : vector<1x8x128xf32> to vector<8x128xf32>
    %272 = vector.shape_cast %266 : vector<8x128xf32> to vector<1x8x128xf32>
    tpu.vector_store %arg13[%c0_128, %c0_129, %c0_130], %272 {strides = array<i32>} : memref<2x8x128xf32, #tpu.memory_space<vmem>>, vector<1x8x128xf32>,
    %273 = arith.index_cast %c5_i32 : i32 to index
    %c0_131 = arith.constant 0 : index
    %c0_132 = arith.constant 0 : index
    %274 = vector.load %arg11[%273, %c0_131, %c0_132] : memref<8x8x128xf32, #tpu.memory_space<vmem>>, vector<1x8x128xf32>
    %275 = vector.shape_cast %274 : vector<1x8x128xf32> to vector<8x128xf32>
    %276 = vector.shape_cast %266 : vector<8x128xf32> to vector<1x8x128xf32>
    tpu.vector_store %arg11[%273, %c0_131, %c0_132], %276 {strides = array<i32>} : memref<8x8x128xf32, #tpu.memory_space<vmem>>, vector<1x8x128xf32>,
    %c6_i32 = arith.constant 6 : i32
    %c0_133 = arith.constant 0 : index
    %c0_134 = arith.constant 0 : index
    %c0_135 = arith.constant 0 : index
    %277 = vector.load %arg13[%c0_133, %c0_134, %c0_135] : memref<2x8x128xf32, #tpu.memory_space<vmem>>, vector<1x8x128xf32>
    %278 = vector.shape_cast %277 : vector<1x8x128xf32> to vector<8x128xf32>
    %c0_136 = arith.constant 0 : index
    %c0_137 = arith.constant 0 : index
    %c0_138 = arith.constant 0 : index
    %279 = vector.load %arg14[%c0_136, %c0_137, %c0_138] : memref<2x8x128xf32, #tpu.memory_space<vmem>>, vector<1x8x128xf32>
    %280 = vector.shape_cast %279 : vector<1x8x128xf32> to vector<8x128xf32>
    %281 = arith.index_cast %c6_i32 : i32 to index
    %c0_139 = arith.constant 0 : index
    %c0_140 = arith.constant 0 : index
    %282 = vector.load %arg12[%281, %c0_139, %c0_140] : memref<8x8x512xf32, #tpu.memory_space<vmem>>, vector<1x8x512xf32>
    %283 = vector.shape_cast %282 : vector<1x8x512xf32> to vector<8x512xf32>
    %cst_141 = arith.constant dense<0.000000e+00> : vector<8x512xf32>
    %284 = tpu.matmul %278, %3, %cst_141 {dimension_numbers = #tpu.dot_dimension_numbers<[1], [0], [0], [1], [0, 0, 1, 1], [], []>} : vector<8x128xf32>, vector<128x512xf32>, vector<8x512xf32> -> vector<8x512xf32>
    %285 = arith.addf %283, %284 : vector<8x512xf32>
    %286 = vector.extract_strided_slice %285 {offsets = [0, 0], sizes = [8, 128], strides = [1, 1]} : vector<8x512xf32> to vector<8x128xf32>
    %287 = arith.negf %286 : vector<8x128xf32>
    %288 = math.exp %287 : vector<8x128xf32>
    %cst_142 = arith.constant 1.000000e+00 : f32
    %289 = vector.broadcast %cst_142 : f32 to vector<8x128xf32>
    %290 = arith.addf %289, %288 : vector<8x128xf32>
    %291 = arith.divf %289, %290 : vector<8x128xf32>
    %292 = vector.extract_strided_slice %285 {offsets = [0, 128], sizes = [8, 128], strides = [1, 1]} : vector<8x512xf32> to vector<8x128xf32>
    %293 = arith.negf %292 : vector<8x128xf32>
    %294 = math.exp %293 : vector<8x128xf32>
    %cst_143 = arith.constant 1.000000e+00 : f32
    %295 = vector.broadcast %cst_143 : f32 to vector<8x128xf32>
    %296 = arith.addf %295, %294 : vector<8x128xf32>
    %297 = arith.divf %295, %296 : vector<8x128xf32>
    %298 = vector.extract_strided_slice %285 {offsets = [0, 256], sizes = [8, 128], strides = [1, 1]} : vector<8x512xf32> to vector<8x128xf32>
    %299 = math.tanh %298 : vector<8x128xf32>
    %300 = vector.extract_strided_slice %285 {offsets = [0, 384], sizes = [8, 128], strides = [1, 1]} : vector<8x512xf32> to vector<8x128xf32>
    %301 = arith.negf %300 : vector<8x128xf32>
    %302 = math.exp %301 : vector<8x128xf32>
    %cst_144 = arith.constant 1.000000e+00 : f32
    %303 = vector.broadcast %cst_144 : f32 to vector<8x128xf32>
    %304 = arith.addf %303, %302 : vector<8x128xf32>
    %305 = arith.divf %303, %304 : vector<8x128xf32>
    %306 = arith.mulf %297, %280 : vector<8x128xf32>
    %307 = arith.mulf %291, %299 : vector<8x128xf32>
    %308 = arith.addf %306, %307 : vector<8x128xf32>
    %309 = math.tanh %308 : vector<8x128xf32>
    %310 = arith.mulf %305, %309 : vector<8x128xf32>
    %c0_145 = arith.constant 0 : index
    %c0_146 = arith.constant 0 : index
    %c0_147 = arith.constant 0 : index
    %311 = vector.load %arg14[%c0_145, %c0_146, %c0_147] : memref<2x8x128xf32, #tpu.memory_space<vmem>>, vector<1x8x128xf32>
    %312 = vector.shape_cast %311 : vector<1x8x128xf32> to vector<8x128xf32>
    %313 = vector.shape_cast %308 : vector<8x128xf32> to vector<1x8x128xf32>
    tpu.vector_store %arg14[%c0_145, %c0_146, %c0_147], %313 {strides = array<i32>} : memref<2x8x128xf32, #tpu.memory_space<vmem>>, vector<1x8x128xf32>,
    %c0_148 = arith.constant 0 : index
    %c0_149 = arith.constant 0 : index
    %c0_150 = arith.constant 0 : index
    %314 = vector.load %arg13[%c0_148, %c0_149, %c0_150] : memref<2x8x128xf32, #tpu.memory_space<vmem>>, vector<1x8x128xf32>
    %315 = vector.shape_cast %314 : vector<1x8x128xf32> to vector<8x128xf32>
    %316 = vector.shape_cast %310 : vector<8x128xf32> to vector<1x8x128xf32>
    tpu.vector_store %arg13[%c0_148, %c0_149, %c0_150], %316 {strides = array<i32>} : memref<2x8x128xf32, #tpu.memory_space<vmem>>, vector<1x8x128xf32>,
    %317 = arith.index_cast %c6_i32 : i32 to index
    %c0_151 = arith.constant 0 : index
    %c0_152 = arith.constant 0 : index
    %318 = vector.load %arg11[%317, %c0_151, %c0_152] : memref<8x8x128xf32, #tpu.memory_space<vmem>>, vector<1x8x128xf32>
    %319 = vector.shape_cast %318 : vector<1x8x128xf32> to vector<8x128xf32>
    %320 = vector.shape_cast %310 : vector<8x128xf32> to vector<1x8x128xf32>
    tpu.vector_store %arg11[%317, %c0_151, %c0_152], %320 {strides = array<i32>} : memref<8x8x128xf32, #tpu.memory_space<vmem>>, vector<1x8x128xf32>,
    %c7_i32 = arith.constant 7 : i32
    %c0_153 = arith.constant 0 : index
    %c0_154 = arith.constant 0 : index
    %c0_155 = arith.constant 0 : index
    %321 = vector.load %arg13[%c0_153, %c0_154, %c0_155] : memref<2x8x128xf32, #tpu.memory_space<vmem>>, vector<1x8x128xf32>
    %322 = vector.shape_cast %321 : vector<1x8x128xf32> to vector<8x128xf32>
    %c0_156 = arith.constant 0 : index
    %c0_157 = arith.constant 0 : index
    %c0_158 = arith.constant 0 : index
    %323 = vector.load %arg14[%c0_156, %c0_157, %c0_158] : memref<2x8x128xf32, #tpu.memory_space<vmem>>, vector<1x8x128xf32>
    %324 = vector.shape_cast %323 : vector<1x8x128xf32> to vector<8x128xf32>
    %325 = arith.index_cast %c7_i32 : i32 to index
    %c0_159 = arith.constant 0 : index
    %c0_160 = arith.constant 0 : index
    %326 = vector.load %arg12[%325, %c0_159, %c0_160] : memref<8x8x512xf32, #tpu.memory_space<vmem>>, vector<1x8x512xf32>
    %327 = vector.shape_cast %326 : vector<1x8x512xf32> to vector<8x512xf32>
    %cst_161 = arith.constant dense<0.000000e+00> : vector<8x512xf32>
    %328 = tpu.matmul %322, %3, %cst_161 {dimension_numbers = #tpu.dot_dimension_numbers<[1], [0], [0], [1], [0, 0, 1, 1], [], []>} : vector<8x128xf32>, vector<128x512xf32>, vector<8x512xf32> -> vector<8x512xf32>
    %329 = arith.addf %327, %328 : vector<8x512xf32>
    %330 = vector.extract_strided_slice %329 {offsets = [0, 0], sizes = [8, 128], strides = [1, 1]} : vector<8x512xf32> to vector<8x128xf32>
    %331 = arith.negf %330 : vector<8x128xf32>
    %332 = math.exp %331 : vector<8x128xf32>
    %cst_162 = arith.constant 1.000000e+00 : f32
    %333 = vector.broadcast %cst_162 : f32 to vector<8x128xf32>
    %334 = arith.addf %333, %332 : vector<8x128xf32>
    %335 = arith.divf %333, %334 : vector<8x128xf32>
    %336 = vector.extract_strided_slice %329 {offsets = [0, 128], sizes = [8, 128], strides = [1, 1]} : vector<8x512xf32> to vector<8x128xf32>
    %337 = arith.negf %336 : vector<8x128xf32>
    %338 = math.exp %337 : vector<8x128xf32>
    %cst_163 = arith.constant 1.000000e+00 : f32
    %339 = vector.broadcast %cst_163 : f32 to vector<8x128xf32>
    %340 = arith.addf %339, %338 : vector<8x128xf32>
    %341 = arith.divf %339, %340 : vector<8x128xf32>
    %342 = vector.extract_strided_slice %329 {offsets = [0, 256], sizes = [8, 128], strides = [1, 1]} : vector<8x512xf32> to vector<8x128xf32>
    %343 = math.tanh %342 : vector<8x128xf32>
    %344 = vector.extract_strided_slice %329 {offsets = [0, 384], sizes = [8, 128], strides = [1, 1]} : vector<8x512xf32> to vector<8x128xf32>
    %345 = arith.negf %344 : vector<8x128xf32>
    %346 = math.exp %345 : vector<8x128xf32>
    %cst_164 = arith.constant 1.000000e+00 : f32
    %347 = vector.broadcast %cst_164 : f32 to vector<8x128xf32>
    %348 = arith.addf %347, %346 : vector<8x128xf32>
    %349 = arith.divf %347, %348 : vector<8x128xf32>
    %350 = arith.mulf %341, %324 : vector<8x128xf32>
    %351 = arith.mulf %335, %343 : vector<8x128xf32>
    %352 = arith.addf %350, %351 : vector<8x128xf32>
    %353 = math.tanh %352 : vector<8x128xf32>
    %354 = arith.mulf %349, %353 : vector<8x128xf32>
    %c0_165 = arith.constant 0 : index
    %c0_166 = arith.constant 0 : index
    %c0_167 = arith.constant 0 : index
    %355 = vector.load %arg14[%c0_165, %c0_166, %c0_167] : memref<2x8x128xf32, #tpu.memory_space<vmem>>, vector<1x8x128xf32>
    %356 = vector.shape_cast %355 : vector<1x8x128xf32> to vector<8x128xf32>
    %357 = vector.shape_cast %352 : vector<8x128xf32> to vector<1x8x128xf32>
    tpu.vector_store %arg14[%c0_165, %c0_166, %c0_167], %357 {strides = array<i32>} : memref<2x8x128xf32, #tpu.memory_space<vmem>>, vector<1x8x128xf32>,
    %c0_168 = arith.constant 0 : index
    %c0_169 = arith.constant 0 : index
    %c0_170 = arith.constant 0 : index
    %358 = vector.load %arg13[%c0_168, %c0_169, %c0_170] : memref<2x8x128xf32, #tpu.memory_space<vmem>>, vector<1x8x128xf32>
    %359 = vector.shape_cast %358 : vector<1x8x128xf32> to vector<8x128xf32>
    %360 = vector.shape_cast %354 : vector<8x128xf32> to vector<1x8x128xf32>
    tpu.vector_store %arg13[%c0_168, %c0_169, %c0_170], %360 {strides = array<i32>} : memref<2x8x128xf32, #tpu.memory_space<vmem>>, vector<1x8x128xf32>,
    %361 = arith.index_cast %c7_i32 : i32 to index
    %c0_171 = arith.constant 0 : index
    %c0_172 = arith.constant 0 : index
    %362 = vector.load %arg11[%361, %c0_171, %c0_172] : memref<8x8x128xf32, #tpu.memory_space<vmem>>, vector<1x8x128xf32>
    %363 = vector.shape_cast %362 : vector<1x8x128xf32> to vector<8x128xf32>
    %364 = vector.shape_cast %354 : vector<8x128xf32> to vector<1x8x128xf32>
    tpu.vector_store %arg11[%361, %c0_171, %c0_172], %364 {strides = array<i32>} : memref<8x8x128xf32, #tpu.memory_space<vmem>>, vector<1x8x128xf32>,
    %c8_i32 = arith.constant 8 : i32
    %c0_173 = arith.constant 0 : index
    %c0_174 = arith.constant 0 : index
    %365 = vector.load %arg5[%c0_173, %c0_174] : memref<128x512xf32, #tpu.memory_space<vmem>>, vector<128x512xf32>
    %c0_175 = arith.constant 0 : index
    %c0_176 = arith.constant 0 : index
    %366 = vector.load %arg7[%c0_175, %c0_176] : memref<1x512xf32, #tpu.memory_space<vmem>>, vector<1x512xf32>
    %c0_177 = arith.constant 0 : index
    %c0_178 = arith.constant 0 : index
    %c0_179 = arith.constant 0 : index
    %367 = vector.load %arg11[%c0_177, %c0_178, %c0_179] : memref<8x8x128xf32, #tpu.memory_space<vmem>>, vector<8x8x128xf32>
    %368 = vector.shape_cast %367 : vector<8x8x128xf32> to vector<64x128xf32>
    %c0_180 = arith.constant 0 : index
    %c0_181 = arith.constant 0 : index
    %369 = vector.load %arg3[%c0_180, %c0_181] : memref<128x512xf32, #tpu.memory_space<vmem>>, vector<128x512xf32>
    %cst_182 = arith.constant dense<0.000000e+00> : vector<64x512xf32>
    %370 = tpu.matmul %368, %369, %cst_182 {dimension_numbers = #tpu.dot_dimension_numbers<[1], [0], [0], [1], [0, 0, 1, 1], [], []>} : vector<64x128xf32>, vector<128x512xf32>, vector<64x512xf32> -> vector<64x512xf32>
    %371 = vector.broadcast %366 : vector<1x512xf32> to vector<64x512xf32>
    %372 = arith.addf %370, %371 : vector<64x512xf32>
    %373 = vector.shape_cast %372 : vector<64x512xf32> to vector<8x8x512xf32>
    %c0_183 = arith.constant 0 : index
    %c0_184 = arith.constant 0 : index
    %c0_185 = arith.constant 0 : index
    %374 = vector.load %arg12[%c0_183, %c0_184, %c0_185] : memref<8x8x512xf32, #tpu.memory_space<vmem>>, vector<8x8x512xf32>
    tpu.vector_store %arg12[%c0_183, %c0_184, %c0_185], %373 {strides = array<i32>} : memref<8x8x512xf32, #tpu.memory_space<vmem>>, vector<8x8x512xf32>,
    %c0_i32_186 = arith.constant 0 : i32
    %c1 = arith.constant 1 : index
    %c0_187 = arith.constant 0 : index
    %c0_188 = arith.constant 0 : index
    %375 = vector.load %arg13[%c1, %c0_187, %c0_188] : memref<2x8x128xf32, #tpu.memory_space<vmem>>, vector<1x8x128xf32>
    %376 = vector.shape_cast %375 : vector<1x8x128xf32> to vector<8x128xf32>
    %c1_189 = arith.constant 1 : index
    %c0_190 = arith.constant 0 : index
    %c0_191 = arith.constant 0 : index
    %377 = vector.load %arg14[%c1_189, %c0_190, %c0_191] : memref<2x8x128xf32, #tpu.memory_space<vmem>>, vector<1x8x128xf32>
    %378 = vector.shape_cast %377 : vector<1x8x128xf32> to vector<8x128xf32>
    %379 = arith.index_cast %c0_i32_186 : i32 to index
    %c0_192 = arith.constant 0 : index
    %c0_193 = arith.constant 0 : index
    %380 = vector.load %arg12[%379, %c0_192, %c0_193] : memref<8x8x512xf32, #tpu.memory_space<vmem>>, vector<1x8x512xf32>
    %381 = vector.shape_cast %380 : vector<1x8x512xf32> to vector<8x512xf32>
    %cst_194 = arith.constant dense<0.000000e+00> : vector<8x512xf32>
    %382 = tpu.matmul %376, %365, %cst_194 {dimension_numbers = #tpu.dot_dimension_numbers<[1], [0], [0], [1], [0, 0, 1, 1], [], []>} : vector<8x128xf32>, vector<128x512xf32>, vector<8x512xf32> -> vector<8x512xf32>
    %383 = arith.addf %381, %382 : vector<8x512xf32>
    %384 = vector.extract_strided_slice %383 {offsets = [0, 0], sizes = [8, 128], strides = [1, 1]} : vector<8x512xf32> to vector<8x128xf32>
    %385 = arith.negf %384 : vector<8x128xf32>
    %386 = math.exp %385 : vector<8x128xf32>
    %cst_195 = arith.constant 1.000000e+00 : f32
    %387 = vector.broadcast %cst_195 : f32 to vector<8x128xf32>
    %388 = arith.addf %387, %386 : vector<8x128xf32>
    %389 = arith.divf %387, %388 : vector<8x128xf32>
    %390 = vector.extract_strided_slice %383 {offsets = [0, 128], sizes = [8, 128], strides = [1, 1]} : vector<8x512xf32> to vector<8x128xf32>
    %391 = arith.negf %390 : vector<8x128xf32>
    %392 = math.exp %391 : vector<8x128xf32>
    %cst_196 = arith.constant 1.000000e+00 : f32
    %393 = vector.broadcast %cst_196 : f32 to vector<8x128xf32>
    %394 = arith.addf %393, %392 : vector<8x128xf32>
    %395 = arith.divf %393, %394 : vector<8x128xf32>
    %396 = vector.extract_strided_slice %383 {offsets = [0, 256], sizes = [8, 128], strides = [1, 1]} : vector<8x512xf32> to vector<8x128xf32>
    %397 = math.tanh %396 : vector<8x128xf32>
    %398 = vector.extract_strided_slice %383 {offsets = [0, 384], sizes = [8, 128], strides = [1, 1]} : vector<8x512xf32> to vector<8x128xf32>
    %399 = arith.negf %398 : vector<8x128xf32>
    %400 = math.exp %399 : vector<8x128xf32>
    %cst_197 = arith.constant 1.000000e+00 : f32
    %401 = vector.broadcast %cst_197 : f32 to vector<8x128xf32>
    %402 = arith.addf %401, %400 : vector<8x128xf32>
    %403 = arith.divf %401, %402 : vector<8x128xf32>
    %404 = arith.mulf %395, %378 : vector<8x128xf32>
    %405 = arith.mulf %389, %397 : vector<8x128xf32>
    %406 = arith.addf %404, %405 : vector<8x128xf32>
    %407 = math.tanh %406 : vector<8x128xf32>
    %408 = arith.mulf %403, %407 : vector<8x128xf32>
    %c1_198 = arith.constant 1 : index
    %c0_199 = arith.constant 0 : index
    %c0_200 = arith.constant 0 : index
    %409 = vector.load %arg14[%c1_198, %c0_199, %c0_200] : memref<2x8x128xf32, #tpu.memory_space<vmem>>, vector<1x8x128xf32>
    %410 = vector.shape_cast %409 : vector<1x8x128xf32> to vector<8x128xf32>
    %411 = vector.shape_cast %406 : vector<8x128xf32> to vector<1x8x128xf32>
    tpu.vector_store %arg14[%c1_198, %c0_199, %c0_200], %411 {strides = array<i32>} : memref<2x8x128xf32, #tpu.memory_space<vmem>>, vector<1x8x128xf32>,
    %c1_201 = arith.constant 1 : index
    %c0_202 = arith.constant 0 : index
    %c0_203 = arith.constant 0 : index
    %412 = vector.load %arg13[%c1_201, %c0_202, %c0_203] : memref<2x8x128xf32, #tpu.memory_space<vmem>>, vector<1x8x128xf32>
    %413 = vector.shape_cast %412 : vector<1x8x128xf32> to vector<8x128xf32>
    %414 = vector.shape_cast %408 : vector<8x128xf32> to vector<1x8x128xf32>
    tpu.vector_store %arg13[%c1_201, %c0_202, %c0_203], %414 {strides = array<i32>} : memref<2x8x128xf32, #tpu.memory_space<vmem>>, vector<1x8x128xf32>,
    %c1_i32_204 = arith.constant 1 : i32
    %c1_205 = arith.constant 1 : index
    %c0_206 = arith.constant 0 : index
    %c0_207 = arith.constant 0 : index
    %415 = vector.load %arg13[%c1_205, %c0_206, %c0_207] : memref<2x8x128xf32, #tpu.memory_space<vmem>>, vector<1x8x128xf32>
    %416 = vector.shape_cast %415 : vector<1x8x128xf32> to vector<8x128xf32>
    %c1_208 = arith.constant 1 : index
    %c0_209 = arith.constant 0 : index
    %c0_210 = arith.constant 0 : index
    %417 = vector.load %arg14[%c1_208, %c0_209, %c0_210] : memref<2x8x128xf32, #tpu.memory_space<vmem>>, vector<1x8x128xf32>
    %418 = vector.shape_cast %417 : vector<1x8x128xf32> to vector<8x128xf32>
    %419 = arith.index_cast %c1_i32_204 : i32 to index
    %c0_211 = arith.constant 0 : index
    %c0_212 = arith.constant 0 : index
    %420 = vector.load %arg12[%419, %c0_211, %c0_212] : memref<8x8x512xf32, #tpu.memory_space<vmem>>, vector<1x8x512xf32>
    %421 = vector.shape_cast %420 : vector<1x8x512xf32> to vector<8x512xf32>
    %cst_213 = arith.constant dense<0.000000e+00> : vector<8x512xf32>
    %422 = tpu.matmul %416, %365, %cst_213 {dimension_numbers = #tpu.dot_dimension_numbers<[1], [0], [0], [1], [0, 0, 1, 1], [], []>} : vector<8x128xf32>, vector<128x512xf32>, vector<8x512xf32> -> vector<8x512xf32>
    %423 = arith.addf %421, %422 : vector<8x512xf32>
    %424 = vector.extract_strided_slice %423 {offsets = [0, 0], sizes = [8, 128], strides = [1, 1]} : vector<8x512xf32> to vector<8x128xf32>
    %425 = arith.negf %424 : vector<8x128xf32>
    %426 = math.exp %425 : vector<8x128xf32>
    %cst_214 = arith.constant 1.000000e+00 : f32
    %427 = vector.broadcast %cst_214 : f32 to vector<8x128xf32>
    %428 = arith.addf %427, %426 : vector<8x128xf32>
    %429 = arith.divf %427, %428 : vector<8x128xf32>
    %430 = vector.extract_strided_slice %423 {offsets = [0, 128], sizes = [8, 128], strides = [1, 1]} : vector<8x512xf32> to vector<8x128xf32>
    %431 = arith.negf %430 : vector<8x128xf32>
    %432 = math.exp %431 : vector<8x128xf32>
    %cst_215 = arith.constant 1.000000e+00 : f32
    %433 = vector.broadcast %cst_215 : f32 to vector<8x128xf32>
    %434 = arith.addf %433, %432 : vector<8x128xf32>
    %435 = arith.divf %433, %434 : vector<8x128xf32>
    %436 = vector.extract_strided_slice %423 {offsets = [0, 256], sizes = [8, 128], strides = [1, 1]} : vector<8x512xf32> to vector<8x128xf32>
    %437 = math.tanh %436 : vector<8x128xf32>
    %438 = vector.extract_strided_slice %423 {offsets = [0, 384], sizes = [8, 128], strides = [1, 1]} : vector<8x512xf32> to vector<8x128xf32>
    %439 = arith.negf %438 : vector<8x128xf32>
    %440 = math.exp %439 : vector<8x128xf32>
    %cst_216 = arith.constant 1.000000e+00 : f32
    %441 = vector.broadcast %cst_216 : f32 to vector<8x128xf32>
    %442 = arith.addf %441, %440 : vector<8x128xf32>
    %443 = arith.divf %441, %442 : vector<8x128xf32>
    %444 = arith.mulf %435, %418 : vector<8x128xf32>
    %445 = arith.mulf %429, %437 : vector<8x128xf32>
    %446 = arith.addf %444, %445 : vector<8x128xf32>
    %447 = math.tanh %446 : vector<8x128xf32>
    %448 = arith.mulf %443, %447 : vector<8x128xf32>
    %c1_217 = arith.constant 1 : index
    %c0_218 = arith.constant 0 : index
    %c0_219 = arith.constant 0 : index
    %449 = vector.load %arg14[%c1_217, %c0_218, %c0_219] : memref<2x8x128xf32, #tpu.memory_space<vmem>>, vector<1x8x128xf32>
    %450 = vector.shape_cast %449 : vector<1x8x128xf32> to vector<8x128xf32>
    %451 = vector.shape_cast %446 : vector<8x128xf32> to vector<1x8x128xf32>
    tpu.vector_store %arg14[%c1_217, %c0_218, %c0_219], %451 {strides = array<i32>} : memref<2x8x128xf32, #tpu.memory_space<vmem>>, vector<1x8x128xf32>,
    %c1_220 = arith.constant 1 : index
    %c0_221 = arith.constant 0 : index
    %c0_222 = arith.constant 0 : index
    %452 = vector.load %arg13[%c1_220, %c0_221, %c0_222] : memref<2x8x128xf32, #tpu.memory_space<vmem>>, vector<1x8x128xf32>
    %453 = vector.shape_cast %452 : vector<1x8x128xf32> to vector<8x128xf32>
    %454 = vector.shape_cast %448 : vector<8x128xf32> to vector<1x8x128xf32>
    tpu.vector_store %arg13[%c1_220, %c0_221, %c0_222], %454 {strides = array<i32>} : memref<2x8x128xf32, #tpu.memory_space<vmem>>, vector<1x8x128xf32>,
    %c2_i32_223 = arith.constant 2 : i32
    %c1_224 = arith.constant 1 : index
    %c0_225 = arith.constant 0 : index
    %c0_226 = arith.constant 0 : index
    %455 = vector.load %arg13[%c1_224, %c0_225, %c0_226] : memref<2x8x128xf32, #tpu.memory_space<vmem>>, vector<1x8x128xf32>
    %456 = vector.shape_cast %455 : vector<1x8x128xf32> to vector<8x128xf32>
    %c1_227 = arith.constant 1 : index
    %c0_228 = arith.constant 0 : index
    %c0_229 = arith.constant 0 : index
    %457 = vector.load %arg14[%c1_227, %c0_228, %c0_229] : memref<2x8x128xf32, #tpu.memory_space<vmem>>, vector<1x8x128xf32>
    %458 = vector.shape_cast %457 : vector<1x8x128xf32> to vector<8x128xf32>
    %459 = arith.index_cast %c2_i32_223 : i32 to index
    %c0_230 = arith.constant 0 : index
    %c0_231 = arith.constant 0 : index
    %460 = vector.load %arg12[%459, %c0_230, %c0_231] : memref<8x8x512xf32, #tpu.memory_space<vmem>>, vector<1x8x512xf32>
    %461 = vector.shape_cast %460 : vector<1x8x512xf32> to vector<8x512xf32>
    %cst_232 = arith.constant dense<0.000000e+00> : vector<8x512xf32>
    %462 = tpu.matmul %456, %365, %cst_232 {dimension_numbers = #tpu.dot_dimension_numbers<[1], [0], [0], [1], [0, 0, 1, 1], [], []>} : vector<8x128xf32>, vector<128x512xf32>, vector<8x512xf32> -> vector<8x512xf32>
    %463 = arith.addf %461, %462 : vector<8x512xf32>
    %464 = vector.extract_strided_slice %463 {offsets = [0, 0], sizes = [8, 128], strides = [1, 1]} : vector<8x512xf32> to vector<8x128xf32>
    %465 = arith.negf %464 : vector<8x128xf32>
    %466 = math.exp %465 : vector<8x128xf32>
    %cst_233 = arith.constant 1.000000e+00 : f32
    %467 = vector.broadcast %cst_233 : f32 to vector<8x128xf32>
    %468 = arith.addf %467, %466 : vector<8x128xf32>
    %469 = arith.divf %467, %468 : vector<8x128xf32>
    %470 = vector.extract_strided_slice %463 {offsets = [0, 128], sizes = [8, 128], strides = [1, 1]} : vector<8x512xf32> to vector<8x128xf32>
    %471 = arith.negf %470 : vector<8x128xf32>
    %472 = math.exp %471 : vector<8x128xf32>
    %cst_234 = arith.constant 1.000000e+00 : f32
    %473 = vector.broadcast %cst_234 : f32 to vector<8x128xf32>
    %474 = arith.addf %473, %472 : vector<8x128xf32>
    %475 = arith.divf %473, %474 : vector<8x128xf32>
    %476 = vector.extract_strided_slice %463 {offsets = [0, 256], sizes = [8, 128], strides = [1, 1]} : vector<8x512xf32> to vector<8x128xf32>
    %477 = math.tanh %476 : vector<8x128xf32>
    %478 = vector.extract_strided_slice %463 {offsets = [0, 384], sizes = [8, 128], strides = [1, 1]} : vector<8x512xf32> to vector<8x128xf32>
    %479 = arith.negf %478 : vector<8x128xf32>
    %480 = math.exp %479 : vector<8x128xf32>
    %cst_235 = arith.constant 1.000000e+00 : f32
    %481 = vector.broadcast %cst_235 : f32 to vector<8x128xf32>
    %482 = arith.addf %481, %480 : vector<8x128xf32>
    %483 = arith.divf %481, %482 : vector<8x128xf32>
    %484 = arith.mulf %475, %458 : vector<8x128xf32>
    %485 = arith.mulf %469, %477 : vector<8x128xf32>
    %486 = arith.addf %484, %485 : vector<8x128xf32>
    %487 = math.tanh %486 : vector<8x128xf32>
    %488 = arith.mulf %483, %487 : vector<8x128xf32>
    %c1_236 = arith.constant 1 : index
    %c0_237 = arith.constant 0 : index
    %c0_238 = arith.constant 0 : index
    %489 = vector.load %arg14[%c1_236, %c0_237, %c0_238] : memref<2x8x128xf32, #tpu.memory_space<vmem>>, vector<1x8x128xf32>
    %490 = vector.shape_cast %489 : vector<1x8x128xf32> to vector<8x128xf32>
    %491 = vector.shape_cast %486 : vector<8x128xf32> to vector<1x8x128xf32>
    tpu.vector_store %arg14[%c1_236, %c0_237, %c0_238], %491 {strides = array<i32>} : memref<2x8x128xf32, #tpu.memory_space<vmem>>, vector<1x8x128xf32>,
    %c1_239 = arith.constant 1 : index
    %c0_240 = arith.constant 0 : index
    %c0_241 = arith.constant 0 : index
    %492 = vector.load %arg13[%c1_239, %c0_240, %c0_241] : memref<2x8x128xf32, #tpu.memory_space<vmem>>, vector<1x8x128xf32>
    %493 = vector.shape_cast %492 : vector<1x8x128xf32> to vector<8x128xf32>
    %494 = vector.shape_cast %488 : vector<8x128xf32> to vector<1x8x128xf32>
    tpu.vector_store %arg13[%c1_239, %c0_240, %c0_241], %494 {strides = array<i32>} : memref<2x8x128xf32, #tpu.memory_space<vmem>>, vector<1x8x128xf32>,
    %c3_i32_242 = arith.constant 3 : i32
    %c1_243 = arith.constant 1 : index
    %c0_244 = arith.constant 0 : index
    %c0_245 = arith.constant 0 : index
    %495 = vector.load %arg13[%c1_243, %c0_244, %c0_245] : memref<2x8x128xf32, #tpu.memory_space<vmem>>, vector<1x8x128xf32>
    %496 = vector.shape_cast %495 : vector<1x8x128xf32> to vector<8x128xf32>
    %c1_246 = arith.constant 1 : index
    %c0_247 = arith.constant 0 : index
    %c0_248 = arith.constant 0 : index
    %497 = vector.load %arg14[%c1_246, %c0_247, %c0_248] : memref<2x8x128xf32, #tpu.memory_space<vmem>>, vector<1x8x128xf32>
    %498 = vector.shape_cast %497 : vector<1x8x128xf32> to vector<8x128xf32>
    %499 = arith.index_cast %c3_i32_242 : i32 to index
    %c0_249 = arith.constant 0 : index
    %c0_250 = arith.constant 0 : index
    %500 = vector.load %arg12[%499, %c0_249, %c0_250] : memref<8x8x512xf32, #tpu.memory_space<vmem>>, vector<1x8x512xf32>
    %501 = vector.shape_cast %500 : vector<1x8x512xf32> to vector<8x512xf32>
    %cst_251 = arith.constant dense<0.000000e+00> : vector<8x512xf32>
    %502 = tpu.matmul %496, %365, %cst_251 {dimension_numbers = #tpu.dot_dimension_numbers<[1], [0], [0], [1], [0, 0, 1, 1], [], []>} : vector<8x128xf32>, vector<128x512xf32>, vector<8x512xf32> -> vector<8x512xf32>
    %503 = arith.addf %501, %502 : vector<8x512xf32>
    %504 = vector.extract_strided_slice %503 {offsets = [0, 0], sizes = [8, 128], strides = [1, 1]} : vector<8x512xf32> to vector<8x128xf32>
    %505 = arith.negf %504 : vector<8x128xf32>
    %506 = math.exp %505 : vector<8x128xf32>
    %cst_252 = arith.constant 1.000000e+00 : f32
    %507 = vector.broadcast %cst_252 : f32 to vector<8x128xf32>
    %508 = arith.addf %507, %506 : vector<8x128xf32>
    %509 = arith.divf %507, %508 : vector<8x128xf32>
    %510 = vector.extract_strided_slice %503 {offsets = [0, 128], sizes = [8, 128], strides = [1, 1]} : vector<8x512xf32> to vector<8x128xf32>
    %511 = arith.negf %510 : vector<8x128xf32>
    %512 = math.exp %511 : vector<8x128xf32>
    %cst_253 = arith.constant 1.000000e+00 : f32
    %513 = vector.broadcast %cst_253 : f32 to vector<8x128xf32>
    %514 = arith.addf %513, %512 : vector<8x128xf32>
    %515 = arith.divf %513, %514 : vector<8x128xf32>
    %516 = vector.extract_strided_slice %503 {offsets = [0, 256], sizes = [8, 128], strides = [1, 1]} : vector<8x512xf32> to vector<8x128xf32>
    %517 = math.tanh %516 : vector<8x128xf32>
    %518 = vector.extract_strided_slice %503 {offsets = [0, 384], sizes = [8, 128], strides = [1, 1]} : vector<8x512xf32> to vector<8x128xf32>
    %519 = arith.negf %518 : vector<8x128xf32>
    %520 = math.exp %519 : vector<8x128xf32>
    %cst_254 = arith.constant 1.000000e+00 : f32
    %521 = vector.broadcast %cst_254 : f32 to vector<8x128xf32>
    %522 = arith.addf %521, %520 : vector<8x128xf32>
    %523 = arith.divf %521, %522 : vector<8x128xf32>
    %524 = arith.mulf %515, %498 : vector<8x128xf32>
    %525 = arith.mulf %509, %517 : vector<8x128xf32>
    %526 = arith.addf %524, %525 : vector<8x128xf32>
    %527 = math.tanh %526 : vector<8x128xf32>
    %528 = arith.mulf %523, %527 : vector<8x128xf32>
    %c1_255 = arith.constant 1 : index
    %c0_256 = arith.constant 0 : index
    %c0_257 = arith.constant 0 : index
    %529 = vector.load %arg14[%c1_255, %c0_256, %c0_257] : memref<2x8x128xf32, #tpu.memory_space<vmem>>, vector<1x8x128xf32>
    %530 = vector.shape_cast %529 : vector<1x8x128xf32> to vector<8x128xf32>
    %531 = vector.shape_cast %526 : vector<8x128xf32> to vector<1x8x128xf32>
    tpu.vector_store %arg14[%c1_255, %c0_256, %c0_257], %531 {strides = array<i32>} : memref<2x8x128xf32, #tpu.memory_space<vmem>>, vector<1x8x128xf32>,
    %c1_258 = arith.constant 1 : index
    %c0_259 = arith.constant 0 : index
    %c0_260 = arith.constant 0 : index
    %532 = vector.load %arg13[%c1_258, %c0_259, %c0_260] : memref<2x8x128xf32, #tpu.memory_space<vmem>>, vector<1x8x128xf32>
    %533 = vector.shape_cast %532 : vector<1x8x128xf32> to vector<8x128xf32>
    %534 = vector.shape_cast %528 : vector<8x128xf32> to vector<1x8x128xf32>
    tpu.vector_store %arg13[%c1_258, %c0_259, %c0_260], %534 {strides = array<i32>} : memref<2x8x128xf32, #tpu.memory_space<vmem>>, vector<1x8x128xf32>,
    %c4_i32_261 = arith.constant 4 : i32
    %c1_262 = arith.constant 1 : index
    %c0_263 = arith.constant 0 : index
    %c0_264 = arith.constant 0 : index
    %535 = vector.load %arg13[%c1_262, %c0_263, %c0_264] : memref<2x8x128xf32, #tpu.memory_space<vmem>>, vector<1x8x128xf32>
    %536 = vector.shape_cast %535 : vector<1x8x128xf32> to vector<8x128xf32>
    %c1_265 = arith.constant 1 : index
    %c0_266 = arith.constant 0 : index
    %c0_267 = arith.constant 0 : index
    %537 = vector.load %arg14[%c1_265, %c0_266, %c0_267] : memref<2x8x128xf32, #tpu.memory_space<vmem>>, vector<1x8x128xf32>
    %538 = vector.shape_cast %537 : vector<1x8x128xf32> to vector<8x128xf32>
    %539 = arith.index_cast %c4_i32_261 : i32 to index
    %c0_268 = arith.constant 0 : index
    %c0_269 = arith.constant 0 : index
    %540 = vector.load %arg12[%539, %c0_268, %c0_269] : memref<8x8x512xf32, #tpu.memory_space<vmem>>, vector<1x8x512xf32>
    %541 = vector.shape_cast %540 : vector<1x8x512xf32> to vector<8x512xf32>
    %cst_270 = arith.constant dense<0.000000e+00> : vector<8x512xf32>
    %542 = tpu.matmul %536, %365, %cst_270 {dimension_numbers = #tpu.dot_dimension_numbers<[1], [0], [0], [1], [0, 0, 1, 1], [], []>} : vector<8x128xf32>, vector<128x512xf32>, vector<8x512xf32> -> vector<8x512xf32>
    %543 = arith.addf %541, %542 : vector<8x512xf32>
    %544 = vector.extract_strided_slice %543 {offsets = [0, 0], sizes = [8, 128], strides = [1, 1]} : vector<8x512xf32> to vector<8x128xf32>
    %545 = arith.negf %544 : vector<8x128xf32>
    %546 = math.exp %545 : vector<8x128xf32>
    %cst_271 = arith.constant 1.000000e+00 : f32
    %547 = vector.broadcast %cst_271 : f32 to vector<8x128xf32>
    %548 = arith.addf %547, %546 : vector<8x128xf32>
    %549 = arith.divf %547, %548 : vector<8x128xf32>
    %550 = vector.extract_strided_slice %543 {offsets = [0, 128], sizes = [8, 128], strides = [1, 1]} : vector<8x512xf32> to vector<8x128xf32>
    %551 = arith.negf %550 : vector<8x128xf32>
    %552 = math.exp %551 : vector<8x128xf32>
    %cst_272 = arith.constant 1.000000e+00 : f32
    %553 = vector.broadcast %cst_272 : f32 to vector<8x128xf32>
    %554 = arith.addf %553, %552 : vector<8x128xf32>
    %555 = arith.divf %553, %554 : vector<8x128xf32>
    %556 = vector.extract_strided_slice %543 {offsets = [0, 256], sizes = [8, 128], strides = [1, 1]} : vector<8x512xf32> to vector<8x128xf32>
    %557 = math.tanh %556 : vector<8x128xf32>
    %558 = vector.extract_strided_slice %543 {offsets = [0, 384], sizes = [8, 128], strides = [1, 1]} : vector<8x512xf32> to vector<8x128xf32>
    %559 = arith.negf %558 : vector<8x128xf32>
    %560 = math.exp %559 : vector<8x128xf32>
    %cst_273 = arith.constant 1.000000e+00 : f32
    %561 = vector.broadcast %cst_273 : f32 to vector<8x128xf32>
    %562 = arith.addf %561, %560 : vector<8x128xf32>
    %563 = arith.divf %561, %562 : vector<8x128xf32>
    %564 = arith.mulf %555, %538 : vector<8x128xf32>
    %565 = arith.mulf %549, %557 : vector<8x128xf32>
    %566 = arith.addf %564, %565 : vector<8x128xf32>
    %567 = math.tanh %566 : vector<8x128xf32>
    %568 = arith.mulf %563, %567 : vector<8x128xf32>
    %c1_274 = arith.constant 1 : index
    %c0_275 = arith.constant 0 : index
    %c0_276 = arith.constant 0 : index
    %569 = vector.load %arg14[%c1_274, %c0_275, %c0_276] : memref<2x8x128xf32, #tpu.memory_space<vmem>>, vector<1x8x128xf32>
    %570 = vector.shape_cast %569 : vector<1x8x128xf32> to vector<8x128xf32>
    %571 = vector.shape_cast %566 : vector<8x128xf32> to vector<1x8x128xf32>
    tpu.vector_store %arg14[%c1_274, %c0_275, %c0_276], %571 {strides = array<i32>} : memref<2x8x128xf32, #tpu.memory_space<vmem>>, vector<1x8x128xf32>,
    %c1_277 = arith.constant 1 : index
    %c0_278 = arith.constant 0 : index
    %c0_279 = arith.constant 0 : index
    %572 = vector.load %arg13[%c1_277, %c0_278, %c0_279] : memref<2x8x128xf32, #tpu.memory_space<vmem>>, vector<1x8x128xf32>
    %573 = vector.shape_cast %572 : vector<1x8x128xf32> to vector<8x128xf32>
    %574 = vector.shape_cast %568 : vector<8x128xf32> to vector<1x8x128xf32>
    tpu.vector_store %arg13[%c1_277, %c0_278, %c0_279], %574 {strides = array<i32>} : memref<2x8x128xf32, #tpu.memory_space<vmem>>, vector<1x8x128xf32>,
    %c5_i32_280 = arith.constant 5 : i32
    %c1_281 = arith.constant 1 : index
    %c0_282 = arith.constant 0 : index
    %c0_283 = arith.constant 0 : index
    %575 = vector.load %arg13[%c1_281, %c0_282, %c0_283] : memref<2x8x128xf32, #tpu.memory_space<vmem>>, vector<1x8x128xf32>
    %576 = vector.shape_cast %575 : vector<1x8x128xf32> to vector<8x128xf32>
    %c1_284 = arith.constant 1 : index
    %c0_285 = arith.constant 0 : index
    %c0_286 = arith.constant 0 : index
    %577 = vector.load %arg14[%c1_284, %c0_285, %c0_286] : memref<2x8x128xf32, #tpu.memory_space<vmem>>, vector<1x8x128xf32>
    %578 = vector.shape_cast %577 : vector<1x8x128xf32> to vector<8x128xf32>
    %579 = arith.index_cast %c5_i32_280 : i32 to index
    %c0_287 = arith.constant 0 : index
    %c0_288 = arith.constant 0 : index
    %580 = vector.load %arg12[%579, %c0_287, %c0_288] : memref<8x8x512xf32, #tpu.memory_space<vmem>>, vector<1x8x512xf32>
    %581 = vector.shape_cast %580 : vector<1x8x512xf32> to vector<8x512xf32>
    %cst_289 = arith.constant dense<0.000000e+00> : vector<8x512xf32>
    %582 = tpu.matmul %576, %365, %cst_289 {dimension_numbers = #tpu.dot_dimension_numbers<[1], [0], [0], [1], [0, 0, 1, 1], [], []>} : vector<8x128xf32>, vector<128x512xf32>, vector<8x512xf32> -> vector<8x512xf32>
    %583 = arith.addf %581, %582 : vector<8x512xf32>
    %584 = vector.extract_strided_slice %583 {offsets = [0, 0], sizes = [8, 128], strides = [1, 1]} : vector<8x512xf32> to vector<8x128xf32>
    %585 = arith.negf %584 : vector<8x128xf32>
    %586 = math.exp %585 : vector<8x128xf32>
    %cst_290 = arith.constant 1.000000e+00 : f32
    %587 = vector.broadcast %cst_290 : f32 to vector<8x128xf32>
    %588 = arith.addf %587, %586 : vector<8x128xf32>
    %589 = arith.divf %587, %588 : vector<8x128xf32>
    %590 = vector.extract_strided_slice %583 {offsets = [0, 128], sizes = [8, 128], strides = [1, 1]} : vector<8x512xf32> to vector<8x128xf32>
    %591 = arith.negf %590 : vector<8x128xf32>
    %592 = math.exp %591 : vector<8x128xf32>
    %cst_291 = arith.constant 1.000000e+00 : f32
    %593 = vector.broadcast %cst_291 : f32 to vector<8x128xf32>
    %594 = arith.addf %593, %592 : vector<8x128xf32>
    %595 = arith.divf %593, %594 : vector<8x128xf32>
    %596 = vector.extract_strided_slice %583 {offsets = [0, 256], sizes = [8, 128], strides = [1, 1]} : vector<8x512xf32> to vector<8x128xf32>
    %597 = math.tanh %596 : vector<8x128xf32>
    %598 = vector.extract_strided_slice %583 {offsets = [0, 384], sizes = [8, 128], strides = [1, 1]} : vector<8x512xf32> to vector<8x128xf32>
    %599 = arith.negf %598 : vector<8x128xf32>
    %600 = math.exp %599 : vector<8x128xf32>
    %cst_292 = arith.constant 1.000000e+00 : f32
    %601 = vector.broadcast %cst_292 : f32 to vector<8x128xf32>
    %602 = arith.addf %601, %600 : vector<8x128xf32>
    %603 = arith.divf %601, %602 : vector<8x128xf32>
    %604 = arith.mulf %595, %578 : vector<8x128xf32>
    %605 = arith.mulf %589, %597 : vector<8x128xf32>
    %606 = arith.addf %604, %605 : vector<8x128xf32>
    %607 = math.tanh %606 : vector<8x128xf32>
    %608 = arith.mulf %603, %607 : vector<8x128xf32>
    %c1_293 = arith.constant 1 : index
    %c0_294 = arith.constant 0 : index
    %c0_295 = arith.constant 0 : index
    %609 = vector.load %arg14[%c1_293, %c0_294, %c0_295] : memref<2x8x128xf32, #tpu.memory_space<vmem>>, vector<1x8x128xf32>
    %610 = vector.shape_cast %609 : vector<1x8x128xf32> to vector<8x128xf32>
    %611 = vector.shape_cast %606 : vector<8x128xf32> to vector<1x8x128xf32>
    tpu.vector_store %arg14[%c1_293, %c0_294, %c0_295], %611 {strides = array<i32>} : memref<2x8x128xf32, #tpu.memory_space<vmem>>, vector<1x8x128xf32>,
    %c1_296 = arith.constant 1 : index
    %c0_297 = arith.constant 0 : index
    %c0_298 = arith.constant 0 : index
    %612 = vector.load %arg13[%c1_296, %c0_297, %c0_298] : memref<2x8x128xf32, #tpu.memory_space<vmem>>, vector<1x8x128xf32>
    %613 = vector.shape_cast %612 : vector<1x8x128xf32> to vector<8x128xf32>
    %614 = vector.shape_cast %608 : vector<8x128xf32> to vector<1x8x128xf32>
    tpu.vector_store %arg13[%c1_296, %c0_297, %c0_298], %614 {strides = array<i32>} : memref<2x8x128xf32, #tpu.memory_space<vmem>>, vector<1x8x128xf32>,
    %c6_i32_299 = arith.constant 6 : i32
    %c1_300 = arith.constant 1 : index
    %c0_301 = arith.constant 0 : index
    %c0_302 = arith.constant 0 : index
    %615 = vector.load %arg13[%c1_300, %c0_301, %c0_302] : memref<2x8x128xf32, #tpu.memory_space<vmem>>, vector<1x8x128xf32>
    %616 = vector.shape_cast %615 : vector<1x8x128xf32> to vector<8x128xf32>
    %c1_303 = arith.constant 1 : index
    %c0_304 = arith.constant 0 : index
    %c0_305 = arith.constant 0 : index
    %617 = vector.load %arg14[%c1_303, %c0_304, %c0_305] : memref<2x8x128xf32, #tpu.memory_space<vmem>>, vector<1x8x128xf32>
    %618 = vector.shape_cast %617 : vector<1x8x128xf32> to vector<8x128xf32>
    %619 = arith.index_cast %c6_i32_299 : i32 to index
    %c0_306 = arith.constant 0 : index
    %c0_307 = arith.constant 0 : index
    %620 = vector.load %arg12[%619, %c0_306, %c0_307] : memref<8x8x512xf32, #tpu.memory_space<vmem>>, vector<1x8x512xf32>
    %621 = vector.shape_cast %620 : vector<1x8x512xf32> to vector<8x512xf32>
    %cst_308 = arith.constant dense<0.000000e+00> : vector<8x512xf32>
    %622 = tpu.matmul %616, %365, %cst_308 {dimension_numbers = #tpu.dot_dimension_numbers<[1], [0], [0], [1], [0, 0, 1, 1], [], []>} : vector<8x128xf32>, vector<128x512xf32>, vector<8x512xf32> -> vector<8x512xf32>
    %623 = arith.addf %621, %622 : vector<8x512xf32>
    %624 = vector.extract_strided_slice %623 {offsets = [0, 0], sizes = [8, 128], strides = [1, 1]} : vector<8x512xf32> to vector<8x128xf32>
    %625 = arith.negf %624 : vector<8x128xf32>
    %626 = math.exp %625 : vector<8x128xf32>
    %cst_309 = arith.constant 1.000000e+00 : f32
    %627 = vector.broadcast %cst_309 : f32 to vector<8x128xf32>
    %628 = arith.addf %627, %626 : vector<8x128xf32>
    %629 = arith.divf %627, %628 : vector<8x128xf32>
    %630 = vector.extract_strided_slice %623 {offsets = [0, 128], sizes = [8, 128], strides = [1, 1]} : vector<8x512xf32> to vector<8x128xf32>
    %631 = arith.negf %630 : vector<8x128xf32>
    %632 = math.exp %631 : vector<8x128xf32>
    %cst_310 = arith.constant 1.000000e+00 : f32
    %633 = vector.broadcast %cst_310 : f32 to vector<8x128xf32>
    %634 = arith.addf %633, %632 : vector<8x128xf32>
    %635 = arith.divf %633, %634 : vector<8x128xf32>
    %636 = vector.extract_strided_slice %623 {offsets = [0, 256], sizes = [8, 128], strides = [1, 1]} : vector<8x512xf32> to vector<8x128xf32>
    %637 = math.tanh %636 : vector<8x128xf32>
    %638 = vector.extract_strided_slice %623 {offsets = [0, 384], sizes = [8, 128], strides = [1, 1]} : vector<8x512xf32> to vector<8x128xf32>
    %639 = arith.negf %638 : vector<8x128xf32>
    %640 = math.exp %639 : vector<8x128xf32>
    %cst_311 = arith.constant 1.000000e+00 : f32
    %641 = vector.broadcast %cst_311 : f32 to vector<8x128xf32>
    %642 = arith.addf %641, %640 : vector<8x128xf32>
    %643 = arith.divf %641, %642 : vector<8x128xf32>
    %644 = arith.mulf %635, %618 : vector<8x128xf32>
    %645 = arith.mulf %629, %637 : vector<8x128xf32>
    %646 = arith.addf %644, %645 : vector<8x128xf32>
    %647 = math.tanh %646 : vector<8x128xf32>
    %648 = arith.mulf %643, %647 : vector<8x128xf32>
    %c1_312 = arith.constant 1 : index
    %c0_313 = arith.constant 0 : index
    %c0_314 = arith.constant 0 : index
    %649 = vector.load %arg14[%c1_312, %c0_313, %c0_314] : memref<2x8x128xf32, #tpu.memory_space<vmem>>, vector<1x8x128xf32>
    %650 = vector.shape_cast %649 : vector<1x8x128xf32> to vector<8x128xf32>
    %651 = vector.shape_cast %646 : vector<8x128xf32> to vector<1x8x128xf32>
    tpu.vector_store %arg14[%c1_312, %c0_313, %c0_314], %651 {strides = array<i32>} : memref<2x8x128xf32, #tpu.memory_space<vmem>>, vector<1x8x128xf32>,
    %c1_315 = arith.constant 1 : index
    %c0_316 = arith.constant 0 : index
    %c0_317 = arith.constant 0 : index
    %652 = vector.load %arg13[%c1_315, %c0_316, %c0_317] : memref<2x8x128xf32, #tpu.memory_space<vmem>>, vector<1x8x128xf32>
    %653 = vector.shape_cast %652 : vector<1x8x128xf32> to vector<8x128xf32>
    %654 = vector.shape_cast %648 : vector<8x128xf32> to vector<1x8x128xf32>
    tpu.vector_store %arg13[%c1_315, %c0_316, %c0_317], %654 {strides = array<i32>} : memref<2x8x128xf32, #tpu.memory_space<vmem>>, vector<1x8x128xf32>,
    %c7_i32_318 = arith.constant 7 : i32
    %c1_319 = arith.constant 1 : index
    %c0_320 = arith.constant 0 : index
    %c0_321 = arith.constant 0 : index
    %655 = vector.load %arg13[%c1_319, %c0_320, %c0_321] : memref<2x8x128xf32, #tpu.memory_space<vmem>>, vector<1x8x128xf32>
    %656 = vector.shape_cast %655 : vector<1x8x128xf32> to vector<8x128xf32>
    %c1_322 = arith.constant 1 : index
    %c0_323 = arith.constant 0 : index
    %c0_324 = arith.constant 0 : index
    %657 = vector.load %arg14[%c1_322, %c0_323, %c0_324] : memref<2x8x128xf32, #tpu.memory_space<vmem>>, vector<1x8x128xf32>
    %658 = vector.shape_cast %657 : vector<1x8x128xf32> to vector<8x128xf32>
    %659 = arith.index_cast %c7_i32_318 : i32 to index
    %c0_325 = arith.constant 0 : index
    %c0_326 = arith.constant 0 : index
    %660 = vector.load %arg12[%659, %c0_325, %c0_326] : memref<8x8x512xf32, #tpu.memory_space<vmem>>, vector<1x8x512xf32>
    %661 = vector.shape_cast %660 : vector<1x8x512xf32> to vector<8x512xf32>
    %cst_327 = arith.constant dense<0.000000e+00> : vector<8x512xf32>
    %662 = tpu.matmul %656, %365, %cst_327 {dimension_numbers = #tpu.dot_dimension_numbers<[1], [0], [0], [1], [0, 0, 1, 1], [], []>} : vector<8x128xf32>, vector<128x512xf32>, vector<8x512xf32> -> vector<8x512xf32>
    %663 = arith.addf %661, %662 : vector<8x512xf32>
    %664 = vector.extract_strided_slice %663 {offsets = [0, 0], sizes = [8, 128], strides = [1, 1]} : vector<8x512xf32> to vector<8x128xf32>
    %665 = arith.negf %664 : vector<8x128xf32>
    %666 = math.exp %665 : vector<8x128xf32>
    %cst_328 = arith.constant 1.000000e+00 : f32
    %667 = vector.broadcast %cst_328 : f32 to vector<8x128xf32>
    %668 = arith.addf %667, %666 : vector<8x128xf32>
    %669 = arith.divf %667, %668 : vector<8x128xf32>
    %670 = vector.extract_strided_slice %663 {offsets = [0, 128], sizes = [8, 128], strides = [1, 1]} : vector<8x512xf32> to vector<8x128xf32>
    %671 = arith.negf %670 : vector<8x128xf32>
    %672 = math.exp %671 : vector<8x128xf32>
    %cst_329 = arith.constant 1.000000e+00 : f32
    %673 = vector.broadcast %cst_329 : f32 to vector<8x128xf32>
    %674 = arith.addf %673, %672 : vector<8x128xf32>
    %675 = arith.divf %673, %674 : vector<8x128xf32>
    %676 = vector.extract_strided_slice %663 {offsets = [0, 256], sizes = [8, 128], strides = [1, 1]} : vector<8x512xf32> to vector<8x128xf32>
    %677 = math.tanh %676 : vector<8x128xf32>
    %678 = vector.extract_strided_slice %663 {offsets = [0, 384], sizes = [8, 128], strides = [1, 1]} : vector<8x512xf32> to vector<8x128xf32>
    %679 = arith.negf %678 : vector<8x128xf32>
    %680 = math.exp %679 : vector<8x128xf32>
    %cst_330 = arith.constant 1.000000e+00 : f32
    %681 = vector.broadcast %cst_330 : f32 to vector<8x128xf32>
    %682 = arith.addf %681, %680 : vector<8x128xf32>
    %683 = arith.divf %681, %682 : vector<8x128xf32>
    %684 = arith.mulf %675, %658 : vector<8x128xf32>
    %685 = arith.mulf %669, %677 : vector<8x128xf32>
    %686 = arith.addf %684, %685 : vector<8x128xf32>
    %687 = math.tanh %686 : vector<8x128xf32>
    %688 = arith.mulf %683, %687 : vector<8x128xf32>
    %c1_331 = arith.constant 1 : index
    %c0_332 = arith.constant 0 : index
    %c0_333 = arith.constant 0 : index
    %689 = vector.load %arg14[%c1_331, %c0_332, %c0_333] : memref<2x8x128xf32, #tpu.memory_space<vmem>>, vector<1x8x128xf32>
    %690 = vector.shape_cast %689 : vector<1x8x128xf32> to vector<8x128xf32>
    %691 = vector.shape_cast %686 : vector<8x128xf32> to vector<1x8x128xf32>
    tpu.vector_store %arg14[%c1_331, %c0_332, %c0_333], %691 {strides = array<i32>} : memref<2x8x128xf32, #tpu.memory_space<vmem>>, vector<1x8x128xf32>,
    %c1_334 = arith.constant 1 : index
    %c0_335 = arith.constant 0 : index
    %c0_336 = arith.constant 0 : index
    %692 = vector.load %arg13[%c1_334, %c0_335, %c0_336] : memref<2x8x128xf32, #tpu.memory_space<vmem>>, vector<1x8x128xf32>
    %693 = vector.shape_cast %692 : vector<1x8x128xf32> to vector<8x128xf32>
    %694 = vector.shape_cast %688 : vector<8x128xf32> to vector<1x8x128xf32>
    tpu.vector_store %arg13[%c1_334, %c0_335, %c0_336], %694 {strides = array<i32>} : memref<2x8x128xf32, #tpu.memory_space<vmem>>, vector<1x8x128xf32>,
    %c8_i32_337 = arith.constant 8 : i32
    %c0_i32_338 = arith.constant 0 : i32
    %695 = arith.cmpi eq, %arg0, %c0_i32_338 : i32
    %696 = arith.extui %695 : i1 to i32
    %c0_i32_339 = arith.constant 0 : i32
    %697 = arith.cmpi ne, %696, %c0_i32_339 : i32
    scf.if %697 {
      %c1_340 = arith.constant 1 : index
      %c0_341 = arith.constant 0 : index
      %c0_342 = arith.constant 0 : index
      %698 = vector.load %arg13[%c1_340, %c0_341, %c0_342] : memref<2x8x128xf32, #tpu.memory_space<vmem>>, vector<1x8x128xf32>
      %699 = vector.shape_cast %698 : vector<1x8x128xf32> to vector<8x128xf32>
      %c0_343 = arith.constant 0 : index
      %c0_344 = arith.constant 0 : index
      %700 = vector.load %arg8[%c0_343, %c0_344] : memref<128x128xf32, #tpu.memory_space<vmem>>, vector<128x128xf32>
      %cst_345 = arith.constant dense<0.000000e+00> : vector<8x128xf32>
      %701 = tpu.matmul %699, %700, %cst_345 {dimension_numbers = #tpu.dot_dimension_numbers<[1], [0], [0], [1], [0, 0, 1, 1], [], []>} : vector<8x128xf32>, vector<128x128xf32>, vector<8x128xf32> -> vector<8x128xf32>
      %c0_346 = arith.constant 0 : index
      %c0_347 = arith.constant 0 : index
      %702 = vector.load %arg9[%c0_346, %c0_347] : memref<1x128xf32, #tpu.memory_space<vmem>>, vector<1x128xf32>
      %703 = vector.broadcast %702 : vector<1x128xf32> to vector<8x128xf32>
      %704 = arith.addf %701, %703 : vector<8x128xf32>
      %c0_348 = arith.constant 0 : index
      %c0_349 = arith.constant 0 : index
      %705 = vector.load %arg10[%c0_348, %c0_349] : memref<8x128xf32, #tpu.memory_space<vmem>>, vector<8x128xf32>
      tpu.vector_store %arg10[%c0_348, %c0_349], %704 {strides = array<i32>} : memref<8x128xf32, #tpu.memory_space<vmem>>, vector<8x128xf32>,
    } else {
    }
    return
  }
  func.func @transform_0(%arg0: i32) -> (i32, i32, i32) {
    %c0_i32 = arith.constant 0 : i32
    %c0_i32_0 = arith.constant 0 : i32
    %c0_i32_1 = arith.constant 0 : i32
    return %arg0, %c0_i32, %c0_i32_0 : i32, i32, i32
  }
  func.func @transform_1(%arg0: i32) -> (i32, i32) {
    %c0_i32 = arith.constant 0 : i32
    %c0_i32_0 = arith.constant 0 : i32
    %c0_i32_1 = arith.constant 0 : i32
    return %c0_i32, %c0_i32_0 : i32, i32
  }
  func.func @transform_2(%arg0: i32) -> (i32, i32) {
    %c0_i32 = arith.constant 0 : i32
    %c0_i32_0 = arith.constant 0 : i32
    %c0_i32_1 = arith.constant 0 : i32
    return %c0_i32, %c0_i32_0 : i32, i32
  }
  func.func @transform_3(%arg0: i32) -> (i32, i32) {
    %c0_i32 = arith.constant 0 : i32
    %c0_i32_0 = arith.constant 0 : i32
    %c0_i32_1 = arith.constant 0 : i32
    return %c0_i32, %c0_i32_0 : i32, i32
  }
  func.func @transform_4(%arg0: i32) -> (i32, i32) {
    %c0_i32 = arith.constant 0 : i32
    %c0_i32_0 = arith.constant 0 : i32
    %c0_i32_1 = arith.constant 0 : i32
    return %c0_i32, %c0_i32_0 : i32, i32
  }
  func.func @transform_5(%arg0: i32) -> (i32, i32) {
    %c0_i32 = arith.constant 0 : i32
    %c0_i32_0 = arith.constant 0 : i32
    %c0_i32_1 = arith.constant 0 : i32
    return %c0_i32, %c0_i32_0 : i32, i32
  }
  func.func @transform_6(%arg0: i32) -> (i32, i32) {
    %c0_i32 = arith.constant 0 : i32
    %c0_i32_0 = arith.constant 0 : i32
    %c0_i32_1 = arith.constant 0 : i32
    return %c0_i32, %c0_i32_0 : i32, i32
  }
  func.func @transform_7(%arg0: i32) -> (i32, i32) {
    %c0_i32 = arith.constant 0 : i32
    %c0_i32_0 = arith.constant 0 : i32
    %c0_i32_1 = arith.constant 0 : i32
    return %c0_i32, %c0_i32_0 : i32, i32
  }
  func.func @transform_8(%arg0: i32) -> (i32, i32) {
    %c0_i32 = arith.constant 0 : i32
    %c0_i32_0 = arith.constant 0 : i32
    %c0_i32_1 = arith.constant 0 : i32
    return %c0_i32, %c0_i32_0 : i32, i32
  }
  func.func @transform_9(%arg0: i32) -> (i32, i32) {
    %c0_i32 = arith.constant 0 : i32
    %c0_i32_0 = arith.constant 0 : i32
    %c0_i32_1 = arith.constant 0 : i32
    return %c0_i32, %c0_i32_0 : i32, i32
  }
}

</mosaic_0001>

<bundles_post_ra>
// kernel: tpu_custom_call.1
= control target key start
LH: loop header
LB: loop body
LE: loop exit
PB: predicated region body
PF: predicated region fallthrough
CT: control target
= control target key end

     0   :  { %14 = vsyncpa [#allocation7], 0  ;;  %s6866_s0 = inlined_call_operand.hbm [shape: f32[8,8,128], index: 0, kind: input, shape index: {}]   ;;  %s6867_s1 = inlined_call_operand.hbm [shape: f32[128,512], index: 1, kind: input, shape index: {}]   ;;  %s6868_s2 = inlined_call_operand.hbm [shape: f32[128,512], index: 2, kind: input, shape index: {}]   ;;  %s6869_s3 = inlined_call_operand.hbm [shape: f32[128,512], index: 3, kind: input, shape index: {}]   ;;  %s6870_s4 = inlined_call_operand.hbm [shape: f32[128,512], index: 4, kind: input, shape index: {}]   ;;  %s6871_s5 = inlined_call_operand.vmem [shape: f32[1,512], index: 5, kind: input, shape index: {}]   ;;  %s6872_s6 = inlined_call_operand.vmem [shape: f32[1,512], index: 6, kind: input, shape index: {}]   ;;  %s6873_s7 = inlined_call_operand.hbm [shape: f32[128,128], index: 7, kind: input, shape index: {}]   ;;  %s6874_s8 = inlined_call_operand.vmem [shape: f32[1,128], index: 8, kind: input, shape index: {}]   ;;  %s6875_s9 = inlined_call_operand.hbm [shape: f32[8,128], index: 9, kind: output, shape index: {}]  }
   0x1   :  { %15 = vsyncpa [#allocation10], 0 }
   0x2   :  { %16 = vsyncpa [#allocation13], 0 }
   0x3   :  { %17 = vsyncpa [#allocation16], 0 }
   0x4   :  { %18 = vsyncpa [#allocation8], 0  ;;  %s5782_s30 = smov [#allocation9]   ;;  %s5618_s13 = scalar_lea.hbm %s6867_s1, 8192 }
   0x5   :  { %s36_s10 = sshll.u32 %s5782_s30, 4  ;;  %p5619_p0 = scmp.ne.s32.totalorder %s6867_s1, %s5618_s13  ;;  %s37_s10 = int_to_ptr.vmem [resolvable:$true] %s36_s10 }
   0x6   :  { %p5622_p1 = scmp.lt.u32.totalorder %s5618_s13, %s6867_s1 }
   0x8   :  { %p5624_p2 = pnand %p5622_p1, %p5619_p0 }
   0xa   :  { %5627 = shalt.err (!%p5624_p2)
}
   0xb   :  { %s5628_s18 = scalar_lea.vmem %s37_s10, 8192  ;;  %p5633_p4 = scmp.lt.s32.totalorder %s37_s10, %s37_s10 }
   0xc   :  { %p5629_p3 = scmp.ne.s32.totalorder %s37_s10, %s5628_s18  ;;  %p5634_p5 = scmp.lt.s32.totalorder %s5628_s18, %s5628_s18 }
   0xe   :  { %p5635_p6 = por %p5634_p5, %p5633_p4 }
  0x10   :  { %p5636_p7 = pnand %p5635_p6, %p5629_p3 }
  0x12   :  { %5639 = shalt.err (!%p5636_p7)
}
  0x13   :  { %s5783_s19 = smov 512   ;;  %s5784_s20 = smov 32  }
  0x14   :  { %42 = dma.hbm_to_vmem [thread:$0]  %s6867_s1, 8192, %s37_s10, [#allocation10], %s5783_s19, %s5783_s19, %s5784_s20  }
  0x15   :  { %s5785_s23 = smov [#allocation12]   ;;  %s5786_s25 = smov [#allocation6]  }
  0x16   :  { %s60_s24 = sshll.u32 %s5785_s23, 4  ;;  %s24_s26 = sshll.u32 %s5786_s25, 4  ;;  %s61_s24 = int_to_ptr.vmem [resolvable:$true] %s60_s24  ;;  %s25_s26 = int_to_ptr.vmem [resolvable:$true] %s24_s26 }
  0x17   :  { %s5640_s29 = scalar_lea.hbm %s6869_s3, 8192 }
  0x18   :  { %p5641_p8 = scmp.ne.s32.totalorder %s6869_s3, %s5640_s29  ;;  %p5644_p9 = scmp.lt.u32.totalorder %s5640_s29, %s6869_s3 }
  0x1a   :  { %p5646_p10 = pnand %p5644_p9, %p5641_p8 }
  0x1c   :  { %5649 = shalt.err (!%p5646_p10)
}
  0x1d   :  { %s5650_s1 = scalar_lea.vmem %s61_s24, 8192  ;;  %p5655_p12 = scmp.lt.s32.totalorder %s61_s24, %s61_s24 }
  0x1e   :  { %p5651_p11 = scmp.ne.s32.totalorder %s61_s24, %s5650_s1  ;;  %p5656_p13 = scmp.lt.s32.totalorder %s5650_s1, %s5650_s1 }
  0x20   :  { %p5657_p0 = por %p5656_p13, %p5655_p12 }
  0x22   :  { %p5658_p1 = pnand %p5657_p0, %p5651_p11 }
  0x24   :  { %5661 = shalt.err (!%p5658_p1)
}
  0x25   :  { %66 = dma.hbm_to_vmem [thread:$0]  %s6869_s3, 8192, %s61_s24, [#allocation13], %s5783_s19, %s5783_s19, %s5784_s20  }
  0x26   :  { %s5662_s17 = scalar_lea.hbm %s6866_s0, 1024 }
  0x27   :  { %p5663_p2 = scmp.ne.s32.totalorder %s6866_s0, %s5662_s17  ;;  %p5666_p3 = scmp.lt.u32.totalorder %s5662_s17, %s6866_s0 }
  0x29   :  { %p5668_p4 = pnand %p5666_p3, %p5663_p2 }
  0x2b   :  { %5671 = shalt.err (!%p5668_p4)
}
  0x2c   :  { %s5672_s25 = scalar_lea.vmem %s25_s26, 1024  ;;  %p5677_p6 = scmp.lt.s32.totalorder %s25_s26, %s25_s26 }
  0x2d   :  { %p5673_p5 = scmp.ne.s32.totalorder %s25_s26, %s5672_s25  ;;  %p5678_p7 = scmp.lt.s32.totalorder %s5672_s25, %s5672_s25 }
  0x2f   :  { %p5679_p8 = por %p5678_p7, %p5677_p6 }
  0x31   :  { %p5680_p9 = pnand %p5679_p8, %p5673_p5 }
  0x33   :  { %5683 = shalt.err (!%p5680_p9)
}
  0x34   :  { %s5787_s3 = smov 128   ;;  %s5788_s24 = smov 8  }
  0x35   :  { %30 = dma.hbm_to_vmem [thread:$0]  %s6866_s0, 1024, %s25_s26, [#allocation7], %s5787_s3, %s5787_s3, %s5788_s24  }
  0x36   :  { %s5789_s29 = smov [#allocation11]   ;;  %s5790_s11 = smov [#allocation14]  }
  0x37   :  { %s48_s30 = sshll.u32 %s5789_s29, 4  ;;  %s72_s12 = sshll.u32 %s5790_s11, 4  ;;  %s49_s30 = int_to_ptr.vmem [resolvable:$true] %s48_s30  ;;  %s73_s12 = int_to_ptr.vmem [resolvable:$true] %s72_s12 }
  0x38   :  { %s5684_s10 = scalar_lea.hbm %s6868_s2, 8192 }
  0x39   :  { %p5685_p10 = scmp.ne.s32.totalorder %s6868_s2, %s5684_s10  ;;  %p5688_p11 = scmp.lt.u32.totalorder %s5684_s10, %s6868_s2 }
  0x3b   :  { %p5690_p12 = pnand %p5688_p11, %p5685_p10 }
  0x3d   :  { %5693 = shalt.err (!%p5690_p12)
}
  0x3e   :  { %s5694_s0 = scalar_lea.vmem %s49_s30, 8192  ;;  %p5699_p0 = scmp.lt.s32.totalorder %s49_s30, %s49_s30 }
  0x3f   :  { %p5695_p13 = scmp.ne.s32.totalorder %s49_s30, %s5694_s0  ;;  %p5700_p1 = scmp.lt.s32.totalorder %s5694_s0, %s5694_s0 }
  0x41   :  { %p5701_p2 = por %p5700_p1, %p5699_p0 }
  0x43   :  { %p5702_p3 = pnand %p5701_p2, %p5695_p13 }
  0x45   :  { %5705 = shalt.err (!%p5702_p3)
}
  0x46   :  { %54 = dma.hbm_to_vmem [thread:$0]  %s6868_s2, 8192, %s49_s30, [#allocation10], %s5783_s19, %s5783_s19, %s5784_s20  }
  0x47   :  { %s5706_s23 = scalar_lea.hbm %s6870_s4, 8192 }
  0x48   :  { %p5707_p4 = scmp.ne.s32.totalorder %s6870_s4, %s5706_s23  ;;  %p5710_p5 = scmp.lt.u32.totalorder %s5706_s23, %s6870_s4 }
  0x4a   :  { %p5712_p6 = pnand %p5710_p5, %p5707_p4 }
  0x4c   :  { %5715 = shalt.err (!%p5712_p6)
}
  0x4d   :  { %s5716_s11 = scalar_lea.vmem %s73_s12, 8192  ;;  %p5721_p8 = scmp.lt.s32.totalorder %s73_s12, %s73_s12 }
  0x4e   :  { %p5717_p7 = scmp.ne.s32.totalorder %s73_s12, %s5716_s11  ;;  %p5722_p9 = scmp.lt.s32.totalorder %s5716_s11, %s5716_s11 }
  0x50   :  { %p5723_p10 = por %p5722_p9, %p5721_p8 }
  0x52   :  { %p5724_p11 = pnand %p5723_p10, %p5717_p7 }
  0x54   :  { %5727 = shalt.err (!%p5724_p11)
}
  0x55   :  { %78 = dma.hbm_to_vmem [thread:$0]  %s6870_s4, 8192, %s73_s12, [#allocation13], %s5783_s19, %s5783_s19, %s5784_s20  }
  0x56   :  { %s5791_s13 = smov [#allocation15]   ;;  %s5728_s15 = scalar_lea.hbm %s6873_s7, 2048 }
  0x57   :  { %s88_s1 = sshll.u32 %s5791_s13, 4  ;;  %p5729_p12 = scmp.ne.s32.totalorder %s6873_s7, %s5728_s15  ;;  %s89_s1 = int_to_ptr.vmem [resolvable:$true] %s88_s1 }
  0x58   :  { %p5732_p13 = scmp.lt.u32.totalorder %s5728_s15, %s6873_s7 }
  0x5a   :  { %p5734_p0 = pnand %p5732_p13, %p5729_p12 }
  0x5c   :  { %5737 = shalt.err (!%p5734_p0)
}
  0x5d   :  { %s5738_s18 = scalar_lea.vmem %s89_s1, 2048  ;;  %p5743_p2 = scmp.lt.s32.totalorder %s89_s1, %s89_s1 }
  0x5e   :  { %p5739_p1 = scmp.ne.s32.totalorder %s89_s1, %s5738_s18  ;;  %p5744_p3 = scmp.lt.s32.totalorder %s5738_s18, %s5738_s18 }
  0x60   :  { %p5745_p4 = por %p5744_p3, %p5743_p2 }
  0x62   :  { %p5746_p5 = pnand %p5745_p4, %p5739_p1 }
  0x64   :  { %5749 = shalt.err (!%p5746_p5)
}
  0x65   :  { %94 = dma.hbm_to_vmem [thread:$0]  %s6873_s7, 2048, %s89_s1, [#allocation16], %s5787_s3, %s5787_s3, %s5788_s24  }
  0x66   :  { %5772 = dma.done.wait [#allocation7], 1024  }
  0x67   :  { %5773 = vsyncadd [#allocation7], 4294966272 }
  0x68   :  { %5774 = dma.done.wait [#allocation10], 16384  }
  0x69   :  { %5775 = vsyncadd [#allocation10], 4294950912 }
  0x6a   :  { %5776 = dma.done.wait [#allocation13], 16384  }
  0x6b   :  { %5777 = vsyncadd [#allocation13], 4294950912 }
  0x6c   :  { %5778 = dma.done.wait [#allocation16], 2048  }
  0x6d   :  { %5779 = vsyncadd [#allocation16], 4294965248  ;;  %v5792_v0 = vmov 0.0   ;;  %v197_v1 = vld [vmem:[#allocation9 + $0x8] sm:$0xff]  ;;  %v199_v3 = vld [vmem:[#allocation9 + $0x18] sm:$0xff]  ;;  %vm5794_vm0 = vmmov 0  }
  0x6e   :  { %345 = vmatprep.mubr.f32.mxu0 %v5792_v0  ;;  %458 = vmatprep.mubr.f32.mxu1 %v5792_v0  ;;  %v201_v2 = vld [vmem:[#allocation9 + $0x28] sm:$0xff]  ;;  %v203_v5 = vld [vmem:[#allocation9 + $0x38] sm:$0xff]  ;;  %v196_v6 = vld [vmem:[#allocation9] sm:$0xff]  ;;  %s5795_s12 = smov [#allocation17]  }
  0x6f   :  { %v4044_v4 = vpack.c.bf16 %v201_v2, %v197_v1  ;;  %v200_v7 = vld [vmem:[#allocation9 + $0x20] sm:$0xff]  ;;  %v4076_v8 = vpack.c.bf16 %v203_v5, %v199_v3  ;;  %v198_v10 = vld [vmem:[#allocation9 + $0x10] sm:$0xff]  ;;  %v205_v12 = vld [vmem:[#allocation9 + $0x48] sm:$0xff]  ;;  %s3931_s21 = sshll.u32 %s5795_s12, 4  ;;  %s3932_s21 = int_to_ptr.vmem [resolvable:$true] %s3931_s21 }
  0x70   :  { %v4046_v9 = vpack.c.bf16 %v200_v7, %v196_v6  ;;  %v202_v11 = vld [vmem:[#allocation9 + $0x30] sm:$0xff]  ;;  %v209_v14 = vld [vmem:[#allocation9 + $0x68] sm:$0xff]  ;;  %v207_v15 = vld [vmem:[#allocation9 + $0x58] sm:$0xff]  ;;  %s5750_s22 = scalar_lea.vmem %s3932_s21, 128  ;;  %p5755_p7 = scmp.lt.s32.totalorder %s3932_s21, %s3932_s21 }
  0x71   :  { %4045 = vmatprep.subr.bf16.mxu0 %v4044_v4  ;;  %v4078_v13 = vpack.c.bf16 %v202_v11, %v198_v10  ;;  %v211_v16 = vld [vmem:[#allocation9 + $0x78] sm:$0xff]  ;;  %4077 = vmatprep.subr.bf16.mxu1 %v4076_v8  ;;  %v4048_v17 = vpack.c.bf16 %v209_v14, %v205_v12  ;;  %v204_v19 = vld [vmem:[#allocation9 + $0x40] sm:$0xff]  ;;  %v206_v21 = vld [vmem:[#allocation9 + $0x50] sm:$0xff]  ;;  %p5751_p6 = scmp.ne.s32.totalorder %s3932_s21, %s5750_s22  ;;  %p5756_p8 = scmp.lt.s32.totalorder %s5750_s22, %s5750_s22 }
  0x72   :  { %4047 = vmatpush1.bf16.msra.mxu0 %v4046_v9  ;;  %v4080_v18 = vpack.c.bf16 %v211_v16, %v207_v15  ;;  %v208_v20 = vld [vmem:[#allocation9 + $0x60] sm:$0xff]  ;;  %v210_v23 = vld [vmem:[#allocation9 + $0x70] sm:$0xff]  ;;  %v213_v24 = vld [vmem:[#allocation9 + $0x88] sm:$0xff] }
  0x73   :  { %4079 = vmatpush1.bf16.msra.mxu1 %v4078_v13  ;;  %v4050_v22 = vpack.c.bf16 %v208_v20, %v204_v19  ;;  %v217_v25 = vld [vmem:[#allocation9 + $0xa8] sm:$0xff]  ;;  %4049 = vmatprep.subr.bf16.mxu0 %v4048_v17  ;;  %v4082_v26 = vpack.c.bf16 %v210_v23, %v206_v21  ;;  %v215_v28 = vld [vmem:[#allocation9 + $0x98] sm:$0xff]  ;;  %v212_v30 = vld [vmem:[#allocation9 + $0x80] sm:$0xff]  ;;  %p5757_p9 = por %p5756_p8, %p5755_p7 }
  0x74   :  { %4081 = vmatprep.subr.bf16.mxu1 %v4080_v18  ;;  %v4052_v27 = vpack.c.bf16 %v217_v25, %v213_v24  ;;  %v219_v29 = vld [vmem:[#allocation9 + $0xb8] sm:$0xff]  ;;  %v216_v32 = vld [vmem:[#allocation9 + $0xa0] sm:$0xff]  ;;  %v214_v33 = vld [vmem:[#allocation9 + $0x90] sm:$0xff] }
  0x75   :  { %v4084_v31 = vpack.c.bf16 %v219_v29, %v215_v28  ;;  %v218_v34 = vld [vmem:[#allocation9 + $0xb0] sm:$0xff]  ;;  %v4054_v35 = vpack.c.bf16 %v216_v32, %v212_v30  ;;  %v221_v36 = vld [vmem:[#allocation9 + $0xc8] sm:$0xff]  ;;  %v223_v38 = vld [vmem:[#allocation9 + $0xd8] sm:$0xff]  ;;  %p5758_p10 = pnand %p5757_p9, %p5751_p6 }
  0x76   :  { %4051 = vmatpush1.bf16.msra.mxu0 %v4050_v22  ;;  %v225_v37 = vld [vmem:[#allocation9 + $0xe8] sm:$0xff]  ;;  %v4086_v39 = vpack.c.bf16 %v218_v34, %v214_v33  ;;  %v227_v41 = vld [vmem:[#allocation9 + $0xf8] sm:$0xff]  ;;  %v220_v42 = vld [vmem:[#allocation9 + $0xc0] sm:$0xff] }
  0x77   :  { %4083 = vmatpush1.bf16.msra.mxu1 %v4082_v26  ;;  %4053 = vmatprep.subr.bf16.mxu0 %v4052_v27  ;;  %v4056_v40 = vpack.c.bf16 %v225_v37, %v221_v36  ;;  %v224_v43 = vld [vmem:[#allocation9 + $0xe0] sm:$0xff]  ;;  %v4088_v44 = vpack.c.bf16 %v227_v41, %v223_v38  ;;  %v222_v45 = vld [vmem:[#allocation9 + $0xd0] sm:$0xff]  ;;  %v229_v47 = vld [vmem:[#allocation9 + $0x108] sm:$0xff] }
  0x78   :  { %4085 = vmatprep.subr.bf16.mxu1 %v4084_v31  ;;  %v226_v46 = vld [vmem:[#allocation9 + $0xf0] sm:$0xff]  ;;  %v233_v48 = vld [vmem:[#allocation9 + $0x128] sm:$0xff]  ;;  %v231_v49 = vld [vmem:[#allocation9 + $0x118] sm:$0xff]  ;;  %v4058_v51 = vpack.c.bf16 %v224_v43, %v220_v42 }
  0x79   :  { %v235_v50 = vld [vmem:[#allocation9 + $0x138] sm:$0xff]  ;;  %v4090_v52 = vpack.c.bf16 %v226_v46, %v222_v45  ;;  %v4060_v53 = vpack.c.bf16 %v233_v48, %v229_v47  ;;  %v228_v54 = vld [vmem:[#allocation9 + $0x100] sm:$0xff]  ;;  %v230_v56 = vld [vmem:[#allocation9 + $0x110] sm:$0xff] }
  0x7a   :  { %4055 = vmatpush1.bf16.msra.mxu0 %v4054_v35  ;;  %v232_v55 = vld [vmem:[#allocation9 + $0x120] sm:$0xff]  ;;  %v4092_v57 = vpack.c.bf16 %v235_v50, %v231_v49  ;;  %v234_v58 = vld [vmem:[#allocation9 + $0x130] sm:$0xff]  ;;  %v237_v59 = vld [vmem:[#allocation9 + $0x148] sm:$0xff] }
  0x7b   :  { %4087 = vmatpush1.bf16.msra.mxu1 %v4086_v39  ;;  %4057 = vmatprep.subr.bf16.mxu0 %v4056_v40  ;;  %v241_v60 = vld [vmem:[#allocation9 + $0x168] sm:$0xff]  ;;  %v239_v61 = vld [vmem:[#allocation9 + $0x158] sm:$0xff]  ;;  %v4062_v63 = vpack.c.bf16 %v232_v55, %v228_v54  ;;  %v4094_v1 = vpack.c.bf16 %v234_v58, %v230_v56  ;;  %v236_v3 = vld [vmem:[#allocation9 + $0x140] sm:$0xff] }
  0x7c   :  { %4089 = vmatprep.subr.bf16.mxu1 %v4088_v44  ;;  %v243_v62 = vld [vmem:[#allocation9 + $0x178] sm:$0xff]  ;;  %v4064_v2 = vpack.c.bf16 %v241_v60, %v237_v59  ;;  %v240_v4 = vld [vmem:[#allocation9 + $0x160] sm:$0xff]  ;;  %v238_v5 = vld [vmem:[#allocation9 + $0x150] sm:$0xff] }
  0x7d   :  { %v4096_v6 = vpack.c.bf16 %v243_v62, %v239_v61  ;;  %v242_v7 = vld [vmem:[#allocation9 + $0x170] sm:$0xff]  ;;  %v245_v8 = vld [vmem:[#allocation9 + $0x188] sm:$0xff]  ;;  %v247_v10 = vld [vmem:[#allocation9 + $0x198] sm:$0xff]  ;;  %v4066_v12 = vpack.c.bf16 %v240_v4, %v236_v3 }
  0x7e   :  { %4059 = vmatpush1.bf16.msra.mxu0 %v4058_v51  ;;  %v249_v9 = vld [vmem:[#allocation9 + $0x1a8] sm:$0xff]  ;;  %v251_v11 = vld [vmem:[#allocation9 + $0x1b8] sm:$0xff]  ;;  %v4098_v13 = vpack.c.bf16 %v242_v7, %v238_v5  ;;  %v244_v15 = vld [vmem:[#allocation9 + $0x180] sm:$0xff] }
  0x7f   :  { %4091 = vmatpush1.bf16.msra.mxu1 %v4090_v52  ;;  %4061 = vmatprep.subr.bf16.mxu0 %v4060_v53  ;;  %v4068_v14 = vpack.c.bf16 %v249_v9, %v245_v8  ;;  %v248_v16 = vld [vmem:[#allocation9 + $0x1a0] sm:$0xff]  ;;  %v246_v17 = vld [vmem:[#allocation9 + $0x190] sm:$0xff]  ;;  %v4100_v18 = vpack.c.bf16 %v251_v11, %v247_v10  ;;  %v253_v20 = vld [vmem:[#allocation9 + $0x1c8] sm:$0xff] }
  0x80   :  { %4093 = vmatprep.subr.bf16.mxu1 %v4092_v57  ;;  %v250_v19 = vld [vmem:[#allocation9 + $0x1b0] sm:$0xff]  ;;  %v257_v21 = vld [vmem:[#allocation9 + $0x1e8] sm:$0xff]  ;;  %v255_v22 = vld [vmem:[#allocation9 + $0x1d8] sm:$0xff]  ;;  %v4070_v24 = vpack.c.bf16 %v248_v16, %v244_v15 }
  0x81   :  { %v259_v23 = vld [vmem:[#allocation9 + $0x1f8] sm:$0xff]  ;;  %v4102_v25 = vpack.c.bf16 %v250_v19, %v246_v17  ;;  %v4072_v26 = vpack.c.bf16 %v257_v21, %v253_v20  ;;  %v252_v27 = vld [vmem:[#allocation9 + $0x1c0] sm:$0xff]  ;;  %v254_v29 = vld [vmem:[#allocation9 + $0x1d0] sm:$0xff] }
  0x82   :  { %4063 = vmatpush1.bf16.msra.mxu0 %v4062_v63  ;;  %v256_v28 = vld [vmem:[#allocation9 + $0x1e0] sm:$0xff]  ;;  %v4104_v30 = vpack.c.bf16 %v259_v23, %v255_v22  ;;  %v258_v31 = vld [vmem:[#allocation9 + $0x1f0] sm:$0xff]  ;;  %v124_v32 = vld [vmem:[#allocation12 + $0x8] sm:$0xff] }
  0x83   :  { %4095 = vmatpush1.bf16.msra.mxu1 %v4094_v1  ;;  %4065 = vmatprep.subr.bf16.mxu0 %v4064_v2  ;;  %v128_v33 = vld [vmem:[#allocation12 + $0x28] sm:$0xff]  ;;  %v126_v34 = vld [vmem:[#allocation12 + $0x18] sm:$0xff]  ;;  %v4074_v36 = vpack.c.bf16 %v256_v28, %v252_v27  ;;  %v4106_v37 = vpack.c.bf16 %v258_v31, %v254_v29  ;;  %v123_v39 = vld [vmem:[#allocation12] sm:$0xff] }
  0x84   :  { %4097 = vmatprep.subr.bf16.mxu1 %v4096_v6  ;;  %v130_v35 = vld [vmem:[#allocation12 + $0x38] sm:$0xff]  ;;  %v5938_v38 = vpack.c.bf16 %v128_v33, %v124_v32  ;;  %v127_v40 = vld [vmem:[#allocation12 + $0x20] sm:$0xff]  ;;  %v125_v42 = vld [vmem:[#allocation12 + $0x10] sm:$0xff] }
  0x85   :  { %v5940_v41 = vpack.c.bf16 %v130_v35, %v126_v34  ;;  %v129_v43 = vld [vmem:[#allocation12 + $0x30] sm:$0xff]  ;;  %v132_v44 = vld [vmem:[#allocation12 + $0x48] sm:$0xff]  ;;  %v188_v46 = vld [vmem:[#allocation6] sm:$0xff]  ;;  %v5942_v47 = vpack.c.bf16 %v127_v40, %v123_v39 }
  0x86   :  { %4067 = vmatpush1.bf16.msra.mxu0 %v4066_v12  ;;  %v136_v45 = vld [vmem:[#allocation12 + $0x68] sm:$0xff]  ;;  %v134_v48 = vld [vmem:[#allocation12 + $0x58] sm:$0xff]  ;;  %v5945_v50 = vpack.c.bf16 %v129_v43, %v125_v42  ;;  %v131_v51 = vld [vmem:[#allocation12 + $0x40] sm:$0xff] }
  0x87   :  { %4099 = vmatpush1.bf16.msra.mxu1 %v4098_v13  ;;  %4069 = vmatprep.subr.bf16.mxu0 %v4068_v14  ;;  %v138_v49 = vld [vmem:[#allocation12 + $0x78] sm:$0xff]  ;;  %v135_v52 = vld [vmem:[#allocation12 + $0x60] sm:$0xff]  ;;  %v5948_v53 = vpack.c.bf16 %v136_v45, %v132_v44  ;;  %v133_v54 = vld [vmem:[#allocation12 + $0x50] sm:$0xff] }
  0x88   :  { %4101 = vmatprep.subr.bf16.mxu1 %v4100_v18  ;;  %v137_v55 = vld [vmem:[#allocation12 + $0x70] sm:$0xff]  ;;  %v5950_v56 = vpack.c.bf16 %v138_v49, %v134_v48  ;;  %v140_v57 = vld [vmem:[#allocation12 + $0x88] sm:$0xff]  ;;  %v5953_v60 = vpack.c.bf16 %v135_v52, %v131_v51  ;;  %v142_v61 = vld [vmem:[#allocation12 + $0x98] sm:$0xff] }
  0x89   :  { %v144_v58 = vld [vmem:[#allocation12 + $0xa8] sm:$0xff]  ;;  %v146_v62 = vld [vmem:[#allocation12 + $0xb8] sm:$0xff]  ;;  %v5957_v63 = vpack.c.bf16 %v137_v55, %v133_v54  ;;  %v139_v1 = vld [vmem:[#allocation12 + $0x80] sm:$0xff] }
  0x8a   :  { %4071 = vmatpush1.bf16.msra.mxu0 %v4070_v24  ;;  %v189_v59 = vld [vmem:[#allocation6 + $0x8] sm:$0xff]  ;;  %v143_v2 = vld [vmem:[#allocation12 + $0xa0] sm:$0xff]  ;;  %v5961_v3 = vpack.c.bf16 %v144_v58, %v140_v57  ;;  %v141_v4 = vld [vmem:[#allocation12 + $0x90] sm:$0xff]  ;;  %v5964_v6 = vpack.c.bf16 %v146_v62, %v142_v61 }
  0x8b   :  { %4103 = vmatpush1.bf16.msra.mxu1 %v4102_v25  ;;  %4073 = vmatprep.subr.bf16.mxu0 %v4072_v26  ;;  %v145_v5 = vld [vmem:[#allocation12 + $0xb0] sm:$0xff]  ;;  %v148_v7 = vld [vmem:[#allocation12 + $0xc8] sm:$0xff]  ;;  %v5967_v10 = vpack.c.bf16 %v143_v2, %v139_v1  ;;  %v150_v11 = vld [vmem:[#allocation12 + $0xd8] sm:$0xff] }
  0x8c   :  { %4105 = vmatprep.subr.bf16.mxu1 %v4104_v30  ;;  %v152_v8 = vld [vmem:[#allocation12 + $0xe8] sm:$0xff]  ;;  %v190_v9 = vld [vmem:[#allocation6 + $0x10] sm:$0xff]  ;;  %v154_v12 = vld [vmem:[#allocation12 + $0xf8] sm:$0xff]  ;;  %v5971_v13 = vpack.c.bf16 %v145_v5, %v141_v4 }
  0x8d   :  { %v147_v14 = vld [vmem:[#allocation12 + $0xc0] sm:$0xff]  ;;  %v5975_v16 = vpack.c.bf16 %v152_v8, %v148_v7  ;;  %v149_v17 = vld [vmem:[#allocation12 + $0xd0] sm:$0xff]  ;;  %v5978_v19 = vpack.c.bf16 %v154_v12, %v150_v11  ;;  %v156_v20 = vld [vmem:[#allocation12 + $0x108] sm:$0xff] }
  0x8e   :  { %4075 = vmatpush1.bf16.msra.mxu0 %v4074_v36  ;;  %v151_v15 = vld [vmem:[#allocation12 + $0xe0] sm:$0xff]  ;;  %v153_v18 = vld [vmem:[#allocation12 + $0xf0] sm:$0xff]  ;;  %v160_v21 = vld [vmem:[#allocation12 + $0x128] sm:$0xff] }
  0x8f   :  { %4107 = vmatpush1.bf16.msra.mxu1 %v4106_v37  ;;  %4109 = vmatprep.subr.bf16.mxu0 %v5938_v38  ;;  %v191_v22 = vld [vmem:[#allocation6 + $0x18] sm:$0xff]  ;;  %v5981_v23 = vpack.c.bf16 %v151_v15, %v147_v14  ;;  %v5985_v26 = vpack.c.bf16 %v153_v18, %v149_v17  ;;  %v155_v27 = vld [vmem:[#allocation12 + $0x100] sm:$0xff]  ;;  %v5989_v29 = vpack.c.bf16 %v160_v21, %v156_v20  ;;  %v157_v30 = vld [vmem:[#allocation12 + $0x110] sm:$0xff] }
  0x90   :  { %4141 = vmatprep.subr.bf16.mxu1 %v5940_v41  ;;  %v158_v24 = vld [vmem:[#allocation12 + $0x118] sm:$0xff]  ;;  %v159_v28 = vld [vmem:[#allocation12 + $0x120] sm:$0xff]  ;;  %v161_v31 = vld [vmem:[#allocation12 + $0x130] sm:$0xff] }
  0x91   :  { %346 = vmatmul.mubr.f32.vlgmr.msra.gmra.mrb[0].mxu0 %v188_v46  ;;  %v162_v25 = vld [vmem:[#allocation12 + $0x138] sm:$0xff]  ;;  %v164_v33 = vld [vmem:[#allocation12 + $0x148] sm:$0xff]  ;;  %v192_v35 = vld [vmem:[#allocation6 + $0x20] sm:$0xff]  ;;  %v5995_v36 = vpack.c.bf16 %v159_v28, %v155_v27  ;;  %v5999_v40 = vpack.c.bf16 %v161_v31, %v157_v30  ;;  %v261_v28 = vlaneseq }
  0x92   :  { %459 = vmatmul.mubr.f32.vlgmr.msra.gmra.mrb[0].mxu1 %v188_v46  ;;  %4111 = vmatpush1.bf16.msra.mxu0 %v5942_v47  ;;  %v5992_v32 = vpack.c.bf16 %v162_v25, %v158_v24  ;;  %v168_v34 = vld [vmem:[#allocation12 + $0x168] sm:$0xff]  ;;  %v166_v37 = vld [vmem:[#allocation12 + $0x158] sm:$0xff]  ;;  %v163_v42 = vld [vmem:[#allocation12 + $0x140] sm:$0xff] }
  0x93   :  { %4143 = vmatpush1.bf16.msra.mxu1 %v5945_v50  ;;  %351 = vmatprep.mubr.f32.mxu0 %v5792_v0  ;;  %v170_v39 = vld [vmem:[#allocation12 + $0x178] sm:$0xff]  ;;  %v167_v43 = vld [vmem:[#allocation12 + $0x160] sm:$0xff]  ;;  %v6003_v44 = vpack.c.bf16 %v168_v34, %v164_v33  ;;  %v165_v45 = vld [vmem:[#allocation12 + $0x150] sm:$0xff]  ;;  %v6088_v30 = vshrl.u32 %v261_v28, 7 }
  0x94   :  { %464 = vmatprep.mubr.f32.mxu1 %v5792_v0  ;;  %4113 = vmatprep.subr.bf16.mxu0 %v5948_v53  ;;  %v169_v46 = vld [vmem:[#allocation12 + $0x170] sm:$0xff]  ;;  %v6006_v48 = vpack.c.bf16 %v170_v39, %v166_v37  ;;  %v172_v49 = vld [vmem:[#allocation12 + $0x188] sm:$0xff]  ;;  %v6009_v54 = vpack.c.bf16 %v167_v43, %v163_v42  ;;  %v174_v55 = vld [vmem:[#allocation12 + $0x198] sm:$0xff] }
  0x95   :  { %352 = vmatmul.mubr.f32.gmra.mrb[2].mxu0 %v189_v59  ;;  %4145 = vmatprep.subr.bf16.mxu1 %v5950_v56  ;;  %v176_v51 = vld [vmem:[#allocation12 + $0x1a8] sm:$0xff]  ;;  %v178_v57 = vld [vmem:[#allocation12 + $0x1b8] sm:$0xff]  ;;  %v6013_v58 = vpack.c.bf16 %v169_v46, %v165_v45  ;;  %v175_v61 = vld [vmem:[#allocation12 + $0x1a0] sm:$0xff]  ;;  %v263_v31 = vsub.s32 0, %v6088_v30  ;;  %v267_v34 = vsub.s32 1, %v6088_v30  ;;  %v275_v42 = vsub.s32 3, %v6088_v30 }
  0x96   :  { %465 = vmatmul.mubr.f32.gmra.mrb[2].mxu1 %v189_v59  ;;  %4115 = vmatpush1.bf16.msra.mxu0 %v5953_v60  ;;  %v193_v52 = vld [vmem:[#allocation6 + $0x28] sm:$0xff]  ;;  %v171_v59 = vld [vmem:[#allocation12 + $0x180] sm:$0xff]  ;;  %v6017_v62 = vpack.c.bf16 %v176_v51, %v172_v49  ;;  %v173_v1 = vld [vmem:[#allocation12 + $0x190] sm:$0xff]  ;;  %v6020_v4 = vpack.c.bf16 %v178_v57, %v174_v55 }
  0x97   :  { %4147 = vmatpush1.bf16.msra.mxu1 %v5957_v63  ;;  %357 = vmatprep.mubr.f32.mxu0 %v5792_v0  ;;  %v177_v2 = vld [vmem:[#allocation12 + $0x1b0] sm:$0xff]  ;;  %v180_v5 = vld [vmem:[#allocation12 + $0x1c8] sm:$0xff]  ;;  %v182_v11 = vld [vmem:[#allocation12 + $0x1d8] sm:$0xff] }
  0x98   :  { %470 = vmatprep.mubr.f32.mxu1 %v5792_v0  ;;  %4117 = vmatprep.subr.bf16.mxu0 %v5961_v3  ;;  %v184_v7 = vld [vmem:[#allocation12 + $0x1e8] sm:$0xff]  ;;  %v194_v8 = vld [vmem:[#allocation6 + $0x30] sm:$0xff]  ;;  %v186_v12 = vld [vmem:[#allocation12 + $0x1f8] sm:$0xff]  ;;  %v6027_v14 = vpack.c.bf16 %v177_v2, %v173_v1 }
  0x99   :  { %358 = vmatmul.mubr.f32.gmra.mrb[4].mxu0 %v190_v9  ;;  %4149 = vmatprep.subr.bf16.mxu1 %v5964_v6  ;;  %v179_v15 = vld [vmem:[#allocation12 + $0x1c0] sm:$0xff]  ;;  %v6031_v18 = vpack.c.bf16 %v184_v7, %v180_v5  ;;  %v181_v20 = vld [vmem:[#allocation12 + $0x1d0] sm:$0xff]  ;;  %v195_v24 = vld [vmem:[#allocation6 + $0x38] sm:$0xff] }
  0x9a   :  { %471 = vmatmul.mubr.f32.gmra.mrb[4].mxu1 %v190_v9  ;;  %4119 = vmatpush1.bf16.msra.mxu0 %v5967_v10  ;;  %v6023_v9 = vpack.c.bf16 %v175_v61, %v171_v59  ;;  %v183_v17 = vld [vmem:[#allocation12 + $0x1e0] sm:$0xff]  ;;  %v185_v21 = vld [vmem:[#allocation12 + $0x1f0] sm:$0xff]  ;;  %v271_v59 = vsub.s32 2, %v6088_v30 }
  0x9b   :  { %4151 = vmatpush1.bf16.msra.mxu1 %v5971_v13  ;;  %363 = vmatprep.mubr.f32.mxu0 %v5792_v0  ;;  %v6037_v25 = vpack.c.bf16 %v183_v17, %v179_v15  ;;  %v6041_v27 = vpack.c.bf16 %v185_v21, %v181_v20  ;;  %v187_v33 = vld [vmem:[%s6871_s5] sm:$0xf] }
  0x9c   :  { %476 = vmatprep.mubr.f32.mxu1 %v5792_v0  ;;  %4121 = vmatprep.subr.bf16.mxu0 %v5975_v16  ;;  %v6101_v37 = vrot.slane %v187_v33, %v267_v34  ;;  %v6108_v57 = vrot.slane %v187_v33, %v275_v42  ;;  %v6114_v1 = vrot.slane %v187_v33, %v271_v59 }
  0x9d   :  { %364 = vmatmul.mubr.f32.gmra.mrb[6].mxu0 %v191_v22  ;;  %4153 = vmatprep.subr.bf16.mxu1 %v5978_v19 }
  0x9e   :  { %477 = vmatmul.mubr.f32.gmra.mrb[6].mxu1 %v191_v22  ;;  %4123 = vmatpush1.bf16.msra.mxu0 %v5981_v23  ;;  %v6034_v22 = vpack.c.bf16 %v186_v12, %v182_v11 }
  0x9f   :  { %4155 = vmatpush1.bf16.msra.mxu1 %v5985_v26  ;;  %369 = vmatprep.mubr.f32.mxu0 %v5792_v0 }
  0xa0   :  { %482 = vmatprep.mubr.f32.mxu1 %v5792_v0  ;;  %4125 = vmatprep.subr.bf16.mxu0 %v5989_v29 }
  0xa1   :  { %370 = vmatmul.mubr.f32.gmra.mrb[8].mxu0 %v192_v35  ;;  %4157 = vmatprep.subr.bf16.mxu1 %v5992_v32 }
  0xa2   :  { %483 = vmatmul.mubr.f32.gmra.mrb[8].mxu1 %v192_v35  ;;  %4127 = vmatpush1.bf16.msra.mxu0 %v5995_v36  ;;  %v6097_v35 = vrot.slane %v187_v33, %v263_v31 }
  0xa3   :  { %4159 = vmatpush1.bf16.msra.mxu1 %v5999_v40  ;;  %375 = vmatprep.mubr.f32.mxu0 %v5792_v0 }
  0xa4   :  { %488 = vmatprep.mubr.f32.mxu1 %v5792_v0  ;;  %4129 = vmatprep.subr.bf16.mxu0 %v6003_v44 }
  0xa5   :  { %376 = vmatmul.mubr.f32.gmra.mrb[10].mxu0 %v193_v52  ;;  %4161 = vmatprep.subr.bf16.mxu1 %v6006_v48 }
  0xa6   :  { %489 = vmatmul.mubr.f32.gmra.mrb[10].mxu1 %v193_v52  ;;  %4131 = vmatpush1.bf16.msra.mxu0 %v6009_v54 }
  0xa7   :  { %4163 = vmatpush1.bf16.msra.mxu1 %v6013_v58  ;;  %381 = vmatprep.mubr.f32.mxu0 %v5792_v0 }
  0xa8   :  { %494 = vmatprep.mubr.f32.mxu1 %v5792_v0  ;;  %4133 = vmatprep.subr.bf16.mxu0 %v6017_v62 }
  0xa9   :  { %382 = vmatmul.mubr.f32.gmra.mrb[12].mxu0 %v194_v8  ;;  %4165 = vmatprep.subr.bf16.mxu1 %v6020_v4 }
  0xaa   :  { %495 = vmatmul.mubr.f32.gmra.mrb[12].mxu1 %v194_v8  ;;  %4135 = vmatpush1.bf16.msra.mxu0 %v6023_v9 }
  0xab   :  { %4167 = vmatpush1.bf16.msra.mxu1 %v6027_v14  ;;  %387 = vmatprep.mubr.f32.mxu0 %v5792_v0 }
  0xac   :  { %500 = vmatprep.mubr.f32.mxu1 %v5792_v0  ;;  %4137 = vmatprep.subr.bf16.mxu0 %v6031_v18 }
  0xad   :  { %388 = vmatmul.mubr.f32.gmra.mrb[14].mxu0 %v195_v24  ;;  %4169 = vmatprep.subr.bf16.mxu1 %v6034_v22 }
  0xae   :  { %501 = vmatmul.mubr.f32.gmra.mrb[14].mxu1 %v195_v24  ;;  %4139 = vmatpush1.bf16.msra.mxu0 %v6037_v25 }
  0xaf   :  { %4171 = vmatpush1.bf16.msra.mxu1 %v6041_v27  ;;  %609 = vmatprep.mubr.f32.mxu0 %v5792_v0 }
  0xb0   :  { %680 = vmatprep.mubr.f32.mxu1 %v5792_v0  ;;  %4173 = vmatprep.subr.bf16.mxu0 %v5938_v38 }
  0xb1   :  { %610 = vmatmul.mubr.f32.vlgmr.msra.gmra.mrb[0].mxu0 %v5792_v0  ;;  %4205 = vmatprep.subr.bf16.mxu1 %v5940_v41 }
  0xb2   :  { %681 = vmatmul.mubr.f32.vlgmr.msra.gmra.mrb[0].mxu1 %v5792_v0  ;;  %4175 = vmatpush1.bf16.msra.mxu0 %v5942_v47 }
  0xb3   :  { %4207 = vmatpush1.bf16.msra.mxu1 %v5945_v50  ;;  %4177 = vmatprep.subr.bf16.mxu0 %v5948_v53 }
  0xb4   :  { %4209 = vmatprep.subr.bf16.mxu1 %v5950_v56  ;;  %789 = vmatprep.mubr.f32.mxu0 %v5792_v0 }
  0xb5   :  { %860 = vmatprep.mubr.f32.mxu1 %v5792_v0 }
  0xb6   :  { %4179 = vmatpush1.bf16.msra.mxu0 %v5953_v60 }
  0xb7   :  { %4211 = vmatpush1.bf16.msra.mxu1 %v5957_v63  ;;  %4181 = vmatprep.subr.bf16.mxu0 %v5961_v3 }
  0xb8   :  { %4213 = vmatprep.subr.bf16.mxu1 %v5964_v6 }
  0xba   :  { %4183 = vmatpush1.bf16.msra.mxu0 %v5967_v10 }
  0xbb   :  { %4215 = vmatpush1.bf16.msra.mxu1 %v5971_v13  ;;  %4185 = vmatprep.subr.bf16.mxu0 %v5975_v16 }
  0xbc   :  { %4217 = vmatprep.subr.bf16.mxu1 %v5978_v19 }
  0xbe   :  { %4187 = vmatpush1.bf16.msra.mxu0 %v5981_v23 }
  0xbf   :  { %4219 = vmatpush1.bf16.msra.mxu1 %v5985_v26  ;;  %4189 = vmatprep.subr.bf16.mxu0 %v5989_v29 }
  0xc0   :  { %4221 = vmatprep.subr.bf16.mxu1 %v5992_v32 }
  0xc2   :  { %4191 = vmatpush1.bf16.msra.mxu0 %v5995_v36 }
  0xc3   :  { %4223 = vmatpush1.bf16.msra.mxu1 %v5999_v40  ;;  %4193 = vmatprep.subr.bf16.mxu0 %v6003_v44 }
  0xc4   :  { %4225 = vmatprep.subr.bf16.mxu1 %v6006_v48 }
  0xc6   :  { %4195 = vmatpush1.bf16.msra.mxu0 %v6009_v54 }
  0xc7   :  { %4227 = vmatpush1.bf16.msra.mxu1 %v6013_v58  ;;  %4197 = vmatprep.subr.bf16.mxu0 %v6017_v62 }
  0xc8   :  { %4229 = vmatprep.subr.bf16.mxu1 %v6020_v4 }
  0xca   :  { %4199 = vmatpush1.bf16.msra.mxu0 %v6023_v9 }
  0xcb   :  { %4231 = vmatpush1.bf16.msra.mxu1 %v6027_v14  ;;  %4201 = vmatprep.subr.bf16.mxu0 %v6031_v18 }
  0xcc   :  { %4233 = vmatprep.subr.bf16.mxu1 %v6034_v22 }
  0xce   :  { %4203 = vmatpush1.bf16.msra.mxu0 %v6037_v25 }
  0xcf   :  { %4235 = vmatpush1.bf16.msra.mxu1 %v6041_v27  ;;  %4237 = vmatprep.subr.bf16.mxu0 %v5938_v38 }
  0xd0   :  { %4269 = vmatprep.subr.bf16.mxu1 %v5940_v41 }
 0x184   :  { %v611_v39 = vpop.f32.mrb[0].mxu0 }
 0x185   :  { %v5220_v43 = vadd.f32 %v611_v39, %v6097_v35  ;;  %v682_v45 = vpop.f32.mrb[0].mxu1  ;;  %v613_v46 = vpop.f32.mrb[1].mxu0 }
 0x186   :  { %v5221_v49 = vadd.f32 %v613_v46, %v6101_v37  ;;  %v684_v51 = vpop.f32.mrb[1].mxu1  ;;  %v5236_v5 = vadd.f32 %v682_v45, %v6114_v1 }
 0x187   :  { %v3943_v52 = vmul.f32 -1.442695, %v5220_v43  ;;  %v5237_v61 = vadd.f32 %v684_v51, %v6108_v57 }
 0x188   :  { %v3944_v55 = vmul.f32 -1.442695, %v5221_v49 }
 0x189   :  { %5362 = vpow2.f32 %v3943_v52  ;;  %v3945_v2 = vmul.f32 -1.442695, %v5237_v61 }
 0x18a   :  { %5364 = vpow2.f32 %v3944_v55 }
 0x18b   :  { %5366 = vpow2.f32 %v3945_v2 }
 0x18c   :  { %5368 = vtanh.f32 %v5236_v5 }
 0x193   :  { %v5363_v7 = vpop.eup %5362 }
 0x194   :  { %v5365_v8 = vpop.eup %5364  ;;  %v694_v11 = vadd.f32 1.0, %v5363_v7 }
 0x195   :  { %v700_v12 = vadd.f32 1.0, %v5365_v8  ;;  %v5367_v15 = vpop.eup %5366 }
 0x196   :  { %5370 = vrcp.f32 %v694_v11  ;;  %v5369_v17 = vpop.eup %5368  ;;  %v707_v28 = vadd.f32 1.0, %v5367_v15 }
 0x197   :  { %5372 = vrcp.f32 %v700_v12 }
 0x198   :  { %5374 = vrcp.f32 %v707_v28 }
 0x1a0   :  { %v5371_v20 = vpop.eup %5370 }
 0x1a1   :  { %v5373_v21 = vpop.eup %5372  ;;  %v711_v24 = vmul.f32 %v5371_v20, %v5369_v17 }
 0x1a2   :  { %v710_v39 = vmul.f32 0.0, %v5373_v21  ;;  %v5375_v43 = vpop.eup %5374 }
 0x1a4   :  { %v6117_v33 = vadd.f32 %v711_v24, %v710_v39 }
 0x1a6   :  { %5376 = vtanh.f32 %v6117_v33 }
 0x1b0   :  { %v5377_v45 = vpop.eup %5376 }
 0x1b1   :  { %v6120_v46 = vmul.f32 %v5377_v45, %v5375_v43 }
 0x1b3   :  { %790 = vmatmul.mubr.f32.vlgmr.msra.gmra.mrb[2].mxu0 %v6120_v46  ;;  %861 = vmatmul.mubr.f32.vlgmr.msra.gmra.mrb[2].mxu1 %v6120_v46 }
 0x1b4   :  { %4239 = vmatpush1.bf16.msra.mxu0 %v5942_v47  ;;  %4271 = vmatpush1.bf16.msra.mxu1 %v5945_v50 }
 0x1b5   :  { %4241 = vmatprep.subr.bf16.mxu0 %v5948_v53  ;;  %4273 = vmatprep.subr.bf16.mxu1 %v5950_v56 }
 0x1b6   :  { %970 = vmatprep.mubr.f32.mxu0 %v5792_v0  ;;  %1041 = vmatprep.mubr.f32.mxu1 %v5792_v0 }
 0x1b8   :  { %4243 = vmatpush1.bf16.msra.mxu0 %v5953_v60  ;;  %4275 = vmatpush1.bf16.msra.mxu1 %v5957_v63 }
 0x1b9   :  { %4245 = vmatprep.subr.bf16.mxu0 %v5961_v3  ;;  %4277 = vmatprep.subr.bf16.mxu1 %v5964_v6 }
 0x1bc   :  { %4247 = vmatpush1.bf16.msra.mxu0 %v5967_v10  ;;  %4279 = vmatpush1.bf16.msra.mxu1 %v5971_v13 }
 0x1bd   :  { %4249 = vmatprep.subr.bf16.mxu0 %v5975_v16  ;;  %4281 = vmatprep.subr.bf16.mxu1 %v5978_v19 }
 0x1c0   :  { %4251 = vmatpush1.bf16.msra.mxu0 %v5981_v23  ;;  %4283 = vmatpush1.bf16.msra.mxu1 %v5985_v26 }
 0x1c1   :  { %4253 = vmatprep.subr.bf16.mxu0 %v5989_v29  ;;  %4285 = vmatprep.subr.bf16.mxu1 %v5992_v32 }
 0x1c4   :  { %4255 = vmatpush1.bf16.msra.mxu0 %v5995_v36  ;;  %4287 = vmatpush1.bf16.msra.mxu1 %v5999_v40 }
 0x1c5   :  { %4257 = vmatprep.subr.bf16.mxu0 %v6003_v44  ;;  %4289 = vmatprep.subr.bf16.mxu1 %v6006_v48 }
 0x1c8   :  { %4259 = vmatpush1.bf16.msra.mxu0 %v6009_v54  ;;  %4291 = vmatpush1.bf16.msra.mxu1 %v6013_v58 }
 0x1c9   :  { %4261 = vmatprep.subr.bf16.mxu0 %v6017_v62  ;;  %4293 = vmatprep.subr.bf16.mxu1 %v6020_v4 }
 0x1cc   :  { %4263 = vmatpush1.bf16.msra.mxu0 %v6023_v9  ;;  %4295 = vmatpush1.bf16.msra.mxu1 %v6027_v14 }
 0x1cd   :  { %4265 = vmatprep.subr.bf16.mxu0 %v6031_v18  ;;  %4297 = vmatprep.subr.bf16.mxu1 %v6034_v22 }
 0x1d0   :  { %4267 = vmatpush1.bf16.msra.mxu0 %v6037_v25  ;;  %4299 = vmatpush1.bf16.msra.mxu1 %v6041_v27 }
 0x1d1   :  { %4301 = vmatprep.subr.bf16.mxu0 %v5938_v38  ;;  %4333 = vmatprep.subr.bf16.mxu1 %v5940_v41 }
 0x286   :  { %v791_v49 = vpop.f32.mrb[2].mxu0  ;;  %v862_v51 = vpop.f32.mrb[2].mxu1 }
 0x287   :  { %v5222_v52 = vadd.f32 %v791_v49, %v6097_v35  ;;  %v793_v55 = vpop.f32.mrb[3].mxu0  ;;  %v864_v61 = vpop.f32.mrb[3].mxu1  ;;  %v5238_v12 = vadd.f32 %v862_v51, %v6114_v1 }
 0x288   :  { %v5223_v2 = vadd.f32 %v793_v55, %v6101_v37  ;;  %v5239_v8 = vadd.f32 %v864_v61, %v6108_v57 }
 0x289   :  { %v3946_v5 = vmul.f32 -1.442695, %v5222_v52 }
 0x28a   :  { %v3947_v7 = vmul.f32 -1.442695, %v5223_v2  ;;  %v3948_v11 = vmul.f32 -1.442695, %v5239_v8 }
 0x28b   :  { %5378 = vpow2.f32 %v3946_v5 }
 0x28c   :  { %5380 = vpow2.f32 %v3947_v7 }
 0x28d   :  { %5382 = vpow2.f32 %v3948_v11 }
 0x28e   :  { %5384 = vtanh.f32 %v5238_v12 }
 0x295   :  { %v5379_v15 = vpop.eup %5378 }
 0x296   :  { %v5381_v17 = vpop.eup %5380  ;;  %v874_v20 = vadd.f32 1.0, %v5379_v15 }
 0x297   :  { %v880_v21 = vadd.f32 1.0, %v5381_v17  ;;  %v5383_v24 = vpop.eup %5382 }
 0x298   :  { %5386 = vrcp.f32 %v874_v20  ;;  %v5385_v28 = vpop.eup %5384  ;;  %v887_v49 = vadd.f32 1.0, %v5383_v24 }
 0x299   :  { %5388 = vrcp.f32 %v880_v21 }
 0x29a   :  { %5390 = vrcp.f32 %v887_v49 }
 0x2a2   :  { %v5387_v39 = vpop.eup %5386 }
 0x2a3   :  { %v5389_v43 = vpop.eup %5388  ;;  %v891_v45 = vmul.f32 %v5387_v39, %v5385_v28 }
 0x2a4   :  { %v890_v52 = vmul.f32 %v5389_v43, %v6117_v33  ;;  %v5391_v51 = vpop.eup %5390 }
 0x2a6   :  { %v6163_v55 = vadd.f32 %v891_v45, %v890_v52 }
 0x2a8   :  { %5392 = vtanh.f32 %v6163_v55 }
 0x2b2   :  { %v5393_v61 = vpop.eup %5392 }
 0x2b3   :  { %v6166_v2 = vmul.f32 %v5393_v61, %v5391_v51 }
 0x2b5   :  { %971 = vmatmul.mubr.f32.vlgmr.msra.gmra.mrb[4].mxu0 %v6166_v2  ;;  %1042 = vmatmul.mubr.f32.vlgmr.msra.gmra.mrb[4].mxu1 %v6166_v2 }
 0x2b6   :  { %4303 = vmatpush1.bf16.msra.mxu0 %v5942_v47  ;;  %4335 = vmatpush1.bf16.msra.mxu1 %v5945_v50 }
 0x2b7   :  { %4305 = vmatprep.subr.bf16.mxu0 %v5948_v53  ;;  %4337 = vmatprep.subr.bf16.mxu1 %v5950_v56 }
 0x2b8   :  { %1151 = vmatprep.mubr.f32.mxu0 %v5792_v0  ;;  %1222 = vmatprep.mubr.f32.mxu1 %v5792_v0 }
 0x2ba   :  { %4307 = vmatpush1.bf16.msra.mxu0 %v5953_v60  ;;  %4339 = vmatpush1.bf16.msra.mxu1 %v5957_v63 }
 0x2bb   :  { %4309 = vmatprep.subr.bf16.mxu0 %v5961_v3  ;;  %4341 = vmatprep.subr.bf16.mxu1 %v5964_v6 }
 0x2be   :  { %4311 = vmatpush1.bf16.msra.mxu0 %v5967_v10  ;;  %4343 = vmatpush1.bf16.msra.mxu1 %v5971_v13 }
 0x2bf   :  { %4313 = vmatprep.subr.bf16.mxu0 %v5975_v16  ;;  %4345 = vmatprep.subr.bf16.mxu1 %v5978_v19 }
 0x2c2   :  { %4315 = vmatpush1.bf16.msra.mxu0 %v5981_v23  ;;  %4347 = vmatpush1.bf16.msra.mxu1 %v5985_v26 }
 0x2c3   :  { %4317 = vmatprep.subr.bf16.mxu0 %v5989_v29  ;;  %4349 = vmatprep.subr.bf16.mxu1 %v5992_v32 }
 0x2c6   :  { %4319 = vmatpush1.bf16.msra.mxu0 %v5995_v36  ;;  %4351 = vmatpush1.bf16.msra.mxu1 %v5999_v40 }
 0x2c7   :  { %4321 = vmatprep.subr.bf16.mxu0 %v6003_v44  ;;  %4353 = vmatprep.subr.bf16.mxu1 %v6006_v48 }
 0x2ca   :  { %4323 = vmatpush1.bf16.msra.mxu0 %v6009_v54  ;;  %4355 = vmatpush1.bf16.msra.mxu1 %v6013_v58 }
 0x2cb   :  { %4325 = vmatprep.subr.bf16.mxu0 %v6017_v62  ;;  %4357 = vmatprep.subr.bf16.mxu1 %v6020_v4 }
 0x2ce   :  { %4327 = vmatpush1.bf16.msra.mxu0 %v6023_v9  ;;  %4359 = vmatpush1.bf16.msra.mxu1 %v6027_v14 }
 0x2cf   :  { %4329 = vmatprep.subr.bf16.mxu0 %v6031_v18  ;;  %4361 = vmatprep.subr.bf16.mxu1 %v6034_v22 }
 0x2d2   :  { %4331 = vmatpush1.bf16.msra.mxu0 %v6037_v25  ;;  %4363 = vmatpush1.bf16.msra.mxu1 %v6041_v27 }
 0x2d3   :  { %4365 = vmatprep.subr.bf16.mxu0 %v5938_v38  ;;  %4397 = vmatprep.subr.bf16.mxu1 %v5940_v41 }
 0x388   :  { %v972_v33 = vpop.f32.mrb[4].mxu0  ;;  %v1043_v5 = vpop.f32.mrb[4].mxu1 }
 0x389   :  { %v5224_v7 = vadd.f32 %v972_v33, %v6097_v35  ;;  %v974_v8 = vpop.f32.mrb[5].mxu0  ;;  %v1045_v11 = vpop.f32.mrb[5].mxu1  ;;  %v5240_v24 = vadd.f32 %v1043_v5, %v6114_v1 }
 0x38a   :  { %v5225_v12 = vadd.f32 %v974_v8, %v6101_v37  ;;  %v5241_v20 = vadd.f32 %v1045_v11, %v6108_v57 }
 0x38b   :  { %v3949_v15 = vmul.f32 -1.442695, %v5224_v7 }
 0x38c   :  { %v3950_v17 = vmul.f32 -1.442695, %v5225_v12  ;;  %v3951_v21 = vmul.f32 -1.442695, %v5241_v20 }
 0x38d   :  { %5394 = vpow2.f32 %v3949_v15 }
 0x38e   :  { %5396 = vpow2.f32 %v3950_v17 }
 0x38f   :  { %5398 = vpow2.f32 %v3951_v21 }
 0x390   :  { %5400 = vtanh.f32 %v5240_v24 }
 0x397   :  { %v5395_v28 = vpop.eup %5394 }
 0x398   :  { %v5397_v39 = vpop.eup %5396  ;;  %v1055_v43 = vadd.f32 1.0, %v5395_v28 }
 0x399   :  { %v1061_v45 = vadd.f32 1.0, %v5397_v39  ;;  %v5399_v49 = vpop.eup %5398 }
 0x39a   :  { %5402 = vrcp.f32 %v1055_v43  ;;  %v5401_v52 = vpop.eup %5400  ;;  %v1068_v7 = vadd.f32 1.0, %v5399_v49 }
 0x39b   :  { %5404 = vrcp.f32 %v1061_v45 }
 0x39c   :  { %5406 = vrcp.f32 %v1068_v7 }
 0x3a4   :  { %v5403_v51 = vpop.eup %5402 }
 0x3a5   :  { %v5405_v61 = vpop.eup %5404  ;;  %v1072_v33 = vmul.f32 %v5403_v51, %v5401_v52 }
 0x3a6   :  { %v1071_v8 = vmul.f32 %v5405_v61, %v6163_v55  ;;  %v5407_v5 = vpop.eup %5406 }
 0x3a8   :  { %v6209_v11 = vadd.f32 %v1072_v33, %v1071_v8 }
 0x3aa   :  { %5408 = vtanh.f32 %v6209_v11 }
 0x3b4   :  { %v5409_v12 = vpop.eup %5408 }
 0x3b5   :  { %v6212_v15 = vmul.f32 %v5409_v12, %v5407_v5 }
 0x3b7   :  { %1152 = vmatmul.mubr.f32.vlgmr.msra.gmra.mrb[6].mxu0 %v6212_v15  ;;  %1223 = vmatmul.mubr.f32.vlgmr.msra.gmra.mrb[6].mxu1 %v6212_v15 }
 0x3b8   :  { %4367 = vmatpush1.bf16.msra.mxu0 %v5942_v47  ;;  %4399 = vmatpush1.bf16.msra.mxu1 %v5945_v50 }
 0x3b9   :  { %4369 = vmatprep.subr.bf16.mxu0 %v5948_v53  ;;  %4401 = vmatprep.subr.bf16.mxu1 %v5950_v56 }
 0x3ba   :  { %1332 = vmatprep.mubr.f32.mxu0 %v5792_v0  ;;  %1403 = vmatprep.mubr.f32.mxu1 %v5792_v0 }
 0x3bc   :  { %4371 = vmatpush1.bf16.msra.mxu0 %v5953_v60  ;;  %4403 = vmatpush1.bf16.msra.mxu1 %v5957_v63 }
 0x3bd   :  { %4373 = vmatprep.subr.bf16.mxu0 %v5961_v3  ;;  %4405 = vmatprep.subr.bf16.mxu1 %v5964_v6 }
 0x3c0   :  { %4375 = vmatpush1.bf16.msra.mxu0 %v5967_v10  ;;  %4407 = vmatpush1.bf16.msra.mxu1 %v5971_v13 }
 0x3c1   :  { %4377 = vmatprep.subr.bf16.mxu0 %v5975_v16  ;;  %4409 = vmatprep.subr.bf16.mxu1 %v5978_v19 }
 0x3c4   :  { %4379 = vmatpush1.bf16.msra.mxu0 %v5981_v23  ;;  %4411 = vmatpush1.bf16.msra.mxu1 %v5985_v26 }
 0x3c5   :  { %4381 = vmatprep.subr.bf16.mxu0 %v5989_v29  ;;  %4413 = vmatprep.subr.bf16.mxu1 %v5992_v32 }
 0x3c8   :  { %4383 = vmatpush1.bf16.msra.mxu0 %v5995_v36  ;;  %4415 = vmatpush1.bf16.msra.mxu1 %v5999_v40 }
 0x3c9   :  { %4385 = vmatprep.subr.bf16.mxu0 %v6003_v44  ;;  %4417 = vmatprep.subr.bf16.mxu1 %v6006_v48 }
 0x3cc   :  { %4387 = vmatpush1.bf16.msra.mxu0 %v6009_v54  ;;  %4419 = vmatpush1.bf16.msra.mxu1 %v6013_v58 }
 0x3cd   :  { %4389 = vmatprep.subr.bf16.mxu0 %v6017_v62  ;;  %4421 = vmatprep.subr.bf16.mxu1 %v6020_v4 }
 0x3d0   :  { %4391 = vmatpush1.bf16.msra.mxu0 %v6023_v9  ;;  %4423 = vmatpush1.bf16.msra.mxu1 %v6027_v14 }
 0x3d1   :  { %4393 = vmatprep.subr.bf16.mxu0 %v6031_v18  ;;  %4425 = vmatprep.subr.bf16.mxu1 %v6034_v22 }
 0x3d4   :  { %4395 = vmatpush1.bf16.msra.mxu0 %v6037_v25  ;;  %4427 = vmatpush1.bf16.msra.mxu1 %v6041_v27 }
 0x3d5   :  { %4429 = vmatprep.subr.bf16.mxu0 %v5938_v38  ;;  %4461 = vmatprep.subr.bf16.mxu1 %v5940_v41 }
 0x48a   :  { %v1153_v55 = vpop.f32.mrb[6].mxu0  ;;  %v1224_v17 = vpop.f32.mrb[6].mxu1 }
 0x48b   :  { %v5226_v20 = vadd.f32 %v1153_v55, %v6097_v35  ;;  %v1155_v21 = vpop.f32.mrb[7].mxu0  ;;  %v1226_v24 = vpop.f32.mrb[7].mxu1  ;;  %v5242_v52 = vadd.f32 %v1224_v17, %v6114_v1 }
 0x48c   :  { %v5227_v28 = vadd.f32 %v1155_v21, %v6101_v37  ;;  %v5243_v45 = vadd.f32 %v1226_v24, %v6108_v57 }
 0x48d   :  { %v3952_v39 = vmul.f32 -1.442695, %v5226_v20 }
 0x48e   :  { %v3953_v43 = vmul.f32 -1.442695, %v5227_v28  ;;  %v3954_v49 = vmul.f32 -1.442695, %v5243_v45 }
 0x48f   :  { %5410 = vpow2.f32 %v3952_v39 }
 0x490   :  { %5412 = vpow2.f32 %v3953_v43 }
 0x491   :  { %5414 = vpow2.f32 %v3954_v49 }
 0x492   :  { %5416 = vtanh.f32 %v5242_v52 }
 0x499   :  { %v5411_v51 = vpop.eup %5410 }
 0x49a   :  { %v5413_v61 = vpop.eup %5412  ;;  %v1236_v33 = vadd.f32 1.0, %v5411_v51 }
 0x49b   :  { %v1242_v7 = vadd.f32 1.0, %v5413_v61  ;;  %v5415_v8 = vpop.eup %5414 }
 0x49c   :  { %5418 = vrcp.f32 %v1236_v33  ;;  %v5417_v5 = vpop.eup %5416  ;;  %v1249_v21 = vadd.f32 1.0, %v5415_v8 }
 0x49d   :  { %5420 = vrcp.f32 %v1242_v7 }
 0x49e   :  { %5422 = vrcp.f32 %v1249_v21 }
 0x4a6   :  { %v5419_v12 = vpop.eup %5418 }
 0x4a7   :  { %v5421_v55 = vpop.eup %5420  ;;  %v1253_v20 = vmul.f32 %v5419_v12, %v5417_v5 }
 0x4a8   :  { %v1252_v28 = vmul.f32 %v5421_v55, %v6209_v11  ;;  %v5423_v17 = vpop.eup %5422 }
 0x4aa   :  { %v6255_v24 = vadd.f32 %v1253_v20, %v1252_v28 }
 0x4ac   :  { %5424 = vtanh.f32 %v6255_v24 }
 0x4b6   :  { %v5425_v39 = vpop.eup %5424 }
 0x4b7   :  { %v6258_v43 = vmul.f32 %v5425_v39, %v5423_v17 }
 0x4b9   :  { %1333 = vmatmul.mubr.f32.vlgmr.msra.gmra.mrb[8].mxu0 %v6258_v43  ;;  %1404 = vmatmul.mubr.f32.vlgmr.msra.gmra.mrb[8].mxu1 %v6258_v43 }
 0x4ba   :  { %4431 = vmatpush1.bf16.msra.mxu0 %v5942_v47  ;;  %4463 = vmatpush1.bf16.msra.mxu1 %v5945_v50 }
 0x4bb   :  { %4433 = vmatprep.subr.bf16.mxu0 %v5948_v53  ;;  %4465 = vmatprep.subr.bf16.mxu1 %v5950_v56 }
 0x4bc   :  { %1513 = vmatprep.mubr.f32.mxu0 %v5792_v0  ;;  %1584 = vmatprep.mubr.f32.mxu1 %v5792_v0 }
 0x4be   :  { %4435 = vmatpush1.bf16.msra.mxu0 %v5953_v60  ;;  %4467 = vmatpush1.bf16.msra.mxu1 %v5957_v63 }
 0x4bf   :  { %4437 = vmatprep.subr.bf16.mxu0 %v5961_v3  ;;  %4469 = vmatprep.subr.bf16.mxu1 %v5964_v6 }
 0x4c2   :  { %4439 = vmatpush1.bf16.msra.mxu0 %v5967_v10  ;;  %4471 = vmatpush1.bf16.msra.mxu1 %v5971_v13 }
 0x4c3   :  { %4441 = vmatprep.subr.bf16.mxu0 %v5975_v16  ;;  %4473 = vmatprep.subr.bf16.mxu1 %v5978_v19 }
 0x4c6   :  { %4443 = vmatpush1.bf16.msra.mxu0 %v5981_v23  ;;  %4475 = vmatpush1.bf16.msra.mxu1 %v5985_v26 }
 0x4c7   :  { %4445 = vmatprep.subr.bf16.mxu0 %v5989_v29  ;;  %4477 = vmatprep.subr.bf16.mxu1 %v5992_v32 }
 0x4ca   :  { %4447 = vmatpush1.bf16.msra.mxu0 %v5995_v36  ;;  %4479 = vmatpush1.bf16.msra.mxu1 %v5999_v40 }
 0x4cb   :  { %4449 = vmatprep.subr.bf16.mxu0 %v6003_v44  ;;  %4481 = vmatprep.subr.bf16.mxu1 %v6006_v48 }
 0x4ce   :  { %4451 = vmatpush1.bf16.msra.mxu0 %v6009_v54  ;;  %4483 = vmatpush1.bf16.msra.mxu1 %v6013_v58 }
 0x4cf   :  { %4453 = vmatprep.subr.bf16.mxu0 %v6017_v62  ;;  %4485 = vmatprep.subr.bf16.mxu1 %v6020_v4 }
 0x4d2   :  { %4455 = vmatpush1.bf16.msra.mxu0 %v6023_v9  ;;  %4487 = vmatpush1.bf16.msra.mxu1 %v6027_v14 }
 0x4d3   :  { %4457 = vmatprep.subr.bf16.mxu0 %v6031_v18  ;;  %4489 = vmatprep.subr.bf16.mxu1 %v6034_v22 }
 0x4d6   :  { %4459 = vmatpush1.bf16.msra.mxu0 %v6037_v25  ;;  %4491 = vmatpush1.bf16.msra.mxu1 %v6041_v27 }
 0x4d7   :  { %4493 = vmatprep.subr.bf16.mxu0 %v5938_v38  ;;  %4525 = vmatprep.subr.bf16.mxu1 %v5940_v41 }
 0x58c   :  { %v1334_v11 = vpop.f32.mrb[8].mxu0  ;;  %v1405_v45 = vpop.f32.mrb[8].mxu1 }
 0x58d   :  { %v5228_v49 = vadd.f32 %v1334_v11, %v6097_v35  ;;  %v1336_v52 = vpop.f32.mrb[9].mxu0  ;;  %v1407_v51 = vpop.f32.mrb[9].mxu1  ;;  %v5244_v12 = vadd.f32 %v1405_v45, %v6114_v1 }
 0x58e   :  { %v5229_v61 = vadd.f32 %v1336_v52, %v6101_v37  ;;  %v5245_v8 = vadd.f32 %v1407_v51, %v6108_v57 }
 0x58f   :  { %v3955_v33 = vmul.f32 -1.442695, %v5228_v49 }
 0x590   :  { %v3956_v7 = vmul.f32 -1.442695, %v5229_v61  ;;  %v3957_v5 = vmul.f32 -1.442695, %v5245_v8 }
 0x591   :  { %5426 = vpow2.f32 %v3955_v33 }
 0x592   :  { %5428 = vpow2.f32 %v3956_v7 }
 0x593   :  { %5430 = vpow2.f32 %v3957_v5 }
 0x594   :  { %5432 = vtanh.f32 %v5244_v12 }
 0x59b   :  { %v5427_v55 = vpop.eup %5426 }
 0x59c   :  { %v5429_v20 = vpop.eup %5428  ;;  %v1417_v21 = vadd.f32 1.0, %v5427_v55 }
 0x59d   :  { %v1423_v28 = vadd.f32 1.0, %v5429_v20  ;;  %v5431_v17 = vpop.eup %5430 }
 0x59e   :  { %5434 = vrcp.f32 %v1417_v21  ;;  %v5433_v39 = vpop.eup %5432  ;;  %v1430_v61 = vadd.f32 1.0, %v5431_v17 }
 0x59f   :  { %5436 = vrcp.f32 %v1423_v28 }
 0x5a0   :  { %5438 = vrcp.f32 %v1430_v61 }
 0x5a8   :  { %v5435_v11 = vpop.eup %5434 }
 0x5a9   :  { %v5437_v49 = vpop.eup %5436  ;;  %v1434_v52 = vmul.f32 %v5435_v11, %v5433_v39 }
 0x5aa   :  { %v1433_v33 = vmul.f32 %v5437_v49, %v6255_v24  ;;  %v5439_v45 = vpop.eup %5438 }
 0x5ac   :  { %v6301_v51 = vadd.f32 %v1434_v52, %v1433_v33 }
 0x5ae   :  { %5440 = vtanh.f32 %v6301_v51 }
 0x5b8   :  { %v5441_v7 = vpop.eup %5440 }
 0x5b9   :  { %v6304_v8 = vmul.f32 %v5441_v7, %v5439_v45 }
 0x5bb   :  { %1514 = vmatmul.mubr.f32.vlgmr.msra.gmra.mrb[10].mxu0 %v6304_v8  ;;  %1585 = vmatmul.mubr.f32.vlgmr.msra.gmra.mrb[10].mxu1 %v6304_v8 }
 0x5bc   :  { %4495 = vmatpush1.bf16.msra.mxu0 %v5942_v47  ;;  %4527 = vmatpush1.bf16.msra.mxu1 %v5945_v50 }
 0x5bd   :  { %4497 = vmatprep.subr.bf16.mxu0 %v5948_v53  ;;  %4529 = vmatprep.subr.bf16.mxu1 %v5950_v56 }
 0x5be   :  { %1694 = vmatprep.mubr.f32.mxu0 %v5792_v0  ;;  %1765 = vmatprep.mubr.f32.mxu1 %v5792_v0 }
 0x5c0   :  { %4499 = vmatpush1.bf16.msra.mxu0 %v5953_v60  ;;  %4531 = vmatpush1.bf16.msra.mxu1 %v5957_v63 }
 0x5c1   :  { %4501 = vmatprep.subr.bf16.mxu0 %v5961_v3  ;;  %4533 = vmatprep.subr.bf16.mxu1 %v5964_v6 }
 0x5c4   :  { %4503 = vmatpush1.bf16.msra.mxu0 %v5967_v10  ;;  %4535 = vmatpush1.bf16.msra.mxu1 %v5971_v13 }
 0x5c5   :  { %4505 = vmatprep.subr.bf16.mxu0 %v5975_v16  ;;  %4537 = vmatprep.subr.bf16.mxu1 %v5978_v19 }
 0x5c8   :  { %4507 = vmatpush1.bf16.msra.mxu0 %v5981_v23  ;;  %4539 = vmatpush1.bf16.msra.mxu1 %v5985_v26 }
 0x5c9   :  { %4509 = vmatprep.subr.bf16.mxu0 %v5989_v29  ;;  %4541 = vmatprep.subr.bf16.mxu1 %v5992_v32 }
 0x5cc   :  { %4511 = vmatpush1.bf16.msra.mxu0 %v5995_v36  ;;  %4543 = vmatpush1.bf16.msra.mxu1 %v5999_v40 }
 0x5cd   :  { %4513 = vmatprep.subr.bf16.mxu0 %v6003_v44  ;;  %4545 = vmatprep.subr.bf16.mxu1 %v6006_v48 }
 0x5d0   :  { %4515 = vmatpush1.bf16.msra.mxu0 %v6009_v54  ;;  %4547 = vmatpush1.bf16.msra.mxu1 %v6013_v58 }
 0x5d1   :  { %4517 = vmatprep.subr.bf16.mxu0 %v6017_v62  ;;  %4549 = vmatprep.subr.bf16.mxu1 %v6020_v4 }
 0x5d4   :  { %4519 = vmatpush1.bf16.msra.mxu0 %v6023_v9  ;;  %4551 = vmatpush1.bf16.msra.mxu1 %v6027_v14 }
 0x5d5   :  { %4521 = vmatprep.subr.bf16.mxu0 %v6031_v18  ;;  %4553 = vmatprep.subr.bf16.mxu1 %v6034_v22 }
 0x5d8   :  { %4523 = vmatpush1.bf16.msra.mxu0 %v6037_v25  ;;  %4555 = vmatpush1.bf16.msra.mxu1 %v6041_v27 }
 0x5d9   :  { %4557 = vmatprep.subr.bf16.mxu0 %v5938_v38  ;;  %4589 = vmatprep.subr.bf16.mxu1 %v5940_v41 }
 0x68e   :  { %v1515_v24 = vpop.f32.mrb[10].mxu0  ;;  %v1586_v5 = vpop.f32.mrb[10].mxu1 }
 0x68f   :  { %v5230_v12 = vadd.f32 %v1515_v24, %v6097_v35  ;;  %v1517_v55 = vpop.f32.mrb[11].mxu0  ;;  %v1588_v20 = vpop.f32.mrb[11].mxu1  ;;  %v5246_v49 = vadd.f32 %v1586_v5, %v6114_v1 }
 0x690   :  { %v5231_v21 = vadd.f32 %v1517_v55, %v6101_v37  ;;  %v5247_v39 = vadd.f32 %v1588_v20, %v6108_v57 }
 0x691   :  { %v3958_v28 = vmul.f32 -1.442695, %v5230_v12 }
 0x692   :  { %v3959_v17 = vmul.f32 -1.442695, %v5231_v21  ;;  %v3960_v11 = vmul.f32 -1.442695, %v5247_v39  ;;  %v2060_v39 = vld [vmem:[#allocation11 + $0x10] sm:$0xff] }
 0x693   :  { %5442 = vpow2.f32 %v3958_v28 }
 0x694   :  { %5444 = vpow2.f32 %v3959_v17 }
 0x695   :  { %5446 = vpow2.f32 %v3960_v11  ;;  %v2064_v11 = vld [vmem:[#allocation11 + $0x30] sm:$0xff] }
 0x696   :  { %5448 = vtanh.f32 %v5246_v49  ;;  %v2067_v49 = vld [vmem:[#allocation11 + $0x48] sm:$0xff] }
 0x69d   :  { %v5443_v38 = vpop.eup %5442 }
 0x69e   :  { %v5445_v52 = vpop.eup %5444  ;;  %v1598_v41 = vadd.f32 1.0, %v5443_v38  ;;  %v2071_v38 = vld [vmem:[#allocation11 + $0x68] sm:$0xff] }
 0x69f   :  { %v1604_v61 = vadd.f32 1.0, %v5445_v52  ;;  %v5447_v33 = vpop.eup %5446  ;;  %v2069_v52 = vld [vmem:[#allocation11 + $0x58] sm:$0xff] }
 0x6a0   :  { %5450 = vrcp.f32 %v1598_v41  ;;  %v5449_v45 = vpop.eup %5448  ;;  %v1611_v55 = vadd.f32 1.0, %v5447_v33  ;;  %v2073_v41 = vld [vmem:[#allocation11 + $0x78] sm:$0xff] }
 0x6a1   :  { %5452 = vrcp.f32 %v1604_v61 }
 0x6a2   :  { %5454 = vrcp.f32 %v1611_v55 }
 0x6aa   :  { %v5451_v7 = vpop.eup %5450 }
 0x6ab   :  { %v5453_v24 = vpop.eup %5452  ;;  %v1615_v12 = vmul.f32 %v5451_v7, %v5449_v45  ;;  %v4654_v7 = vpack.c.bf16 %v2064_v11, %v2060_v39  ;;  %v2090_v39 = vld [vmem:[#allocation11 + $0x100] sm:$0xff] }
 0x6ac   :  { %v1614_v21 = vmul.f32 %v5453_v24, %v6301_v51  ;;  %v5455_v5 = vpop.eup %5454  ;;  %v2062_v51 = vld [vmem:[#allocation11 + $0x20] sm:$0xff] }
 0x6ad   :  { %v2066_v24 = vld [vmem:[#allocation11 + $0x40] sm:$0xff] }
 0x6ae   :  { %v6347_v20 = vadd.f32 %v1615_v12, %v1614_v21  ;;  %v2070_v12 = vld [vmem:[#allocation11 + $0x60] sm:$0xff]  ;;  %v4624_v21 = vpack.c.bf16 %v2071_v38, %v2067_v49 }
 0x6af   :  { %v2094_v11 = vld [vmem:[#allocation11 + $0x120] sm:$0xff] }
 0x6b0   :  { %5456 = vtanh.f32 %v6347_v20 }
 0x6ba   :  { %v5457_v28 = vpop.eup %5456 }
 0x6bb   :  { %v6350_v17 = vmul.f32 %v5457_v28, %v5455_v5  ;;  %v2068_v5 = vld [vmem:[#allocation11 + $0x50] sm:$0xff] }
 0x6bc   :  { %v2072_v28 = vld [vmem:[#allocation11 + $0x70] sm:$0xff] }
 0x6bd   :  { %1695 = vmatmul.mubr.f32.vlgmr.msra.gmra.mrb[12].mxu0 %v6350_v17  ;;  %1766 = vmatmul.mubr.f32.vlgmr.msra.gmra.mrb[12].mxu1 %v6350_v17 }
 0x6be   :  { %4559 = vmatpush1.bf16.msra.mxu0 %v5942_v47  ;;  %4591 = vmatpush1.bf16.msra.mxu1 %v5945_v50  ;;  %v2059_v47 = vld [vmem:[#allocation11 + $0x8] sm:$0xff] }
 0x6bf   :  { %4561 = vmatprep.subr.bf16.mxu0 %v5948_v53  ;;  %4593 = vmatprep.subr.bf16.mxu1 %v5950_v56  ;;  %v2063_v50 = vld [vmem:[#allocation11 + $0x28] sm:$0xff]  ;;  %v2061_v53 = vld [vmem:[#allocation11 + $0x18] sm:$0xff] }
 0x6c0   :  { %1875 = vmatprep.mubr.f32.mxu0 %v5792_v0  ;;  %1946 = vmatprep.mubr.f32.mxu1 %v5792_v0  ;;  %v4620_v56 = vpack.c.bf16 %v2063_v50, %v2059_v47  ;;  %v2075_v47 = vld [vmem:[#allocation11 + $0x88] sm:$0xff] }
 0x6c1   :  { %v2079_v50 = vld [vmem:[#allocation11 + $0xa8] sm:$0xff] }
 0x6c2   :  { %4563 = vmatpush1.bf16.msra.mxu0 %v5953_v60  ;;  %4595 = vmatpush1.bf16.msra.mxu1 %v5957_v63  ;;  %v2065_v60 = vld [vmem:[#allocation11 + $0x38] sm:$0xff] }
 0x6c3   :  { %4565 = vmatprep.subr.bf16.mxu0 %v5961_v3  ;;  %4597 = vmatprep.subr.bf16.mxu1 %v5964_v6  ;;  %v4652_v63 = vpack.c.bf16 %v2065_v60, %v2061_v53  ;;  %v2077_v53 = vld [vmem:[#allocation11 + $0x98] sm:$0xff]  ;;  %v4626_v60 = vpack.c.bf16 %v2070_v12, %v2066_v24  ;;  %v4638_v24 = vpack.c.bf16 %v2094_v11, %v2090_v39  ;;  %v1987_v11 = vld [vmem:[#allocation14 + $0x10] sm:$0xff] }
 0x6c6   :  { %4567 = vmatpush1.bf16.msra.mxu0 %v5967_v10  ;;  %4599 = vmatpush1.bf16.msra.mxu1 %v5971_v13 }
 0x6c7   :  { %4569 = vmatprep.subr.bf16.mxu0 %v5975_v16  ;;  %4601 = vmatprep.subr.bf16.mxu1 %v5978_v19 }
 0x6ca   :  { %4571 = vmatpush1.bf16.msra.mxu0 %v5981_v23  ;;  %4603 = vmatpush1.bf16.msra.mxu1 %v5985_v26 }
 0x6cb   :  { %4573 = vmatprep.subr.bf16.mxu0 %v5989_v29  ;;  %4605 = vmatprep.subr.bf16.mxu1 %v5992_v32 }
 0x6ce   :  { %4575 = vmatpush1.bf16.msra.mxu0 %v5995_v36  ;;  %4607 = vmatpush1.bf16.msra.mxu1 %v5999_v40 }
 0x6cf   :  { %4577 = vmatprep.subr.bf16.mxu0 %v6003_v44  ;;  %4609 = vmatprep.subr.bf16.mxu1 %v6006_v48 }
 0x6d2   :  { %4579 = vmatpush1.bf16.msra.mxu0 %v6009_v54  ;;  %4611 = vmatpush1.bf16.msra.mxu1 %v6013_v58 }
 0x6d3   :  { %4581 = vmatprep.subr.bf16.mxu0 %v6017_v62  ;;  %4613 = vmatprep.subr.bf16.mxu1 %v6020_v4 }
 0x6d6   :  { %4583 = vmatpush1.bf16.msra.mxu0 %v6023_v9  ;;  %4615 = vmatpush1.bf16.msra.mxu1 %v6027_v14 }
 0x6d7   :  { %4585 = vmatprep.subr.bf16.mxu0 %v6031_v18  ;;  %4617 = vmatprep.subr.bf16.mxu1 %v6034_v22 }
 0x6da   :  { %4587 = vmatpush1.bf16.msra.mxu0 %v6037_v25  ;;  %4619 = vmatpush1.bf16.msra.mxu1 %v6041_v27  ;;  %v2058_v27 = vld [vmem:[#allocation11] sm:$0xff] }
 0x6db   :  { %4621 = vmatprep.subr.bf16.mxu0 %v4620_v56  ;;  %4653 = vmatprep.subr.bf16.mxu1 %v4652_v63  ;;  %v4622_v45 = vpack.c.bf16 %v2062_v51, %v2058_v27  ;;  %v2081_v56 = vld [vmem:[#allocation11 + $0xb8] sm:$0xff]  ;;  %v4658_v63 = vpack.c.bf16 %v2072_v28, %v2068_v5 }
 0x790   :  { %v1696_v3 = vpop.f32.mrb[12].mxu0  ;;  %v1767_v6 = vpop.f32.mrb[12].mxu1 }
 0x791   :  { %v5232_v10 = vadd.f32 %v1696_v3, %v6097_v35  ;;  %v1698_v13 = vpop.f32.mrb[13].mxu0  ;;  %v1769_v16 = vpop.f32.mrb[13].mxu1  ;;  %v5248_v36 = vadd.f32 %v1767_v6, %v6114_v1  ;;  %v2074_v3 = vld [vmem:[#allocation11 + $0x80] sm:$0xff] }
 0x792   :  { %v5233_v19 = vadd.f32 %v1698_v13, %v6101_v37  ;;  %v5249_v29 = vadd.f32 %v1769_v16, %v6108_v57  ;;  %v2078_v6 = vld [vmem:[#allocation11 + $0xa0] sm:$0xff]  ;;  %v4660_v13 = vpack.c.bf16 %v2081_v56, %v2077_v53  ;;  %v2076_v16 = vld [vmem:[#allocation11 + $0x90] sm:$0xff]  ;;  %v2107_v53 = vld [vmem:[#allocation11 + $0x188] sm:$0xff] }
 0x793   :  { %v3961_v23 = vmul.f32 -1.442695, %v5232_v10  ;;  %v4628_v10 = vpack.c.bf16 %v2079_v50, %v2075_v47  ;;  %v2100_v47 = vld [vmem:[#allocation11 + $0x150] sm:$0xff]  ;;  %v2111_v56 = vld [vmem:[#allocation11 + $0x1a8] sm:$0xff] }
 0x794   :  { %v3962_v26 = vmul.f32 -1.442695, %v5233_v19  ;;  %v3963_v32 = vmul.f32 -1.442695, %v5249_v29  ;;  %v2080_v19 = vld [vmem:[#allocation11 + $0xb0] sm:$0xff]  ;;  %v2085_v29 = vld [vmem:[#allocation11 + $0xd8] sm:$0xff] }
 0x795   :  { %5458 = vpow2.f32 %v3961_v23  ;;  %v2083_v23 = vld [vmem:[#allocation11 + $0xc8] sm:$0xff]  ;;  %v2104_v50 = vld [vmem:[#allocation11 + $0x170] sm:$0xff] }
 0x796   :  { %5460 = vpow2.f32 %v3962_v26  ;;  %v2087_v26 = vld [vmem:[#allocation11 + $0xe8] sm:$0xff] }
 0x797   :  { %5462 = vpow2.f32 %v3963_v32  ;;  %v2089_v32 = vld [vmem:[#allocation11 + $0xf8] sm:$0xff] }
 0x798   :  { %5464 = vtanh.f32 %v5248_v36  ;;  %v4630_v36 = vpack.c.bf16 %v2078_v6, %v2074_v3  ;;  %v4674_v6 = vpack.c.bf16 %v2104_v50, %v2100_v47  ;;  %v2006_v47 = vld [vmem:[#allocation14 + $0xa8] sm:$0xff]  ;;  %v2004_v50 = vld [vmem:[#allocation14 + $0x98] sm:$0xff] }
 0x79f   :  { %v5459_v40 = vpop.eup %5458 }
 0x7a0   :  { %v5461_v44 = vpop.eup %5460  ;;  %v1779_v48 = vadd.f32 1.0, %v5459_v40  ;;  %v4662_v40 = vpack.c.bf16 %v2080_v19, %v2076_v16  ;;  %v4644_v16 = vpack.c.bf16 %v2111_v56, %v2107_v53  ;;  %v2008_v56 = vld [vmem:[#allocation14 + $0xb8] sm:$0xff] }
 0x7a1   :  { %v1785_v54 = vadd.f32 1.0, %v5461_v44  ;;  %v5463_v58 = vpop.eup %5462  ;;  %v2082_v44 = vld [vmem:[#allocation11 + $0xc0] sm:$0xff] }
 0x7a2   :  { %5466 = vrcp.f32 %v1779_v48  ;;  %v5465_v62 = vpop.eup %5464  ;;  %v1792_v18 = vadd.f32 1.0, %v5463_v58  ;;  %v2086_v48 = vld [vmem:[#allocation11 + $0xe0] sm:$0xff]  ;;  %v4664_v58 = vpack.c.bf16 %v2089_v32, %v2085_v29  ;;  %v2115_v29 = vld [vmem:[#allocation11 + $0x1c8] sm:$0xff] }
 0x7a3   :  { %5468 = vrcp.f32 %v1785_v54  ;;  %v4632_v54 = vpack.c.bf16 %v2087_v26, %v2083_v23  ;;  %v4634_v27 = vpack.c.bf16 %v2086_v48, %v2082_v44  ;;  %v2108_v23 = vld [vmem:[#allocation11 + $0x190] sm:$0xff]  ;;  %v2119_v32 = vld [vmem:[#allocation11 + $0x1e8] sm:$0xff] }
 0x7a4   :  { %5470 = vrcp.f32 %v1792_v18  ;;  %v2093_v18 = vld [vmem:[#allocation11 + $0x118] sm:$0xff]  ;;  %v2112_v26 = vld [vmem:[#allocation11 + $0x1b0] sm:$0xff] }
 0x7a5   :  { %v4678_v48 = vpack.c.bf16 %v2112_v26, %v2108_v23  ;;  %v2014_v23 = vld [vmem:[#allocation14 + $0xe8] sm:$0xff]  ;;  %v2012_v26 = vld [vmem:[#allocation14 + $0xd8] sm:$0xff] }
 0x7ac   :  { %v5467_v4 = vpop.eup %5466 }
 0x7ad   :  { %v5469_v9 = vpop.eup %5468  ;;  %v1796_v14 = vmul.f32 %v5467_v4, %v5465_v62  ;;  %v2084_v62 = vld [vmem:[#allocation11 + $0xd0] sm:$0xff] }
 0x7ae   :  { %v1795_v22 = vmul.f32 %v5469_v9, %v6347_v20  ;;  %v5471_v61 = vpop.eup %5470  ;;  %v4656_v20 = vpack.c.bf16 %v2073_v41, %v2069_v52  ;;  %v2088_v4 = vld [vmem:[#allocation11 + $0xf0] sm:$0xff]  ;;  %v2091_v9 = vld [vmem:[#allocation11 + $0x108] sm:$0xff] }
 0x7af   :  { %v4666_v51 = vpack.c.bf16 %v2088_v4, %v2084_v62  ;;  %v2092_v52 = vld [vmem:[#allocation11 + $0x110] sm:$0xff]  ;;  %v2118_v4 = vld [vmem:[#allocation11 + $0x1e0] sm:$0xff] }
 0x7b0   :  { %v6391_v25 = vadd.f32 %v1796_v14, %v1795_v22  ;;  %v2095_v14 = vld [vmem:[#allocation11 + $0x128] sm:$0xff]  ;;  %v2097_v22 = vld [vmem:[#allocation11 + $0x138] sm:$0xff]  ;;  %v2096_v41 = vld [vmem:[#allocation11 + $0x130] sm:$0xff] }
 0x7b1   :  { %v4636_v49 = vpack.c.bf16 %v2095_v14, %v2091_v9  ;;  %v4668_v38 = vpack.c.bf16 %v2097_v22, %v2093_v18  ;;  %v4670_v12 = vpack.c.bf16 %v2096_v41, %v2092_v52  ;;  %v2116_v9 = vld [vmem:[#allocation11 + $0x1d0] sm:$0xff]  ;;  %v1998_v52 = vld [vmem:[#allocation14 + $0x68] sm:$0xff]  ;;  %v1996_v41 = vld [vmem:[#allocation14 + $0x58] sm:$0xff] }
 0x7b2   :  { %5472 = vtanh.f32 %v6391_v25  ;;  %v2120_v14 = vld [vmem:[#allocation11 + $0x1f0] sm:$0xff] }
 0x7b3   :  { %v4682_v22 = vpack.c.bf16 %v2120_v14, %v2116_v9  ;;  %v2022_v9 = vld [vmem:[#allocation14 + $0x128] sm:$0xff]  ;;  %v2020_v14 = vld [vmem:[#allocation14 + $0x118] sm:$0xff] }
 0x7bc   :  { %v5473_v33 = vpop.eup %5472 }
 0x7bd   :  { %v6394_v55 = vmul.f32 %v5473_v33, %v5471_v61  ;;  %v2099_v61 = vld [vmem:[#allocation11 + $0x148] sm:$0xff] }
 0x7be   :  { %v2103_v33 = vld [vmem:[#allocation11 + $0x168] sm:$0xff] }
 0x7bf   :  { %1876 = vmatmul.mubr.f32.vlgmr.msra.gmra.mrb[14].mxu0 %v6394_v55  ;;  %1947 = vmatmul.mubr.f32.vlgmr.msra.gmra.mrb[14].mxu1 %v6394_v55  ;;  %v4640_v5 = vpack.c.bf16 %v2103_v33, %v2099_v61  ;;  %v2000_v33 = vld [vmem:[#allocation14 + $0x78] sm:$0xff] }
 0x7c0   :  { %4623 = vmatpush1.bf16.msra.mxu0 %v4622_v45  ;;  %4655 = vmatpush1.bf16.msra.mxu1 %v4654_v7  ;;  %v2101_v45 = vld [vmem:[#allocation11 + $0x158] sm:$0xff] }
 0x7c1   :  { %4625 = vmatprep.subr.bf16.mxu0 %v4624_v21  ;;  %4657 = vmatprep.subr.bf16.mxu1 %v4656_v20  ;;  %v2105_v7 = vld [vmem:[#allocation11 + $0x178] sm:$0xff]  ;;  %v2098_v21 = vld [vmem:[#allocation11 + $0x140] sm:$0xff] }
 0x7c2   :  { %2207 = vmatprep.mubr.f32.mxu0 %v5792_v0  ;;  %2320 = vmatprep.mubr.f32.mxu1 %v5792_v0  ;;  %v2102_v20 = vld [vmem:[#allocation11 + $0x160] sm:$0xff]  ;;  %v4672_v28 = vpack.c.bf16 %v2105_v7, %v2101_v45 }
 0x7c3   :  { %v4642_v3 = vpack.c.bf16 %v2102_v20, %v2098_v21  ;;  %v1993_v45 = vld [vmem:[#allocation14 + $0x40] sm:$0xff]  ;;  %v1995_v21 = vld [vmem:[#allocation14 + $0x50] sm:$0xff] }
 0x7c4   :  { %4627 = vmatpush1.bf16.msra.mxu0 %v4626_v60  ;;  %4659 = vmatpush1.bf16.msra.mxu1 %v4658_v63  ;;  %v2109_v60 = vld [vmem:[#allocation11 + $0x198] sm:$0xff]  ;;  %v1997_v7 = vld [vmem:[#allocation14 + $0x60] sm:$0xff]  ;;  %v1999_v20 = vld [vmem:[#allocation14 + $0x70] sm:$0xff] }
 0x7c5   :  { %4629 = vmatprep.subr.bf16.mxu0 %v4628_v10  ;;  %4661 = vmatprep.subr.bf16.mxu1 %v4660_v13  ;;  %v2113_v63 = vld [vmem:[#allocation11 + $0x1b8] sm:$0xff]  ;;  %v2106_v10 = vld [vmem:[#allocation11 + $0x180] sm:$0xff] }
 0x7c6   :  { %v2110_v13 = vld [vmem:[#allocation11 + $0x1a0] sm:$0xff]  ;;  %v4676_v19 = vpack.c.bf16 %v2113_v63, %v2109_v60 }
 0x7c7   :  { %v4646_v44 = vpack.c.bf16 %v2110_v13, %v2106_v10  ;;  %v2001_v60 = vld [vmem:[#allocation14 + $0x80] sm:$0xff]  ;;  %v2003_v10 = vld [vmem:[#allocation14 + $0x90] sm:$0xff] }
 0x7c8   :  { %4631 = vmatpush1.bf16.msra.mxu0 %v4630_v36  ;;  %4663 = vmatpush1.bf16.msra.mxu1 %v4662_v40  ;;  %v2117_v36 = vld [vmem:[#allocation11 + $0x1d8] sm:$0xff]  ;;  %v2005_v63 = vld [vmem:[#allocation14 + $0xa0] sm:$0xff]  ;;  %v2007_v13 = vld [vmem:[#allocation14 + $0xb0] sm:$0xff] }
 0x7c9   :  { %4633 = vmatprep.subr.bf16.mxu0 %v4632_v54  ;;  %4665 = vmatprep.subr.bf16.mxu1 %v4664_v58  ;;  %v2121_v40 = vld [vmem:[#allocation11 + $0x1f8] sm:$0xff]  ;;  %v2114_v54 = vld [vmem:[#allocation11 + $0x1c0] sm:$0xff]  ;;  %v4648_v58 = vpack.c.bf16 %v2119_v32, %v2115_v29 }
 0x7ca   :  { %v4680_v62 = vpack.c.bf16 %v2121_v40, %v2117_v36  ;;  %v4650_v18 = vpack.c.bf16 %v2118_v4, %v2114_v54  ;;  %v2016_v32 = vld [vmem:[#allocation14 + $0xf8] sm:$0xff]  ;;  %v2009_v36 = vld [vmem:[#allocation14 + $0xc0] sm:$0xff]  ;;  %v2011_v54 = vld [vmem:[#allocation14 + $0xd0] sm:$0xff] }
 0x7cb   :  { %v2013_v40 = vld [vmem:[#allocation14 + $0xe0] sm:$0xff] }
 0x7cc   :  { %4635 = vmatpush1.bf16.msra.mxu0 %v4634_v27  ;;  %4667 = vmatpush1.bf16.msra.mxu1 %v4666_v51  ;;  %v1985_v27 = vld [vmem:[#allocation14] sm:$0xff] }
 0x7cd   :  { %4637 = vmatprep.subr.bf16.mxu0 %v4636_v49  ;;  %4669 = vmatprep.subr.bf16.mxu1 %v4668_v38  ;;  %v1991_v49 = vld [vmem:[#allocation14 + $0x30] sm:$0xff]  ;;  %v1994_v38 = vld [vmem:[#allocation14 + $0x48] sm:$0xff] }
 0x7ce   :  { %v6440_v61 = vpack.c.bf16 %v1998_v52, %v1994_v38 }
 0x7d0   :  { %4639 = vmatpush1.bf16.msra.mxu0 %v4638_v24  ;;  %4671 = vmatpush1.bf16.msra.mxu1 %v4670_v12  ;;  %v6442_v24 = vpack.c.bf16 %v2000_v33, %v1996_v41  ;;  %v6444_v12 = vpack.c.bf16 %v1997_v7, %v1993_v45  ;;  %v2028_v41 = vld [vmem:[#allocation14 + $0x158] sm:$0xff]  ;;  %v2025_v45 = vld [vmem:[#allocation14 + $0x140] sm:$0xff] }
 0x7d1   :  { %4641 = vmatprep.subr.bf16.mxu0 %v4640_v5  ;;  %4673 = vmatprep.subr.bf16.mxu1 %v4672_v28  ;;  %v6447_v5 = vpack.c.bf16 %v1999_v20, %v1995_v21  ;;  %v2002_v28 = vld [vmem:[#allocation14 + $0x88] sm:$0xff]  ;;  %v2032_v33 = vld [vmem:[#allocation14 + $0x178] sm:$0xff]  ;;  %v2029_v21 = vld [vmem:[#allocation14 + $0x160] sm:$0xff] }
 0x7d2   :  { %v6452_v53 = vpack.c.bf16 %v2006_v47, %v2002_v28  ;;  %v6488_v7 = vpack.c.bf16 %v2032_v33, %v2028_v41  ;;  %v2027_v20 = vld [vmem:[#allocation14 + $0x150] sm:$0xff]  ;;  %v6491_v47 = vpack.c.bf16 %v2029_v21, %v2025_v45 }
 0x7d3   :  { %v2031_v28 = vld [vmem:[#allocation14 + $0x170] sm:$0xff] }
 0x7d4   :  { %4643 = vmatpush1.bf16.msra.mxu0 %v4642_v3  ;;  %4675 = vmatpush1.bf16.msra.mxu1 %v4674_v6  ;;  %v6454_v3 = vpack.c.bf16 %v2008_v56, %v2004_v50  ;;  %v6456_v6 = vpack.c.bf16 %v2005_v63, %v2001_v60  ;;  %v2034_v50 = vld [vmem:[#allocation14 + $0x188] sm:$0xff]  ;;  %v2036_v60 = vld [vmem:[#allocation14 + $0x198] sm:$0xff]  ;;  %v6495_v63 = vpack.c.bf16 %v2031_v28, %v2027_v20 }
 0x7d5   :  { %4645 = vmatprep.subr.bf16.mxu0 %v4644_v16  ;;  %4677 = vmatprep.subr.bf16.mxu1 %v4676_v19  ;;  %v6459_v16 = vpack.c.bf16 %v2007_v13, %v2003_v10  ;;  %v2010_v19 = vld [vmem:[#allocation14 + $0xc8] sm:$0xff]  ;;  %v2040_v13 = vld [vmem:[#allocation14 + $0x1b8] sm:$0xff] }
 0x7d6   :  { %v6464_v29 = vpack.c.bf16 %v2014_v23, %v2010_v19  ;;  %v2038_v56 = vld [vmem:[#allocation14 + $0x1a8] sm:$0xff]  ;;  %v2033_v19 = vld [vmem:[#allocation14 + $0x180] sm:$0xff] }
 0x7d7   :  { %v6497_v10 = vpack.c.bf16 %v2038_v56, %v2034_v50  ;;  %v2037_v23 = vld [vmem:[#allocation14 + $0x1a0] sm:$0xff] }
 0x7d8   :  { %4647 = vmatpush1.bf16.msra.mxu0 %v4646_v44  ;;  %4679 = vmatpush1.bf16.msra.mxu1 %v4678_v48  ;;  %v6466_v44 = vpack.c.bf16 %v2016_v32, %v2012_v26  ;;  %v6468_v48 = vpack.c.bf16 %v2013_v40, %v2009_v36  ;;  %v6500_v26 = vpack.c.bf16 %v2040_v13, %v2036_v60  ;;  %v2035_v32 = vld [vmem:[#allocation14 + $0x190] sm:$0xff] }
 0x7d9   :  { %4649 = vmatprep.subr.bf16.mxu0 %v4648_v58  ;;  %4681 = vmatprep.subr.bf16.mxu1 %v4680_v62  ;;  %v2015_v58 = vld [vmem:[#allocation14 + $0xf0] sm:$0xff]  ;;  %v2018_v62 = vld [vmem:[#allocation14 + $0x108] sm:$0xff]  ;;  %v6503_v40 = vpack.c.bf16 %v2037_v23, %v2033_v19 }
 0x7da   :  { %v6471_v4 = vpack.c.bf16 %v2015_v58, %v2011_v54  ;;  %v2039_v36 = vld [vmem:[#allocation14 + $0x1b0] sm:$0xff]  ;;  %v2042_v58 = vld [vmem:[#allocation14 + $0x1c8] sm:$0xff] }
 0x7db   :  { %v6507_v54 = vpack.c.bf16 %v2039_v36, %v2035_v32 }
 0x7dc   :  { %4651 = vmatpush1.bf16.msra.mxu0 %v4650_v18  ;;  %4683 = vmatpush1.bf16.msra.mxu1 %v4682_v22  ;;  %v2024_v18 = vld [vmem:[#allocation14 + $0x138] sm:$0xff]  ;;  %v6475_v22 = vpack.c.bf16 %v2022_v9, %v2018_v62  ;;  %v2046_v62 = vld [vmem:[#allocation14 + $0x1e8] sm:$0xff] }
 0x7dd   :  { %v2044_v9 = vld [vmem:[#allocation14 + $0x1d8] sm:$0xff] }
 0x7df   :  { %2208 = vmatmul.mubr.f32.vlgmr.msra.gmra.mrb[16].mxu0 %v6120_v46  ;;  %2321 = vmatmul.mubr.f32.vlgmr.msra.gmra.mrb[16].mxu1 %v6120_v46  ;;  %v1986_v46 = vld [vmem:[#allocation14 + $0x8] sm:$0xff] }
 0x7e0   :  { %2213 = vmatprep.mubr.f32.mxu0 %v5792_v0  ;;  %2326 = vmatprep.mubr.f32.mxu1 %v5792_v0 }
 0x7e3   :  { %2214 = vmatmul.mubr.f32.gmra.mrb[18].mxu0 %v6166_v2  ;;  %2327 = vmatmul.mubr.f32.gmra.mrb[18].mxu1 %v6166_v2  ;;  %v1990_v2 = vld [vmem:[#allocation14 + $0x28] sm:$0xff] }
 0x7e4   :  { %2219 = vmatprep.mubr.f32.mxu0 %v5792_v0  ;;  %2332 = vmatprep.mubr.f32.mxu1 %v5792_v0 }
 0x7e7   :  { %2220 = vmatmul.mubr.f32.gmra.mrb[20].mxu0 %v6212_v15  ;;  %2333 = vmatmul.mubr.f32.gmra.mrb[20].mxu1 %v6212_v15  ;;  %v1988_v15 = vld [vmem:[#allocation14 + $0x18] sm:$0xff] }
 0x7e8   :  { %2225 = vmatprep.mubr.f32.mxu0 %v5792_v0  ;;  %2338 = vmatprep.mubr.f32.mxu1 %v5792_v0 }
 0x7eb   :  { %2226 = vmatmul.mubr.f32.gmra.mrb[22].mxu0 %v6258_v43  ;;  %2339 = vmatmul.mubr.f32.gmra.mrb[22].mxu1 %v6258_v43  ;;  %v6428_v43 = vpack.c.bf16 %v1990_v2, %v1986_v46  ;;  %v6477_v46 = vpack.c.bf16 %v2024_v18, %v2020_v14  ;;  %v2017_v2 = vld [vmem:[#allocation14 + $0x100] sm:$0xff]  ;;  %v6512_v14 = vpack.c.bf16 %v2046_v62, %v2042_v58  ;;  %v2048_v18 = vld [vmem:[#allocation14 + $0x1f8] sm:$0xff] }
 0x7ec   :  { %2231 = vmatprep.mubr.f32.mxu0 %v5792_v0  ;;  %2344 = vmatprep.mubr.f32.mxu1 %v5792_v0 }
 0x7ed   :  { %4685 = vmatprep.subr.bf16.mxu0 %v6428_v43 }
 0x7ef   :  { %2232 = vmatmul.mubr.f32.gmra.mrb[24].mxu0 %v6304_v8  ;;  %2345 = vmatmul.mubr.f32.gmra.mrb[24].mxu1 %v6304_v8  ;;  %v1992_v8 = vld [vmem:[#allocation14 + $0x38] sm:$0xff] }
 0x7f0   :  { %2237 = vmatprep.mubr.f32.mxu0 %v5792_v0  ;;  %2350 = vmatprep.mubr.f32.mxu1 %v5792_v0  ;;  %v6430_v51 = vpack.c.bf16 %v1992_v8, %v1988_v15  ;;  %v2021_v15 = vld [vmem:[#allocation14 + $0x120] sm:$0xff]  ;;  %v2019_v8 = vld [vmem:[#allocation14 + $0x110] sm:$0xff] }
 0x7f2   :  { %4717 = vmatprep.subr.bf16.mxu1 %v6430_v51 }
 0x7f3   :  { %2238 = vmatmul.mubr.f32.gmra.mrb[26].mxu0 %v6350_v17  ;;  %2351 = vmatmul.mubr.f32.gmra.mrb[26].mxu1 %v6350_v17  ;;  %v1989_v17 = vld [vmem:[#allocation14 + $0x20] sm:$0xff] }
 0x7f4   :  { %2243 = vmatprep.mubr.f32.mxu0 %v5792_v0  ;;  %2356 = vmatprep.mubr.f32.mxu1 %v5792_v0  ;;  %v6432_v39 = vpack.c.bf16 %v1989_v17, %v1985_v27  ;;  %v6480_v27 = vpack.c.bf16 %v2021_v15, %v2017_v2  ;;  %v2023_v17 = vld [vmem:[#allocation14 + $0x130] sm:$0xff]  ;;  %v2041_v2 = vld [vmem:[#allocation14 + $0x1c0] sm:$0xff] }
 0x7f5   :  { %v6484_v38 = vpack.c.bf16 %v2023_v17, %v2019_v8  ;;  %v2045_v15 = vld [vmem:[#allocation14 + $0x1e0] sm:$0xff]  ;;  %v6514_v8 = vpack.c.bf16 %v2048_v18, %v2044_v9 }
 0x7f6   :  { %4687 = vmatpush1.bf16.msra.mxu0 %v6432_v39  ;;  %v6516_v17 = vpack.c.bf16 %v2045_v15, %v2041_v2 }
 0x7f7   :  { %2244 = vmatmul.mubr.f32.gmra.mrb[28].mxu0 %v6394_v55  ;;  %2357 = vmatmul.mubr.f32.gmra.mrb[28].mxu1 %v6394_v55  ;;  %v6435_v55 = vpack.c.bf16 %v1991_v49, %v1987_v11  ;;  %v2026_v11 = vld [vmem:[#allocation14 + $0x148] sm:$0xff] }
 0x7f8   :  { %2249 = vmatprep.mubr.f32.mxu0 %v5792_v0  ;;  %2362 = vmatprep.mubr.f32.mxu1 %v5792_v0  ;;  %v2030_v49 = vld [vmem:[#allocation14 + $0x168] sm:$0xff] }
 0x7f9   :  { %4719 = vmatpush1.bf16.msra.mxu1 %v6435_v55  ;;  %4689 = vmatprep.subr.bf16.mxu0 %v6440_v61  ;;  %v6486_v52 = vpack.c.bf16 %v2030_v49, %v2026_v11  ;;  %v2043_v11 = vld [vmem:[#allocation14 + $0x1d0] sm:$0xff] }
 0x7fa   :  { %4721 = vmatprep.subr.bf16.mxu1 %v6442_v24  ;;  %4691 = vmatpush1.bf16.msra.mxu0 %v6444_v12  ;;  %v2047_v49 = vld [vmem:[#allocation14 + $0x1f0] sm:$0xff] }
 0x7fb   :  { %4693 = vmatprep.subr.bf16.mxu0 %v6452_v53  ;;  %v6519_v41 = vpack.c.bf16 %v2047_v49, %v2043_v11 }
 0x7fd   :  { %4723 = vmatpush1.bf16.msra.mxu1 %v6447_v5 }
 0x7fe   :  { %4725 = vmatprep.subr.bf16.mxu1 %v6454_v3  ;;  %4695 = vmatpush1.bf16.msra.mxu0 %v6456_v6 }
 0x7ff   :  { %4697 = vmatprep.subr.bf16.mxu0 %v6464_v29 }
 0x801   :  { %4727 = vmatpush1.bf16.msra.mxu1 %v6459_v16 }
 0x802   :  { %4729 = vmatprep.subr.bf16.mxu1 %v6466_v44  ;;  %4699 = vmatpush1.bf16.msra.mxu0 %v6468_v48 }
 0x803   :  { %4701 = vmatprep.subr.bf16.mxu0 %v6475_v22 }
 0x805   :  { %4731 = vmatpush1.bf16.msra.mxu1 %v6471_v4 }
 0x806   :  { %4733 = vmatprep.subr.bf16.mxu1 %v6477_v46  ;;  %4703 = vmatpush1.bf16.msra.mxu0 %v6480_v27 }
 0x807   :  { %4705 = vmatprep.subr.bf16.mxu0 %v6486_v52 }
 0x809   :  { %4735 = vmatpush1.bf16.msra.mxu1 %v6484_v38 }
 0x80a   :  { %4737 = vmatprep.subr.bf16.mxu1 %v6488_v7  ;;  %4707 = vmatpush1.bf16.msra.mxu0 %v6491_v47 }
 0x80b   :  { %4709 = vmatprep.subr.bf16.mxu0 %v6497_v10 }
 0x80d   :  { %4739 = vmatpush1.bf16.msra.mxu1 %v6495_v63 }
 0x80e   :  { %4741 = vmatprep.subr.bf16.mxu1 %v6500_v26  ;;  %4711 = vmatpush1.bf16.msra.mxu0 %v6503_v40 }
 0x80f   :  { %4713 = vmatprep.subr.bf16.mxu0 %v6512_v14 }
 0x811   :  { %4743 = vmatpush1.bf16.msra.mxu1 %v6507_v54 }
 0x812   :  { %4745 = vmatprep.subr.bf16.mxu1 %v6514_v8  ;;  %4715 = vmatpush1.bf16.msra.mxu0 %v6516_v17 }
 0x813   :  { %4749 = vmatprep.subr.bf16.mxu0 %v6428_v43 }
 0x815   :  { %4747 = vmatpush1.bf16.msra.mxu1 %v6519_v41 }
 0x816   :  { %4781 = vmatprep.subr.bf16.mxu1 %v6430_v51 }
 0x892   :  { %v1877_v33 = vpop.f32.mrb[14].mxu0  ;;  %v1948_v45 = vpop.f32.mrb[14].mxu1 }
 0x893   :  { %v5234_v21 = vadd.f32 %v1877_v33, %v6097_v35  ;;  %v1879_v20 = vpop.f32.mrb[15].mxu0  ;;  %v1950_v28 = vpop.f32.mrb[15].mxu1  ;;  %v5250_v23 = vadd.f32 %v1948_v45, %v6114_v1 }
 0x894   :  { %v5235_v50 = vadd.f32 %v1879_v20, %v6101_v37  ;;  %v5251_v13 = vadd.f32 %v1950_v28, %v6108_v57 }
 0x895   :  { %v3964_v56 = vmul.f32 -1.442695, %v5234_v21 }
 0x896   :  { %v3965_v60 = vmul.f32 -1.442695, %v5235_v50  ;;  %v3966_v19 = vmul.f32 -1.442695, %v5251_v13 }
 0x897   :  { %5474 = vpow2.f32 %v3964_v56 }
 0x898   :  { %5476 = vpow2.f32 %v3965_v60 }
 0x899   :  { %5478 = vpow2.f32 %v3966_v19 }
 0x89a   :  { %5480 = vtanh.f32 %v5250_v23 }
 0x8a1   :  { %v5475_v32 = vpop.eup %5474 }
 0x8a2   :  { %v5477_v36 = vpop.eup %5476  ;;  %v1960_v58 = vadd.f32 1.0, %v5475_v32 }
 0x8a3   :  { %v1966_v62 = vadd.f32 1.0, %v5477_v36  ;;  %v5479_v35 = vpop.eup %5478 }
 0x8a4   :  { %5482 = vrcp.f32 %v1960_v58  ;;  %v5481_v9 = vpop.eup %5480  ;;  %v1973_v15 = vadd.f32 1.0, %v5479_v35 }
 0x8a5   :  { %5484 = vrcp.f32 %v1966_v62 }
 0x8a6   :  { %5486 = vrcp.f32 %v1973_v15 }
 0x8ae   :  { %v5483_v37 = vpop.eup %5482 }
 0x8af   :  { %v5485_v18 = vpop.eup %5484  ;;  %v1977_v2 = vmul.f32 %v5483_v37, %v5481_v9 }
 0x8b0   :  { %v1976_v11 = vmul.f32 %v5485_v18, %v6391_v25  ;;  %v5487_v1 = vpop.eup %5486  ;;  %v2049_v25 = vld [vmem:[%s6872_s6] sm:$0xf] }
 0x8b1   :  { %v6574_v45 = vrot.slane %v2049_v25, %v263_v31  ;;  %v6578_v21 = vrot.slane %v2049_v25, %v267_v34  ;;  %v6584_v32 = vrot.slane %v2049_v25, %v275_v42  ;;  %v6589_v34 = vrot.slane %v2049_v25, %v271_v59 }
 0x8b2   :  { %v1978_v57 = vadd.f32 %v1977_v2, %v1976_v11 }
 0x8b4   :  { %5488 = vtanh.f32 %v1978_v57 }
 0x8be   :  { %v5489_v49 = vpop.eup %5488 }
 0x8bf   :  { %v1980_v33 = vmul.f32 %v5489_v49, %v5487_v1 }
 0x8c1   :  { %2250 = vmatmul.mubr.f32.gmra.mrb[30].mxu0 %v1980_v33  ;;  %2363 = vmatmul.mubr.f32.gmra.mrb[30].mxu1 %v1980_v33 }
 0x8c2   :  { %2473 = vmatprep.mubr.f32.mxu0 %v5792_v0  ;;  %2544 = vmatprep.mubr.f32.mxu1 %v5792_v0 }
 0x8c5   :  { %2474 = vmatmul.mubr.f32.vlgmr.msra.gmra.mrb[16].mxu0 %v5792_v0  ;;  %2545 = vmatmul.mubr.f32.vlgmr.msra.gmra.mrb[16].mxu1 %v5792_v0 }
 0x8c6   :  { %4751 = vmatpush1.bf16.msra.mxu0 %v6432_v39  ;;  %4783 = vmatpush1.bf16.msra.mxu1 %v6435_v55 }
 0x8c7   :  { %4753 = vmatprep.subr.bf16.mxu0 %v6440_v61  ;;  %4785 = vmatprep.subr.bf16.mxu1 %v6442_v24 }
 0x8c8   :  { %2651 = vmatprep.mubr.f32.mxu0 %v5792_v0  ;;  %2722 = vmatprep.mubr.f32.mxu1 %v5792_v0 }
 0x8ca   :  { %4755 = vmatpush1.bf16.msra.mxu0 %v6444_v12  ;;  %4787 = vmatpush1.bf16.msra.mxu1 %v6447_v5 }
 0x8cb   :  { %4757 = vmatprep.subr.bf16.mxu0 %v6452_v53  ;;  %4789 = vmatprep.subr.bf16.mxu1 %v6454_v3 }
 0x8ce   :  { %4759 = vmatpush1.bf16.msra.mxu0 %v6456_v6  ;;  %4791 = vmatpush1.bf16.msra.mxu1 %v6459_v16 }
 0x8cf   :  { %4761 = vmatprep.subr.bf16.mxu0 %v6464_v29  ;;  %4793 = vmatprep.subr.bf16.mxu1 %v6466_v44 }
 0x8d2   :  { %4763 = vmatpush1.bf16.msra.mxu0 %v6468_v48  ;;  %4795 = vmatpush1.bf16.msra.mxu1 %v6471_v4 }
 0x8d3   :  { %4765 = vmatprep.subr.bf16.mxu0 %v6475_v22  ;;  %4797 = vmatprep.subr.bf16.mxu1 %v6477_v46 }
 0x8d6   :  { %4767 = vmatpush1.bf16.msra.mxu0 %v6480_v27  ;;  %4799 = vmatpush1.bf16.msra.mxu1 %v6484_v38 }
 0x8d7   :  { %4769 = vmatprep.subr.bf16.mxu0 %v6486_v52  ;;  %4801 = vmatprep.subr.bf16.mxu1 %v6488_v7 }
 0x8da   :  { %4771 = vmatpush1.bf16.msra.mxu0 %v6491_v47  ;;  %4803 = vmatpush1.bf16.msra.mxu1 %v6495_v63 }
 0x8db   :  { %4773 = vmatprep.subr.bf16.mxu0 %v6497_v10  ;;  %4805 = vmatprep.subr.bf16.mxu1 %v6500_v26 }
 0x8de   :  { %4775 = vmatpush1.bf16.msra.mxu0 %v6503_v40  ;;  %4807 = vmatpush1.bf16.msra.mxu1 %v6507_v54 }
 0x8df   :  { %4777 = vmatprep.subr.bf16.mxu0 %v6512_v14  ;;  %4809 = vmatprep.subr.bf16.mxu1 %v6514_v8 }
 0x8e2   :  { %4779 = vmatpush1.bf16.msra.mxu0 %v6516_v17  ;;  %4811 = vmatpush1.bf16.msra.mxu1 %v6519_v41 }
 0x8e3   :  { %4813 = vmatprep.subr.bf16.mxu0 %v6428_v43  ;;  %4845 = vmatprep.subr.bf16.mxu1 %v6430_v51 }
 0x998   :  { %v2475_v20 = vpop.f32.mrb[16].mxu0  ;;  %v2546_v28 = vpop.f32.mrb[16].mxu1 }
 0x999   :  { %v5252_v50 = vadd.f32 %v2475_v20, %v6574_v45  ;;  %v2477_v56 = vpop.f32.mrb[17].mxu0  ;;  %v2548_v60 = vpop.f32.mrb[17].mxu1  ;;  %v5268_v58 = vadd.f32 %v2546_v28, %v6589_v34 }
 0x99a   :  { %v5253_v13 = vadd.f32 %v2477_v56, %v6578_v21  ;;  %v5269_v31 = vadd.f32 %v2548_v60, %v6584_v32 }
 0x99b   :  { %v3967_v19 = vmul.f32 -1.442695, %v5252_v50 }
 0x99c   :  { %v3968_v23 = vmul.f32 -1.442695, %v5253_v13  ;;  %v3969_v36 = vmul.f32 -1.442695, %v5269_v31 }
 0x99d   :  { %5490 = vpow2.f32 %v3967_v19 }
 0x99e   :  { %5492 = vpow2.f32 %v3968_v23 }
 0x99f   :  { %5494 = vpow2.f32 %v3969_v36 }
 0x9a0   :  { %5496 = vtanh.f32 %v5268_v58 }
 0x9a7   :  { %v5491_v62 = vpop.eup %5490 }
 0x9a8   :  { %v5493_v35 = vpop.eup %5492  ;;  %v2558_v9 = vadd.f32 1.0, %v5491_v62 }
 0x9a9   :  { %v2564_v37 = vadd.f32 1.0, %v5493_v35  ;;  %v5495_v42 = vpop.eup %5494 }
 0x9aa   :  { %5498 = vrcp.f32 %v2558_v9  ;;  %v5497_v18 = vpop.eup %5496  ;;  %v2571_v57 = vadd.f32 1.0, %v5495_v42 }
 0x9ab   :  { %5500 = vrcp.f32 %v2564_v37 }
 0x9ac   :  { %5502 = vrcp.f32 %v2571_v57 }
 0x9b4   :  { %v5499_v2 = vpop.eup %5498 }
 0x9b5   :  { %v5501_v15 = vpop.eup %5500  ;;  %v2575_v11 = vmul.f32 %v5499_v2, %v5497_v18 }
 0x9b6   :  { %v2574_v30 = vmul.f32 0.0, %v5501_v15  ;;  %v5503_v1 = vpop.eup %5502 }
 0x9b8   :  { %v6592_v59 = vadd.f32 %v2575_v11, %v2574_v30 }
 0x9ba   :  { %5504 = vtanh.f32 %v6592_v59 }
 0x9c4   :  { %v5505_v49 = vpop.eup %5504 }
 0x9c5   :  { %v2578_v33 = vmul.f32 %v5505_v49, %v5503_v1 }
 0x9c7   :  { %2652 = vmatmul.mubr.f32.vlgmr.msra.gmra.mrb[18].mxu0 %v2578_v33  ;;  %2723 = vmatmul.mubr.f32.vlgmr.msra.gmra.mrb[18].mxu1 %v2578_v33 }
 0x9c8   :  { %4815 = vmatpush1.bf16.msra.mxu0 %v6432_v39  ;;  %4847 = vmatpush1.bf16.msra.mxu1 %v6435_v55 }
 0x9c9   :  { %4817 = vmatprep.subr.bf16.mxu0 %v6440_v61  ;;  %4849 = vmatprep.subr.bf16.mxu1 %v6442_v24 }
 0x9ca   :  { %2829 = vmatprep.mubr.f32.mxu0 %v5792_v0  ;;  %2900 = vmatprep.mubr.f32.mxu1 %v5792_v0 }
 0x9cc   :  { %4819 = vmatpush1.bf16.msra.mxu0 %v6444_v12  ;;  %4851 = vmatpush1.bf16.msra.mxu1 %v6447_v5 }
 0x9cd   :  { %4821 = vmatprep.subr.bf16.mxu0 %v6452_v53  ;;  %4853 = vmatprep.subr.bf16.mxu1 %v6454_v3 }
 0x9d0   :  { %4823 = vmatpush1.bf16.msra.mxu0 %v6456_v6  ;;  %4855 = vmatpush1.bf16.msra.mxu1 %v6459_v16 }
 0x9d1   :  { %4825 = vmatprep.subr.bf16.mxu0 %v6464_v29  ;;  %4857 = vmatprep.subr.bf16.mxu1 %v6466_v44 }
 0x9d4   :  { %4827 = vmatpush1.bf16.msra.mxu0 %v6468_v48  ;;  %4859 = vmatpush1.bf16.msra.mxu1 %v6471_v4 }
 0x9d5   :  { %4829 = vmatprep.subr.bf16.mxu0 %v6475_v22  ;;  %4861 = vmatprep.subr.bf16.mxu1 %v6477_v46 }
 0x9d8   :  { %4831 = vmatpush1.bf16.msra.mxu0 %v6480_v27  ;;  %4863 = vmatpush1.bf16.msra.mxu1 %v6484_v38 }
 0x9d9   :  { %4833 = vmatprep.subr.bf16.mxu0 %v6486_v52  ;;  %4865 = vmatprep.subr.bf16.mxu1 %v6488_v7 }
 0x9dc   :  { %4835 = vmatpush1.bf16.msra.mxu0 %v6491_v47  ;;  %4867 = vmatpush1.bf16.msra.mxu1 %v6495_v63 }
 0x9dd   :  { %4837 = vmatprep.subr.bf16.mxu0 %v6497_v10  ;;  %4869 = vmatprep.subr.bf16.mxu1 %v6500_v26 }
 0x9e0   :  { %4839 = vmatpush1.bf16.msra.mxu0 %v6503_v40  ;;  %4871 = vmatpush1.bf16.msra.mxu1 %v6507_v54 }
 0x9e1   :  { %4841 = vmatprep.subr.bf16.mxu0 %v6512_v14  ;;  %4873 = vmatprep.subr.bf16.mxu1 %v6514_v8 }
 0x9e4   :  { %4843 = vmatpush1.bf16.msra.mxu0 %v6516_v17  ;;  %4875 = vmatpush1.bf16.msra.mxu1 %v6519_v41 }
 0x9e5   :  { %4877 = vmatprep.subr.bf16.mxu0 %v6428_v43  ;;  %4909 = vmatprep.subr.bf16.mxu1 %v6430_v51 }
 0xa9a   :  { %v2653_v25 = vpop.f32.mrb[18].mxu0  ;;  %v2724_v20 = vpop.f32.mrb[18].mxu1 }
 0xa9b   :  { %v5254_v28 = vadd.f32 %v2653_v25, %v6574_v45  ;;  %v2655_v50 = vpop.f32.mrb[19].mxu0  ;;  %v2726_v56 = vpop.f32.mrb[19].mxu1  ;;  %v5270_v36 = vadd.f32 %v2724_v20, %v6589_v34 }
 0xa9c   :  { %v5255_v60 = vadd.f32 %v2655_v50, %v6578_v21  ;;  %v5271_v23 = vadd.f32 %v2726_v56, %v6584_v32 }
 0xa9d   :  { %v3970_v13 = vmul.f32 -1.442695, %v5254_v28 }
 0xa9e   :  { %v3971_v19 = vmul.f32 -1.442695, %v5255_v60  ;;  %v3972_v31 = vmul.f32 -1.442695, %v5271_v23 }
 0xa9f   :  { %5506 = vpow2.f32 %v3970_v13 }
 0xaa0   :  { %5508 = vpow2.f32 %v3971_v19 }
 0xaa1   :  { %5510 = vpow2.f32 %v3972_v31 }
 0xaa2   :  { %5512 = vtanh.f32 %v5270_v36 }
 0xaa9   :  { %v5507_v58 = vpop.eup %5506 }
 0xaaa   :  { %v5509_v62 = vpop.eup %5508  ;;  %v2736_v35 = vadd.f32 1.0, %v5507_v58 }
 0xaab   :  { %v2742_v9 = vadd.f32 1.0, %v5509_v62  ;;  %v5511_v37 = vpop.eup %5510 }
 0xaac   :  { %5514 = vrcp.f32 %v2736_v35  ;;  %v5513_v42 = vpop.eup %5512  ;;  %v2749_v11 = vadd.f32 1.0, %v5511_v37 }
 0xaad   :  { %5516 = vrcp.f32 %v2742_v9 }
 0xaae   :  { %5518 = vrcp.f32 %v2749_v11 }
 0xab6   :  { %v5515_v18 = vpop.eup %5514 }
 0xab7   :  { %v5517_v2 = vpop.eup %5516  ;;  %v2753_v15 = vmul.f32 %v5515_v18, %v5513_v42 }
 0xab8   :  { %v2752_v57 = vmul.f32 %v5517_v2, %v6592_v59  ;;  %v5519_v1 = vpop.eup %5518 }
 0xaba   :  { %v6634_v30 = vadd.f32 %v2753_v15, %v2752_v57 }
 0xabc   :  { %5520 = vtanh.f32 %v6634_v30 }
 0xac6   :  { %v5521_v49 = vpop.eup %5520 }
 0xac7   :  { %v2756_v33 = vmul.f32 %v5521_v49, %v5519_v1 }
 0xac9   :  { %2830 = vmatmul.mubr.f32.vlgmr.msra.gmra.mrb[20].mxu0 %v2756_v33  ;;  %2901 = vmatmul.mubr.f32.vlgmr.msra.gmra.mrb[20].mxu1 %v2756_v33 }
 0xaca   :  { %4879 = vmatpush1.bf16.msra.mxu0 %v6432_v39  ;;  %4911 = vmatpush1.bf16.msra.mxu1 %v6435_v55 }
 0xacb   :  { %4881 = vmatprep.subr.bf16.mxu0 %v6440_v61  ;;  %4913 = vmatprep.subr.bf16.mxu1 %v6442_v24 }
 0xacc   :  { %3007 = vmatprep.mubr.f32.mxu0 %v5792_v0  ;;  %3078 = vmatprep.mubr.f32.mxu1 %v5792_v0 }
 0xace   :  { %4883 = vmatpush1.bf16.msra.mxu0 %v6444_v12  ;;  %4915 = vmatpush1.bf16.msra.mxu1 %v6447_v5 }
 0xacf   :  { %4885 = vmatprep.subr.bf16.mxu0 %v6452_v53  ;;  %4917 = vmatprep.subr.bf16.mxu1 %v6454_v3 }
 0xad2   :  { %4887 = vmatpush1.bf16.msra.mxu0 %v6456_v6  ;;  %4919 = vmatpush1.bf16.msra.mxu1 %v6459_v16 }
 0xad3   :  { %4889 = vmatprep.subr.bf16.mxu0 %v6464_v29  ;;  %4921 = vmatprep.subr.bf16.mxu1 %v6466_v44 }
 0xad6   :  { %4891 = vmatpush1.bf16.msra.mxu0 %v6468_v48  ;;  %4923 = vmatpush1.bf16.msra.mxu1 %v6471_v4 }
 0xad7   :  { %4893 = vmatprep.subr.bf16.mxu0 %v6475_v22  ;;  %4925 = vmatprep.subr.bf16.mxu1 %v6477_v46 }
 0xada   :  { %4895 = vmatpush1.bf16.msra.mxu0 %v6480_v27  ;;  %4927 = vmatpush1.bf16.msra.mxu1 %v6484_v38 }
 0xadb   :  { %4897 = vmatprep.subr.bf16.mxu0 %v6486_v52  ;;  %4929 = vmatprep.subr.bf16.mxu1 %v6488_v7 }
 0xade   :  { %4899 = vmatpush1.bf16.msra.mxu0 %v6491_v47  ;;  %4931 = vmatpush1.bf16.msra.mxu1 %v6495_v63 }
 0xadf   :  { %4901 = vmatprep.subr.bf16.mxu0 %v6497_v10  ;;  %4933 = vmatprep.subr.bf16.mxu1 %v6500_v26 }
 0xae2   :  { %4903 = vmatpush1.bf16.msra.mxu0 %v6503_v40  ;;  %4935 = vmatpush1.bf16.msra.mxu1 %v6507_v54 }
 0xae3   :  { %4905 = vmatprep.subr.bf16.mxu0 %v6512_v14  ;;  %4937 = vmatprep.subr.bf16.mxu1 %v6514_v8 }
 0xae6   :  { %4907 = vmatpush1.bf16.msra.mxu0 %v6516_v17  ;;  %4939 = vmatpush1.bf16.msra.mxu1 %v6519_v41 }
 0xae7   :  { %4941 = vmatprep.subr.bf16.mxu0 %v6428_v43  ;;  %4973 = vmatprep.subr.bf16.mxu1 %v6430_v51 }
 0xb9c   :  { %v2831_v59 = vpop.f32.mrb[20].mxu0  ;;  %v2902_v25 = vpop.f32.mrb[20].mxu1 }
 0xb9d   :  { %v5256_v20 = vadd.f32 %v2831_v59, %v6574_v45  ;;  %v2833_v28 = vpop.f32.mrb[21].mxu0  ;;  %v2904_v50 = vpop.f32.mrb[21].mxu1  ;;  %v5272_v31 = vadd.f32 %v2902_v25, %v6589_v34 }
 0xb9e   :  { %v5257_v56 = vadd.f32 %v2833_v28, %v6578_v21  ;;  %v5273_v19 = vadd.f32 %v2904_v50, %v6584_v32 }
 0xb9f   :  { %v3973_v60 = vmul.f32 -1.442695, %v5256_v20 }
 0xba0   :  { %v3974_v13 = vmul.f32 -1.442695, %v5257_v56  ;;  %v3975_v23 = vmul.f32 -1.442695, %v5273_v19 }
 0xba1   :  { %5522 = vpow2.f32 %v3973_v60 }
 0xba2   :  { %5524 = vpow2.f32 %v3974_v13 }
 0xba3   :  { %5526 = vpow2.f32 %v3975_v23 }
 0xba4   :  { %5528 = vtanh.f32 %v5272_v31 }
 0xbab   :  { %v5523_v36 = vpop.eup %5522 }
 0xbac   :  { %v5525_v58 = vpop.eup %5524  ;;  %v2914_v62 = vadd.f32 1.0, %v5523_v36 }
 0xbad   :  { %v2920_v35 = vadd.f32 1.0, %v5525_v58  ;;  %v5527_v9 = vpop.eup %5526 }
 0xbae   :  { %5530 = vrcp.f32 %v2914_v62  ;;  %v5529_v37 = vpop.eup %5528  ;;  %v2927_v15 = vadd.f32 1.0, %v5527_v9 }
 0xbaf   :  { %5532 = vrcp.f32 %v2920_v35 }
 0xbb0   :  { %5534 = vrcp.f32 %v2927_v15 }
 0xbb8   :  { %v5531_v42 = vpop.eup %5530 }
 0xbb9   :  { %v5533_v18 = vpop.eup %5532  ;;  %v2931_v2 = vmul.f32 %v5531_v42, %v5529_v37 }
 0xbba   :  { %v2930_v11 = vmul.f32 %v5533_v18, %v6634_v30  ;;  %v5535_v1 = vpop.eup %5534 }
 0xbbc   :  { %v6676_v57 = vadd.f32 %v2931_v2, %v2930_v11 }
 0xbbe   :  { %5536 = vtanh.f32 %v6676_v57 }
 0xbc8   :  { %v5537_v49 = vpop.eup %5536 }
 0xbc9   :  { %v2934_v33 = vmul.f32 %v5537_v49, %v5535_v1 }
 0xbcb   :  { %3008 = vmatmul.mubr.f32.vlgmr.msra.gmra.mrb[22].mxu0 %v2934_v33  ;;  %3079 = vmatmul.mubr.f32.vlgmr.msra.gmra.mrb[22].mxu1 %v2934_v33 }
 0xbcc   :  { %4943 = vmatpush1.bf16.msra.mxu0 %v6432_v39  ;;  %4975 = vmatpush1.bf16.msra.mxu1 %v6435_v55 }
 0xbcd   :  { %4945 = vmatprep.subr.bf16.mxu0 %v6440_v61  ;;  %4977 = vmatprep.subr.bf16.mxu1 %v6442_v24 }
 0xbce   :  { %3185 = vmatprep.mubr.f32.mxu0 %v5792_v0  ;;  %3256 = vmatprep.mubr.f32.mxu1 %v5792_v0 }
 0xbd0   :  { %4947 = vmatpush1.bf16.msra.mxu0 %v6444_v12  ;;  %4979 = vmatpush1.bf16.msra.mxu1 %v6447_v5 }
 0xbd1   :  { %4949 = vmatprep.subr.bf16.mxu0 %v6452_v53  ;;  %4981 = vmatprep.subr.bf16.mxu1 %v6454_v3 }
 0xbd4   :  { %4951 = vmatpush1.bf16.msra.mxu0 %v6456_v6  ;;  %4983 = vmatpush1.bf16.msra.mxu1 %v6459_v16 }
 0xbd5   :  { %4953 = vmatprep.subr.bf16.mxu0 %v6464_v29  ;;  %4985 = vmatprep.subr.bf16.mxu1 %v6466_v44 }
 0xbd8   :  { %4955 = vmatpush1.bf16.msra.mxu0 %v6468_v48  ;;  %4987 = vmatpush1.bf16.msra.mxu1 %v6471_v4 }
 0xbd9   :  { %4957 = vmatprep.subr.bf16.mxu0 %v6475_v22  ;;  %4989 = vmatprep.subr.bf16.mxu1 %v6477_v46 }
 0xbdc   :  { %4959 = vmatpush1.bf16.msra.mxu0 %v6480_v27  ;;  %4991 = vmatpush1.bf16.msra.mxu1 %v6484_v38 }
 0xbdd   :  { %4961 = vmatprep.subr.bf16.mxu0 %v6486_v52  ;;  %4993 = vmatprep.subr.bf16.mxu1 %v6488_v7 }
 0xbe0   :  { %4963 = vmatpush1.bf16.msra.mxu0 %v6491_v47  ;;  %4995 = vmatpush1.bf16.msra.mxu1 %v6495_v63 }
 0xbe1   :  { %4965 = vmatprep.subr.bf16.mxu0 %v6497_v10  ;;  %4997 = vmatprep.subr.bf16.mxu1 %v6500_v26 }
 0xbe4   :  { %4967 = vmatpush1.bf16.msra.mxu0 %v6503_v40  ;;  %4999 = vmatpush1.bf16.msra.mxu1 %v6507_v54 }
 0xbe5   :  { %4969 = vmatprep.subr.bf16.mxu0 %v6512_v14  ;;  %5001 = vmatprep.subr.bf16.mxu1 %v6514_v8 }
 0xbe8   :  { %4971 = vmatpush1.bf16.msra.mxu0 %v6516_v17  ;;  %5003 = vmatpush1.bf16.msra.mxu1 %v6519_v41 }
 0xbe9   :  { %5005 = vmatprep.subr.bf16.mxu0 %v6428_v43  ;;  %5037 = vmatprep.subr.bf16.mxu1 %v6430_v51 }
 0xc9e   :  { %v3009_v30 = vpop.f32.mrb[22].mxu0  ;;  %v3080_v59 = vpop.f32.mrb[22].mxu1 }
 0xc9f   :  { %v5258_v25 = vadd.f32 %v3009_v30, %v6574_v45  ;;  %v3011_v20 = vpop.f32.mrb[23].mxu0  ;;  %v3082_v28 = vpop.f32.mrb[23].mxu1  ;;  %v5274_v23 = vadd.f32 %v3080_v59, %v6589_v34 }
 0xca0   :  { %v5259_v50 = vadd.f32 %v3011_v20, %v6578_v21  ;;  %v5275_v13 = vadd.f32 %v3082_v28, %v6584_v32 }
 0xca1   :  { %v3976_v56 = vmul.f32 -1.442695, %v5258_v25 }
 0xca2   :  { %v3977_v60 = vmul.f32 -1.442695, %v5259_v50  ;;  %v3978_v19 = vmul.f32 -1.442695, %v5275_v13 }
 0xca3   :  { %5538 = vpow2.f32 %v3976_v56 }
 0xca4   :  { %5540 = vpow2.f32 %v3977_v60 }
 0xca5   :  { %5542 = vpow2.f32 %v3978_v19 }
 0xca6   :  { %5544 = vtanh.f32 %v5274_v23 }
 0xcad   :  { %v5539_v31 = vpop.eup %5538 }
 0xcae   :  { %v5541_v36 = vpop.eup %5540  ;;  %v3092_v58 = vadd.f32 1.0, %v5539_v31 }
 0xcaf   :  { %v3098_v62 = vadd.f32 1.0, %v5541_v36  ;;  %v5543_v35 = vpop.eup %5542 }
 0xcb0   :  { %5546 = vrcp.f32 %v3092_v58  ;;  %v5545_v9 = vpop.eup %5544  ;;  %v3105_v2 = vadd.f32 1.0, %v5543_v35 }
 0xcb1   :  { %5548 = vrcp.f32 %v3098_v62 }
 0xcb2   :  { %5550 = vrcp.f32 %v3105_v2 }
 0xcba   :  { %v5547_v37 = vpop.eup %5546 }
 0xcbb   :  { %v5549_v42 = vpop.eup %5548  ;;  %v3109_v18 = vmul.f32 %v5547_v37, %v5545_v9 }
 0xcbc   :  { %v3108_v15 = vmul.f32 %v5549_v42, %v6676_v57  ;;  %v5551_v1 = vpop.eup %5550 }
 0xcbe   :  { %v6718_v11 = vadd.f32 %v3109_v18, %v3108_v15 }
 0xcc0   :  { %5552 = vtanh.f32 %v6718_v11 }
 0xcca   :  { %v5553_v49 = vpop.eup %5552 }
 0xccb   :  { %v3112_v33 = vmul.f32 %v5553_v49, %v5551_v1 }
 0xccd   :  { %3186 = vmatmul.mubr.f32.vlgmr.msra.gmra.mrb[24].mxu0 %v3112_v33  ;;  %3257 = vmatmul.mubr.f32.vlgmr.msra.gmra.mrb[24].mxu1 %v3112_v33 }
 0xcce   :  { %5007 = vmatpush1.bf16.msra.mxu0 %v6432_v39  ;;  %5039 = vmatpush1.bf16.msra.mxu1 %v6435_v55 }
 0xccf   :  { %5009 = vmatprep.subr.bf16.mxu0 %v6440_v61  ;;  %5041 = vmatprep.subr.bf16.mxu1 %v6442_v24 }
 0xcd0   :  { %3363 = vmatprep.mubr.f32.mxu0 %v5792_v0  ;;  %3434 = vmatprep.mubr.f32.mxu1 %v5792_v0 }
 0xcd2   :  { %5011 = vmatpush1.bf16.msra.mxu0 %v6444_v12  ;;  %5043 = vmatpush1.bf16.msra.mxu1 %v6447_v5 }
 0xcd3   :  { %5013 = vmatprep.subr.bf16.mxu0 %v6452_v53  ;;  %5045 = vmatprep.subr.bf16.mxu1 %v6454_v3 }
 0xcd6   :  { %5015 = vmatpush1.bf16.msra.mxu0 %v6456_v6  ;;  %5047 = vmatpush1.bf16.msra.mxu1 %v6459_v16 }
 0xcd7   :  { %5017 = vmatprep.subr.bf16.mxu0 %v6464_v29  ;;  %5049 = vmatprep.subr.bf16.mxu1 %v6466_v44 }
 0xcda   :  { %5019 = vmatpush1.bf16.msra.mxu0 %v6468_v48  ;;  %5051 = vmatpush1.bf16.msra.mxu1 %v6471_v4 }
 0xcdb   :  { %5021 = vmatprep.subr.bf16.mxu0 %v6475_v22  ;;  %5053 = vmatprep.subr.bf16.mxu1 %v6477_v46 }
 0xcde   :  { %5023 = vmatpush1.bf16.msra.mxu0 %v6480_v27  ;;  %5055 = vmatpush1.bf16.msra.mxu1 %v6484_v38 }
 0xcdf   :  { %5025 = vmatprep.subr.bf16.mxu0 %v6486_v52  ;;  %5057 = vmatprep.subr.bf16.mxu1 %v6488_v7 }
 0xce2   :  { %5027 = vmatpush1.bf16.msra.mxu0 %v6491_v47  ;;  %5059 = vmatpush1.bf16.msra.mxu1 %v6495_v63 }
 0xce3   :  { %5029 = vmatprep.subr.bf16.mxu0 %v6497_v10  ;;  %5061 = vmatprep.subr.bf16.mxu1 %v6500_v26 }
 0xce6   :  { %5031 = vmatpush1.bf16.msra.mxu0 %v6503_v40  ;;  %5063 = vmatpush1.bf16.msra.mxu1 %v6507_v54 }
 0xce7   :  { %5033 = vmatprep.subr.bf16.mxu0 %v6512_v14  ;;  %5065 = vmatprep.subr.bf16.mxu1 %v6514_v8 }
 0xcea   :  { %5035 = vmatpush1.bf16.msra.mxu0 %v6516_v17  ;;  %5067 = vmatpush1.bf16.msra.mxu1 %v6519_v41 }
 0xceb   :  { %5069 = vmatprep.subr.bf16.mxu0 %v6428_v43  ;;  %5101 = vmatprep.subr.bf16.mxu1 %v6430_v51 }
 0xda0   :  { %v3187_v57 = vpop.f32.mrb[24].mxu0  ;;  %v3258_v30 = vpop.f32.mrb[24].mxu1 }
 0xda1   :  { %v5260_v59 = vadd.f32 %v3187_v57, %v6574_v45  ;;  %v3189_v25 = vpop.f32.mrb[25].mxu0  ;;  %v3260_v20 = vpop.f32.mrb[25].mxu1  ;;  %v5276_v19 = vadd.f32 %v3258_v30, %v6589_v34 }
 0xda2   :  { %v5261_v28 = vadd.f32 %v3189_v25, %v6578_v21  ;;  %v5277_v60 = vadd.f32 %v3260_v20, %v6584_v32 }
 0xda3   :  { %v3979_v50 = vmul.f32 -1.442695, %v5260_v59 }
 0xda4   :  { %v3980_v56 = vmul.f32 -1.442695, %v5261_v28  ;;  %v3981_v13 = vmul.f32 -1.442695, %v5277_v60 }
 0xda5   :  { %5554 = vpow2.f32 %v3979_v50 }
 0xda6   :  { %5556 = vpow2.f32 %v3980_v56 }
 0xda7   :  { %5558 = vpow2.f32 %v3981_v13 }
 0xda8   :  { %5560 = vtanh.f32 %v5276_v19 }
 0xdaf   :  { %v5555_v23 = vpop.eup %5554 }
 0xdb0   :  { %v5557_v31 = vpop.eup %5556  ;;  %v3270_v36 = vadd.f32 1.0, %v5555_v23 }
 0xdb1   :  { %v3276_v58 = vadd.f32 1.0, %v5557_v31  ;;  %v5559_v62 = vpop.eup %5558 }
 0xdb2   :  { %5562 = vrcp.f32 %v3270_v36  ;;  %v5561_v35 = vpop.eup %5560  ;;  %v3283_v18 = vadd.f32 1.0, %v5559_v62 }
 0xdb3   :  { %5564 = vrcp.f32 %v3276_v58 }
 0xdb4   :  { %5566 = vrcp.f32 %v3283_v18 }
 0xdbc   :  { %v5563_v9 = vpop.eup %5562 }
 0xdbd   :  { %v5565_v37 = vpop.eup %5564  ;;  %v3287_v42 = vmul.f32 %v5563_v9, %v5561_v35 }
 0xdbe   :  { %v3286_v2 = vmul.f32 %v5565_v37, %v6718_v11  ;;  %v5567_v1 = vpop.eup %5566 }
 0xdc0   :  { %v6760_v15 = vadd.f32 %v3287_v42, %v3286_v2 }
 0xdc2   :  { %5568 = vtanh.f32 %v6760_v15 }
 0xdcc   :  { %v5569_v49 = vpop.eup %5568 }
 0xdcd   :  { %v3290_v33 = vmul.f32 %v5569_v49, %v5567_v1  ;;  %v3834_v49 = vld [vmem:[#allocation15 + $0x18] sm:$0xff] }
 0xdcf   :  { %3364 = vmatmul.mubr.f32.vlgmr.msra.gmra.mrb[26].mxu0 %v3290_v33  ;;  %3435 = vmatmul.mubr.f32.vlgmr.msra.gmra.mrb[26].mxu1 %v3290_v33 }
 0xdd0   :  { %5071 = vmatpush1.bf16.msra.mxu0 %v6432_v39  ;;  %5103 = vmatpush1.bf16.msra.mxu1 %v6435_v55 }
 0xdd1   :  { %5073 = vmatprep.subr.bf16.mxu0 %v6440_v61  ;;  %5105 = vmatprep.subr.bf16.mxu1 %v6442_v24 }
 0xdd2   :  { %3541 = vmatprep.mubr.f32.mxu0 %v5792_v0  ;;  %3612 = vmatprep.mubr.f32.mxu1 %v5792_v0 }
 0xdd4   :  { %5075 = vmatpush1.bf16.msra.mxu0 %v6444_v12  ;;  %5107 = vmatpush1.bf16.msra.mxu1 %v6447_v5 }
 0xdd5   :  { %5077 = vmatprep.subr.bf16.mxu0 %v6452_v53  ;;  %5109 = vmatprep.subr.bf16.mxu1 %v6454_v3 }
 0xdd8   :  { %5079 = vmatpush1.bf16.msra.mxu0 %v6456_v6  ;;  %5111 = vmatpush1.bf16.msra.mxu1 %v6459_v16 }
 0xdd9   :  { %5081 = vmatprep.subr.bf16.mxu0 %v6464_v29  ;;  %5113 = vmatprep.subr.bf16.mxu1 %v6466_v44 }
 0xddc   :  { %5083 = vmatpush1.bf16.msra.mxu0 %v6468_v48  ;;  %5115 = vmatpush1.bf16.msra.mxu1 %v6471_v4 }
 0xddd   :  { %5085 = vmatprep.subr.bf16.mxu0 %v6475_v22  ;;  %5117 = vmatprep.subr.bf16.mxu1 %v6477_v46 }
 0xde0   :  { %5087 = vmatpush1.bf16.msra.mxu0 %v6480_v27  ;;  %5119 = vmatpush1.bf16.msra.mxu1 %v6484_v38 }
 0xde1   :  { %5089 = vmatprep.subr.bf16.mxu0 %v6486_v52  ;;  %5121 = vmatprep.subr.bf16.mxu1 %v6488_v7 }
 0xde4   :  { %5091 = vmatpush1.bf16.msra.mxu0 %v6491_v47  ;;  %5123 = vmatpush1.bf16.msra.mxu1 %v6495_v63 }
 0xde5   :  { %5093 = vmatprep.subr.bf16.mxu0 %v6497_v10  ;;  %5125 = vmatprep.subr.bf16.mxu1 %v6500_v26 }
 0xde8   :  { %5095 = vmatpush1.bf16.msra.mxu0 %v6503_v40  ;;  %5127 = vmatpush1.bf16.msra.mxu1 %v6507_v54 }
 0xde9   :  { %5097 = vmatprep.subr.bf16.mxu0 %v6512_v14  ;;  %5129 = vmatprep.subr.bf16.mxu1 %v6514_v8 }
 0xdec   :  { %5099 = vmatpush1.bf16.msra.mxu0 %v6516_v17  ;;  %5131 = vmatpush1.bf16.msra.mxu1 %v6519_v41 }
 0xded   :  { %5133 = vmatprep.subr.bf16.mxu0 %v6428_v43  ;;  %5165 = vmatprep.subr.bf16.mxu1 %v6430_v51 }
 0xea2   :  { %v3365_v11 = vpop.f32.mrb[26].mxu0  ;;  %v3436_v57 = vpop.f32.mrb[26].mxu1 }
 0xea3   :  { %v5262_v30 = vadd.f32 %v3365_v11, %v6574_v45  ;;  %v3367_v59 = vpop.f32.mrb[27].mxu0  ;;  %v3438_v25 = vpop.f32.mrb[27].mxu1  ;;  %v5278_v13 = vadd.f32 %v3436_v57, %v6589_v34  ;;  %v3835_v11 = vld [vmem:[#allocation15 + $0x20] sm:$0xff]  ;;  %v3836_v57 = vld [vmem:[#allocation15 + $0x28] sm:$0xff] }
 0xea4   :  { %v5263_v20 = vadd.f32 %v3367_v59, %v6578_v21  ;;  %v5279_v56 = vadd.f32 %v3438_v25, %v6584_v32  ;;  %v3837_v59 = vld [vmem:[#allocation15 + $0x30] sm:$0xff]  ;;  %v3838_v25 = vld [vmem:[#allocation15 + $0x38] sm:$0xff] }
 0xea5   :  { %v3982_v28 = vmul.f32 -1.442695, %v5262_v30  ;;  %v5203_v30 = vpack.c.bf16 %v3836_v57, %v3835_v11 }
 0xea6   :  { %v3983_v50 = vmul.f32 -1.442695, %v5263_v20  ;;  %v3984_v60 = vmul.f32 -1.442695, %v5279_v56  ;;  %v5206_v20 = vpack.c.bf16 %v3838_v25, %v3837_v59 }
 0xea7   :  { %5570 = vpow2.f32 %v3982_v28  ;;  %v3839_v28 = vld [vmem:[#allocation15 + $0x40] sm:$0xff] }
 0xea8   :  { %5572 = vpow2.f32 %v3983_v50  ;;  %v3840_v50 = vld [vmem:[#allocation15 + $0x48] sm:$0xff] }
 0xea9   :  { %5574 = vpow2.f32 %v3984_v60  ;;  %v5209_v56 = vpack.c.bf16 %v3840_v50, %v3839_v28  ;;  %v3841_v60 = vld [vmem:[#allocation15 + $0x50] sm:$0xff] }
 0xeaa   :  { %5576 = vtanh.f32 %v5278_v13  ;;  %v3842_v13 = vld [vmem:[#allocation15 + $0x58] sm:$0xff] }
 0xeb1   :  { %v5571_v43 = vpop.eup %5570 }
 0xeb2   :  { %v5573_v19 = vpop.eup %5572  ;;  %v3448_v51 = vadd.f32 1.0, %v5571_v43  ;;  %v3843_v43 = vld [vmem:[#allocation15 + $0x60] sm:$0xff] }
 0xeb3   :  { %v3454_v23 = vadd.f32 1.0, %v5573_v19  ;;  %v5575_v31 = vpop.eup %5574  ;;  %v5212_v19 = vpack.c.bf16 %v3842_v13, %v3841_v60 }
 0xeb4   :  { %5578 = vrcp.f32 %v3448_v51  ;;  %v5577_v36 = vpop.eup %5576  ;;  %v3461_v9 = vadd.f32 1.0, %v5575_v31  ;;  %v3844_v51 = vld [vmem:[#allocation15 + $0x68] sm:$0xff]  ;;  %v3845_v31 = vld [vmem:[#allocation15 + $0x70] sm:$0xff] }
 0xeb5   :  { %5580 = vrcp.f32 %v3454_v23  ;;  %v5215_v23 = vpack.c.bf16 %v3844_v51, %v3843_v43 }
 0xeb6   :  { %5582 = vrcp.f32 %v3461_v9 }
 0xebe   :  { %v5579_v58 = vpop.eup %5578 }
 0xebf   :  { %v5581_v62 = vpop.eup %5580  ;;  %v3465_v35 = vmul.f32 %v5579_v58, %v5577_v36  ;;  %v3846_v36 = vld [vmem:[#allocation15 + $0x78] sm:$0xff] }
 0xec0   :  { %v3464_v37 = vmul.f32 %v5581_v62, %v6760_v15  ;;  %v5583_v18 = vpop.eup %5582  ;;  %v3833_v15 = vld [vmem:[#allocation15 + $0x10] sm:$0xff]  ;;  %v5218_v58 = vpack.c.bf16 %v3846_v36, %v3845_v31 }
 0xec1   :  { %v5200_v33 = vpack.c.bf16 %v3834_v49, %v3833_v15 }
 0xec2   :  { %v6802_v42 = vadd.f32 %v3465_v35, %v3464_v37 }
 0xec4   :  { %5584 = vtanh.f32 %v6802_v42 }
 0xece   :  { %v5585_v2 = vpop.eup %5584 }
 0xecf   :  { %v3468_v1 = vmul.f32 %v5585_v2, %v5583_v18 }
 0xed1   :  { %3542 = vmatmul.mubr.f32.vlgmr.msra.gmra.mrb[28].mxu0 %v3468_v1  ;;  %3613 = vmatmul.mubr.f32.vlgmr.msra.gmra.mrb[28].mxu1 %v3468_v1 }
 0xed2   :  { %5135 = vmatpush1.bf16.msra.mxu0 %v6432_v39  ;;  %5167 = vmatpush1.bf16.msra.mxu1 %v6435_v55 }
 0xed3   :  { %5137 = vmatprep.subr.bf16.mxu0 %v6440_v61  ;;  %5169 = vmatprep.subr.bf16.mxu1 %v6442_v24 }
 0xed4   :  { %3719 = vmatprep.mubr.f32.mxu0 %v5792_v0  ;;  %3790 = vmatprep.mubr.f32.mxu1 %v5792_v0 }
 0xed6   :  { %5139 = vmatpush1.bf16.msra.mxu0 %v6444_v12  ;;  %5171 = vmatpush1.bf16.msra.mxu1 %v6447_v5 }
 0xed7   :  { %5141 = vmatprep.subr.bf16.mxu0 %v6452_v53  ;;  %5173 = vmatprep.subr.bf16.mxu1 %v6454_v3 }
 0xeda   :  { %5143 = vmatpush1.bf16.msra.mxu0 %v6456_v6  ;;  %5175 = vmatpush1.bf16.msra.mxu1 %v6459_v16 }
 0xedb   :  { %5145 = vmatprep.subr.bf16.mxu0 %v6464_v29  ;;  %5177 = vmatprep.subr.bf16.mxu1 %v6466_v44 }
 0xede   :  { %5147 = vmatpush1.bf16.msra.mxu0 %v6468_v48  ;;  %5179 = vmatpush1.bf16.msra.mxu1 %v6471_v4 }
 0xedf   :  { %5149 = vmatprep.subr.bf16.mxu0 %v6475_v22  ;;  %5181 = vmatprep.subr.bf16.mxu1 %v6477_v46 }
 0xee2   :  { %5151 = vmatpush1.bf16.msra.mxu0 %v6480_v27  ;;  %5183 = vmatpush1.bf16.msra.mxu1 %v6484_v38 }
 0xee3   :  { %5153 = vmatprep.subr.bf16.mxu0 %v6486_v52  ;;  %5185 = vmatprep.subr.bf16.mxu1 %v6488_v7 }
 0xee6   :  { %5155 = vmatpush1.bf16.msra.mxu0 %v6491_v47  ;;  %5187 = vmatpush1.bf16.msra.mxu1 %v6495_v63 }
 0xee7   :  { %5157 = vmatprep.subr.bf16.mxu0 %v6497_v10  ;;  %5189 = vmatprep.subr.bf16.mxu1 %v6500_v26 }
 0xeea   :  { %5159 = vmatpush1.bf16.msra.mxu0 %v6503_v40  ;;  %5191 = vmatpush1.bf16.msra.mxu1 %v6507_v54 }
 0xeeb   :  { %5161 = vmatprep.subr.bf16.mxu0 %v6512_v14  ;;  %5193 = vmatprep.subr.bf16.mxu1 %v6514_v8  ;;  %v3831_v14 = vld [vmem:[#allocation15] sm:$0xff]  ;;  %v3832_v8 = vld [vmem:[#allocation15 + $0x8] sm:$0xff] }
 0xeee   :  { %5163 = vmatpush1.bf16.msra.mxu0 %v6516_v17  ;;  %5195 = vmatpush1.bf16.msra.mxu1 %v6519_v41  ;;  %v5197_v17 = vpack.c.bf16 %v3832_v8, %v3831_v14  ;;  %v5793_v41 = vmov 0.0|0.0  }
 0xeef   :  { %5196 = vmatprep.subr.bf16.mxu0 %v5793_v41 }
 0xfa4   :  { %v3543_v39 = vpop.f32.mrb[28].mxu0  ;;  %v3614_v55 = vpop.f32.mrb[28].mxu1 }
 0xfa5   :  { %v5264_v61 = vadd.f32 %v3543_v39, %v6574_v45  ;;  %v3545_v24 = vpop.f32.mrb[29].mxu0  ;;  %v3616_v12 = vpop.f32.mrb[29].mxu1  ;;  %v5280_v29 = vadd.f32 %v3614_v55, %v6589_v34 }
 0xfa6   :  { %v5265_v5 = vadd.f32 %v3545_v24, %v6578_v21  ;;  %v5281_v6 = vadd.f32 %v3616_v12, %v6584_v32 }
 0xfa7   :  { %v3985_v53 = vmul.f32 -1.442695, %v5264_v61 }
 0xfa8   :  { %v3986_v3 = vmul.f32 -1.442695, %v5265_v5  ;;  %v3987_v16 = vmul.f32 -1.442695, %v5281_v6 }
 0xfa9   :  { %5586 = vpow2.f32 %v3985_v53 }
 0xfaa   :  { %5588 = vpow2.f32 %v3986_v3 }
 0xfab   :  { %5590 = vpow2.f32 %v3987_v16 }
 0xfac   :  { %5592 = vtanh.f32 %v5280_v29 }
 0xfb3   :  { %v5587_v44 = vpop.eup %5586 }
 0xfb4   :  { %v5589_v48 = vpop.eup %5588  ;;  %v3626_v4 = vadd.f32 1.0, %v5587_v44 }
 0xfb5   :  { %v3632_v22 = vadd.f32 1.0, %v5589_v48  ;;  %v5591_v46 = vpop.eup %5590 }
 0xfb6   :  { %5594 = vrcp.f32 %v3626_v4  ;;  %v5593_v27 = vpop.eup %5592  ;;  %v3639_v47 = vadd.f32 1.0, %v5591_v46  ;;  %v3991_v4 = vld [vmem:[%s6874_s8] ss:$0 sm:$0xff] }
 0xfb7   :  { %5596 = vrcp.f32 %v3632_v22 }
 0xfb8   :  { %5598 = vrcp.f32 %v3639_v47 }
 0xfc0   :  { %v5595_v38 = vpop.eup %5594 }
 0xfc1   :  { %v5597_v52 = vpop.eup %5596  ;;  %v3643_v7 = vmul.f32 %v5595_v38, %v5593_v27 }
 0xfc2   :  { %v3642_v63 = vmul.f32 %v5597_v52, %v6802_v42  ;;  %v5599_v26 = vpop.eup %5598 }
 0xfc4   :  { %v6842_v10 = vadd.f32 %v3643_v7, %v3642_v63 }
 0xfc6   :  { %5600 = vtanh.f32 %v6842_v10 }
 0xfd0   :  { %v5601_v40 = vpop.eup %5600 }
 0xfd1   :  { %v3646_v54 = vmul.f32 %v5601_v40, %v5599_v26 }
 0xfd3   :  { %3720 = vmatmul.mubr.f32.vlgmr.msra.gmra.mrb[30].mxu0 %v3646_v54  ;;  %3791 = vmatmul.mubr.f32.vlgmr.msra.gmra.mrb[30].mxu1 %v3646_v54 }
 0xfd4   :  { %5198 = vmatpush3.bf16.msra.mxu0 %v5197_v17  ;;  %4041 = vmatprep.mubr.msk.f32.mxu0 %vm5794_vm0, %v5792_v0 }
 0xfd5   :  { %5199 = vmatprep.subr.bf16.mxu0 %v5793_v41 }
 0xfd8   :  { %5201 = vmatpush3.bf16.msra.mxu0 %v5200_v33 }
 0xfd9   :  { %5202 = vmatprep.subr.bf16.mxu0 %v5793_v41 }
 0xfdc   :  { %5204 = vmatpush3.bf16.msra.mxu0 %v5203_v30 }
 0xfdd   :  { %5205 = vmatprep.subr.bf16.mxu0 %v5793_v41 }
 0xfe0   :  { %5207 = vmatpush3.bf16.msra.mxu0 %v5206_v20 }
 0xfe1   :  { %5208 = vmatprep.subr.bf16.mxu0 %v5793_v41 }
 0xfe4   :  { %5210 = vmatpush3.bf16.msra.mxu0 %v5209_v56 }
 0xfe5   :  { %5211 = vmatprep.subr.bf16.mxu0 %v5793_v41 }
 0xfe8   :  { %5213 = vmatpush3.bf16.msra.mxu0 %v5212_v19 }
 0xfe9   :  { %5214 = vmatprep.subr.bf16.mxu0 %v5793_v41 }
 0xfec   :  { %5216 = vmatpush3.bf16.msra.mxu0 %v5215_v23 }
 0xfed   :  { %5217 = vmatprep.subr.bf16.mxu0 %v5793_v41 }
 0xff0   :  { %5219 = vmatpush3.bf16.msra.mxu0 %v5218_v58 }
0x10a6   :  { %v3721_v62 = vpop.f32.mrb[30].mxu0  ;;  %v3792_v35 = vpop.f32.mrb[30].mxu1 }
0x10a7   :  { %v5266_v9 = vadd.f32 %v3721_v62, %v6574_v45  ;;  %v3723_v37 = vpop.f32.mrb[31].mxu0  ;;  %v3794_v42 = vpop.f32.mrb[31].mxu1  ;;  %v5282_v55 = vadd.f32 %v3792_v35, %v6589_v34 }
0x10a8   :  { %v5267_v18 = vadd.f32 %v3723_v37, %v6578_v21  ;;  %v5283_v0 = vadd.f32 %v3794_v42, %v6584_v32 }
0x10a9   :  { %v3988_v2 = vmul.f32 -1.442695, %v5266_v9 }
0x10aa   :  { %v3989_v1 = vmul.f32 -1.442695, %v5267_v18  ;;  %v3990_v39 = vmul.f32 -1.442695, %v5283_v0 }
0x10ab   :  { %5602 = vpow2.f32 %v3988_v2 }
0x10ac   :  { %5604 = vpow2.f32 %v3989_v1 }
0x10ad   :  { %5606 = vpow2.f32 %v3990_v39 }
0x10ae   :  { %5608 = vtanh.f32 %v5282_v55 }
0x10b5   :  { %v5603_v61 = vpop.eup %5602 }
0x10b6   :  { %v5605_v24 = vpop.eup %5604  ;;  %v3804_v12 = vadd.f32 1.0, %v5603_v61 }
0x10b7   :  { %v3810_v5 = vadd.f32 1.0, %v5605_v24  ;;  %v5607_v45 = vpop.eup %5606 }
0x10b8   :  { %5610 = vrcp.f32 %v3804_v12  ;;  %v5609_v53 = vpop.eup %5608  ;;  %v3817_v16 = vadd.f32 1.0, %v5607_v45 }
0x10b9   :  { %5612 = vrcp.f32 %v3810_v5 }
0x10ba   :  { %5614 = vrcp.f32 %v3817_v16 }
0x10c2   :  { %v5611_v21 = vpop.eup %5610 }
0x10c3   :  { %v5613_v3 = vpop.eup %5612  ;;  %v3821_v6 = vmul.f32 %v5611_v21, %v5609_v53 }
0x10c4   :  { %v3820_v29 = vmul.f32 %v5613_v3, %v6842_v10  ;;  %v5615_v34 = vpop.eup %5614 }
0x10c6   :  { %v3822_v32 = vadd.f32 %v3821_v6, %v3820_v29 }
0x10c8   :  { %5616 = vtanh.f32 %v3822_v32 }
0x10d2   :  { %v5617_v44 = vpop.eup %5616 }
0x10d3   :  { %v3824_v48 = vmul.f32 %v5617_v44, %v5615_v34 }
0x10d5   :  { %4042 = vmatmul.mubr.f32.vlgmr.msra.gmra.mrb[32].mxu0 %v3824_v48 }
0x11a8   :  { %v3920_v22 = vpop.f32.mrb[32].mxu0 }
0x11a9   :  { %v3921_v46 = vadd.f32 %v3991_v4, %v3920_v22  ;;  %v4043_v27 = vpop.f32.mrb[33].mxu0 }
0x11ab   :  { %3924 = vst [vmem:[#allocation17] sm:$0xff] %v3921_v46 }
0x11ac   :  { %5761 = shalt.err (!%p5758_p10)
}
0x11ad   :  { %s5762_s27 = scalar_lea.hbm %s6875_s9, 128 }
0x11ae   :  { %p5763_p11 = scmp.ne.s32.totalorder %s6875_s9, %s5762_s27  ;;  %p5766_p12 = scmp.lt.u32.totalorder %s5762_s27, %s6875_s9 }
0x11b0   :  { %p5768_p13 = pnand %p5766_p12, %p5763_p11 }
0x11b2   :  { %5771 = shalt.err (!%p5768_p13)
}
0x11b3   :  { %3934 = dma.vmem_to_hbm [thread:$0]  %s3932_s21, 128, %s6875_s9, [#allocation8]  }
0x11b4   :  { %5780 = dma.done.wait [#allocation8], 128  }
0x11b5   :  { %5781 = vsyncadd [#allocation8], 4294967168 }
0x11b6   :  { %3938 = vsyncpa [#allocation7], 1 }
0x11b7   :  { %3939 = vsyncpa [#allocation10], 1 }
0x11b8   :  { %3940 = vsyncpa [#allocation13], 1 }
0x11b9   :  { %3941 = vsyncpa [#allocation16], 1 }
0x11ba   :  { %3942 = vsyncpa [#allocation8], 1 }

</bundles_post_ra>
